<compile_context>
chip_gen: v5e
topology: v5e:2x2
jax: 0.10.0
libtpu: 0.0.40
codegen_flags: <defaults>
</compile_context>

<pallas_src>
import jax
import jax.numpy as jnp
import numpy as np
from jax.experimental import pallas as pl
from jax.experimental.pallas import tpu as pltpu


def _inception_kernel(x_ref,
                      wp_ref, bp_ref,
                      w3b_ref, b3b_ref, w3c_ref, b3c_ref,
                      out_ref,
                      pad16_ref, pad24_ref, padx_ref):
    # x_ref: (1, H, W, Cin); out_ref: (1, H, W, 16+24+24+Cin)
    H, W, Cin = x_ref.shape[1], x_ref.shape[2], x_ref.shape[3]
    Ctot = out_ref.shape[3]

    # Zero only the 1-pixel borders of the padded scratch buffers; the interior
    # [1:H+1, 1:W+1, :] is fully overwritten below.  Done every iteration (not
    # gated on program_id==0) so each TensorCore's private scratch is valid
    # when the parallel grid axis is sharded across cores (v7x megacore).
    def zero_border(ref):
        Hp, Wp, C = ref.shape
        ref[0:1, :, :] = jnp.zeros((1, Wp, C), jnp.float32)
        ref[Hp - 1:Hp, :, :] = jnp.zeros((1, Wp, C), jnp.float32)
        ref[1:Hp - 1, 0:1, :] = jnp.zeros((Hp - 2, 1, C), jnp.float32)
        ref[1:Hp - 1, Wp - 1:Wp, :] = jnp.zeros((Hp - 2, 1, C), jnp.float32)

    zero_border(pad16_ref)
    zero_border(pad24_ref)
    zero_border(padx_ref)

    x = x_ref[0]                       # (H, W, Cin)
    xf = x.reshape(H * W, Cin)         # flatten spatial for 1x1 convs

    # --- all shared-input 1x1 projections in ONE MXU matmul ---
    # columns [0:16]  -> branch1X1
    #         [16:40] -> fused branch5X5 (w5a @ w5b)
    #         [40:56] -> branch3X3 stage 1 (w3a)
    proj = jnp.dot(xf, wp_ref[...], preferred_element_type=jnp.float32) + bp_ref[...]
    y1 = proj[:, 0:16]
    y5 = proj[:, 16:40]
    y3 = proj[:, 40:56]

    # --- branch 3x3: first 3x3 (pad=1) via im2col, K = 9*16 = 144 ---
    pad16_ref[1:H + 1, 1:W + 1, :] = y3.reshape(H, W, 16)
    cols16 = jnp.concatenate(
        [pad16_ref[dh:dh + H, dw:dw + W, :].reshape(H * W, 16)
         for dh in range(3) for dw in range(3)], axis=-1)          # (H*W, 144)
    acc = jnp.dot(cols16, w3b_ref[...],
                  preferred_element_type=jnp.float32) + b3b_ref[...]

    # --- second 3x3 (pad=1) via im2col, K = 9*24 = 216 ---
    pad24_ref[1:H + 1, 1:W + 1, :] = acc.reshape(H, W, 24)
    cols24 = jnp.concatenate(
        [pad24_ref[dh:dh + H, dw:dw + W, :].reshape(H * W, 24)
         for dh in range(3) for dw in range(3)], axis=-1)          # (H*W, 216)
    y33 = jnp.dot(cols24, w3c_ref[...],
                  preferred_element_type=jnp.float32) + b3c_ref[...]

    # --- branch pool: avg_pool2d(k=3, s=1, p=1), count_include_pad=True ---
    padx_ref[1:H + 1, 1:W + 1, :] = x
    psum = jnp.zeros((H, W, Cin), jnp.float32)
    for dh in range(3):
        for dw in range(3):
            psum = psum + padx_ref[dh:dh + H, dw:dw + W, :]
    pool = (psum * (1.0 / 9.0)).reshape(H * W, Cin)

    # --- in-kernel channel concat: single lane-dense output store ---
    out_ref[0] = jnp.concatenate([y1, y5, y33, pool], axis=-1).reshape(H, W, Ctot)


def init_params(key, in_channels):
    ks = jax.random.split(key, 13)
    def w(k, shape):
        return jax.random.normal(k, shape, jnp.float32) * 0.1
    def b(k, c):
        return jax.random.normal(k, (1, c), jnp.float32) * 0.1
    return dict(
        w1=w(ks[0], (in_channels, 16)),   b1=b(ks[1], 16),
        w5a=w(ks[2], (in_channels, 16)),  b5a=b(ks[3], 16),
        w5b=w(ks[4], (16, 24)),           b5b=b(ks[5], 24),
        w3a=w(ks[6], (in_channels, 16)),  b3a=b(ks[7], 16),
        w3b=w(ks[8], (3, 3, 16, 24)),     b3b=b(ks[9], 24),
        w3c=w(ks[10], (3, 3, 24, 24)),    b3c=b(ks[11], 24),
        # branch_pool conv weights exist in __init__ but are unused in forward.
        w_pool=w(ks[12], (in_channels, 24)),
    )


@jax.jit
def inception_a(x_nchw, params):
    x = jnp.transpose(x_nchw, (0, 2, 3, 1)).astype(jnp.float32)  # NCHW -> NHWC
    N, H, W, Cin = x.shape
    Ctot = 16 + 24 + 24 + Cin

    # Host-side algebraic fusion (exact: no nonlinearity between the convs).
    w5 = jnp.dot(params["w5a"], params["w5b"])                     # (Cin, 24)
    b5 = jnp.dot(params["b5a"], params["w5b"]) + params["b5b"]     # (1, 24)
    wp = jnp.concatenate([params["w1"], w5, params["w3a"]], axis=1)   # (Cin, 56)
    bp = jnp.concatenate([params["b1"], b5, params["b3a"]], axis=1)   # (1, 56)
    # im2col weight layout: tap-major (dh, dw), then input channel.
    w3b = params["w3b"].reshape(9 * 16, 24)
    w3c = params["w3c"].reshape(9 * 24, 24)

    full = lambda n: (0, 0)
    img = lambda n: (n, 0, 0, 0)

    grid_spec = pltpu.PrefetchScalarGridSpec(
        num_scalar_prefetch=0,
        grid=(N,),
        in_specs=[
            pl.BlockSpec((1, H, W, Cin), img),
            pl.BlockSpec((Cin, 56), full), pl.BlockSpec((1, 56), full),
            pl.BlockSpec((9 * 16, 24), full), pl.BlockSpec((1, 24), full),
            pl.BlockSpec((9 * 24, 24), full), pl.BlockSpec((1, 24), full),
        ],
        out_specs=pl.BlockSpec((1, H, W, Ctot), img),
        scratch_shapes=[
            pltpu.VMEM((H + 2, W + 2, 16), jnp.float32),
            pltpu.VMEM((H + 2, W + 2, 24), jnp.float32),
            pltpu.VMEM((H + 2, W + 2, Cin), jnp.float32),
        ],
    )

    out_nhwc = pl.pallas_call(
        _inception_kernel,
        out_shape=jax.ShapeDtypeStruct((N, H, W, Ctot), jnp.float32),
        grid_spec=grid_spec,
        compiler_params=pltpu.CompilerParams(
            dimension_semantics=("parallel",)),
    )(x, wp, bp, w3b, params["b3b"], w3c, params["b3c"])

    # Public interface matches PyTorch (NCHW).  If the downstream consumer can
    # take NHWC, return out_nhwc directly and save a full HBM pass.
    return jnp.transpose(out_nhwc, (0, 3, 1, 2))


def reference(x_nchw, p):
    """Pure-JAX (XLA) reference of the same forward pass, for verification."""
    x = jnp.transpose(x_nchw, (0, 2, 3, 1)).astype(jnp.float32)

    def conv(inp, w_hwio, bias, padding):
        y = jax.lax.conv_general_dilated(
            inp, w_hwio, window_strides=(1, 1), padding=padding,
            dimension_numbers=("NHWC", "HWIO", "NHWC"))
        return y + bias.reshape(1, 1, 1, -1)

    as1x1 = lambda w: w.reshape(1, 1, *w.shape)
    b1 = conv(x, as1x1(p["w1"]), p["b1"], "VALID")
    b5 = conv(x, as1x1(p["w5a"]), p["b5a"], "VALID")
    b5 = conv(b5, as1x1(p["w5b"]), p["b5b"], "VALID")
    b3 = conv(x, as1x1(p["w3a"]), p["b3a"], "VALID")
    b3 = conv(b3, p["w3b"], p["b3b"], ((1, 1), (1, 1)))
    b3 = conv(b3, p["w3c"], p["b3c"], ((1, 1), (1, 1)))
    pool = jax.lax.reduce_window(
        x, 0.0, jax.lax.add, (1, 3, 3, 1), (1, 1, 1, 1),
        padding=((0, 0), (1, 1), (1, 1), (0, 0))) / 9.0
    out = jnp.concatenate([b1, b5, b3, pool], axis=-1)
    return jnp.transpose(out, (0, 3, 1, 2))


if __name__ == "__main__":
    key = jax.random.PRNGKey(0)
    k_x, k_p = jax.random.split(key)

    N, C, H, W = 2, 4, 16, 16
    x = jax.random.normal(k_x, (N, C, H, W), jnp.float32)
    params = init_params(k_p, C)

    out = inception_a(x, params)
    out = jax.block_until_ready(out)

    ref = jax.block_until_ready(reference(x, params))
    assert out.shape == (N, 16 + 24 + 24 + C, H, W), out.shape
    np.testing.assert_allclose(np.asarray(out), np.asarray(ref),
                               atol=1e-3, rtol=1e-3)
    print("KERNEL_OK")
</pallas_src>

<mosaic_0001>
module attributes {stable_mosaic.version = 11 : i64} {
  func.func @_inception_kernel(%arg0: i32, %arg1: memref<1x16x16x4xf32, #tpu.memory_space<vmem>>, %arg2: memref<4x56xf32, #tpu.memory_space<vmem>>, %arg3: memref<1x56xf32, #tpu.memory_space<vmem>>, %arg4: memref<144x24xf32, #tpu.memory_space<vmem>>, %arg5: memref<1x24xf32, #tpu.memory_space<vmem>>, %arg6: memref<216x24xf32, #tpu.memory_space<vmem>>, %arg7: memref<1x24xf32, #tpu.memory_space<vmem>>, %arg8: memref<1x16x16x68xf32, #tpu.memory_space<vmem>>, %arg9: memref<18x18x16xf32, #tpu.memory_space<vmem>>, %arg10: memref<18x18x24xf32, #tpu.memory_space<vmem>>, %arg11: memref<18x18x4xf32, #tpu.memory_space<vmem>>) attributes {dimension_semantics = [#tpu.dimension_semantics<parallel>], iteration_bounds = array<i64: 2>, scalar_prefetch = 0 : i64, scratch_operands = 3 : i64, tpu.core_type = #tpu.core_type<tc>, window_params = [{transform_indices = @transform_0, window_bounds = array<i64: 1, 16, 16, 4>}, {pipeline_mode = #tpu.pipeline_mode<synchronous>, transform_indices = @transform_1, window_bounds = array<i64: 4, 56>}, {pipeline_mode = #tpu.pipeline_mode<synchronous>, transform_indices = @transform_2, window_bounds = array<i64: 1, 56>}, {pipeline_mode = #tpu.pipeline_mode<synchronous>, transform_indices = @transform_3, window_bounds = array<i64: 144, 24>}, {pipeline_mode = #tpu.pipeline_mode<synchronous>, transform_indices = @transform_4, window_bounds = array<i64: 1, 24>}, {pipeline_mode = #tpu.pipeline_mode<synchronous>, transform_indices = @transform_5, window_bounds = array<i64: 216, 24>}, {pipeline_mode = #tpu.pipeline_mode<synchronous>, transform_indices = @transform_6, window_bounds = array<i64: 1, 24>}, {transform_indices = @transform_7, window_bounds = array<i64: 1, 16, 16, 68>}]} {
    %cst = arith.constant 0.000000e+00 : f32
    %0 = vector.broadcast %cst : f32 to vector<1x18x16xf32>
    %c0 = arith.constant 0 : index
    %c0_0 = arith.constant 0 : index
    %c0_1 = arith.constant 0 : index
    %1 = vector.load %arg9[%c0, %c0_0, %c0_1] : memref<18x18x16xf32, #tpu.memory_space<vmem>>, vector<1x18x16xf32>
    tpu.vector_store %arg9[%c0, %c0_0, %c0_1], %0 {strides = array<i32>} : memref<18x18x16xf32, #tpu.memory_space<vmem>>, vector<1x18x16xf32>,
    %cst_2 = arith.constant 0.000000e+00 : f32
    %2 = vector.broadcast %cst_2 : f32 to vector<1x18x16xf32>
    %c17 = arith.constant 17 : index
    %c0_3 = arith.constant 0 : index
    %c0_4 = arith.constant 0 : index
    %3 = vector.load %arg9[%c17, %c0_3, %c0_4] : memref<18x18x16xf32, #tpu.memory_space<vmem>>, vector<1x18x16xf32>
    tpu.vector_store %arg9[%c17, %c0_3, %c0_4], %2 {strides = array<i32>} : memref<18x18x16xf32, #tpu.memory_space<vmem>>, vector<1x18x16xf32>,
    %cst_5 = arith.constant 0.000000e+00 : f32
    %4 = vector.broadcast %cst_5 : f32 to vector<16x1x16xf32>
    %c1 = arith.constant 1 : index
    %c0_6 = arith.constant 0 : index
    %c0_7 = arith.constant 0 : index
    %5 = vector.load %arg9[%c1, %c0_6, %c0_7] : memref<18x18x16xf32, #tpu.memory_space<vmem>>, vector<16x1x16xf32>
    tpu.vector_store %arg9[%c1, %c0_6, %c0_7], %4 {strides = array<i32>} : memref<18x18x16xf32, #tpu.memory_space<vmem>>, vector<16x1x16xf32>,
    %cst_8 = arith.constant 0.000000e+00 : f32
    %6 = vector.broadcast %cst_8 : f32 to vector<16x1x16xf32>
    %c1_9 = arith.constant 1 : index
    %c17_10 = arith.constant 17 : index
    %c0_11 = arith.constant 0 : index
    %7 = vector.load %arg9[%c1_9, %c17_10, %c0_11] : memref<18x18x16xf32, #tpu.memory_space<vmem>>, vector<16x1x16xf32>
    tpu.vector_store %arg9[%c1_9, %c17_10, %c0_11], %6 {strides = array<i32>} : memref<18x18x16xf32, #tpu.memory_space<vmem>>, vector<16x1x16xf32>,
    %cst_12 = arith.constant 0.000000e+00 : f32
    %8 = vector.broadcast %cst_12 : f32 to vector<1x18x24xf32>
    %c0_13 = arith.constant 0 : index
    %c0_14 = arith.constant 0 : index
    %c0_15 = arith.constant 0 : index
    %9 = vector.load %arg10[%c0_13, %c0_14, %c0_15] : memref<18x18x24xf32, #tpu.memory_space<vmem>>, vector<1x18x24xf32>
    tpu.vector_store %arg10[%c0_13, %c0_14, %c0_15], %8 {strides = array<i32>} : memref<18x18x24xf32, #tpu.memory_space<vmem>>, vector<1x18x24xf32>,
    %cst_16 = arith.constant 0.000000e+00 : f32
    %10 = vector.broadcast %cst_16 : f32 to vector<1x18x24xf32>
    %c17_17 = arith.constant 17 : index
    %c0_18 = arith.constant 0 : index
    %c0_19 = arith.constant 0 : index
    %11 = vector.load %arg10[%c17_17, %c0_18, %c0_19] : memref<18x18x24xf32, #tpu.memory_space<vmem>>, vector<1x18x24xf32>
    tpu.vector_store %arg10[%c17_17, %c0_18, %c0_19], %10 {strides = array<i32>} : memref<18x18x24xf32, #tpu.memory_space<vmem>>, vector<1x18x24xf32>,
    %cst_20 = arith.constant 0.000000e+00 : f32
    %12 = vector.broadcast %cst_20 : f32 to vector<16x1x24xf32>
    %c1_21 = arith.constant 1 : index
    %c0_22 = arith.constant 0 : index
    %c0_23 = arith.constant 0 : index
    %13 = vector.load %arg10[%c1_21, %c0_22, %c0_23] : memref<18x18x24xf32, #tpu.memory_space<vmem>>, vector<16x1x24xf32>
    tpu.vector_store %arg10[%c1_21, %c0_22, %c0_23], %12 {strides = array<i32>} : memref<18x18x24xf32, #tpu.memory_space<vmem>>, vector<16x1x24xf32>,
    %cst_24 = arith.constant 0.000000e+00 : f32
    %14 = vector.broadcast %cst_24 : f32 to vector<16x1x24xf32>
    %c1_25 = arith.constant 1 : index
    %c17_26 = arith.constant 17 : index
    %c0_27 = arith.constant 0 : index
    %15 = vector.load %arg10[%c1_25, %c17_26, %c0_27] : memref<18x18x24xf32, #tpu.memory_space<vmem>>, vector<16x1x24xf32>
    tpu.vector_store %arg10[%c1_25, %c17_26, %c0_27], %14 {strides = array<i32>} : memref<18x18x24xf32, #tpu.memory_space<vmem>>, vector<16x1x24xf32>,
    %cst_28 = arith.constant 0.000000e+00 : f32
    %16 = vector.broadcast %cst_28 : f32 to vector<1x18x4xf32>
    %c0_29 = arith.constant 0 : index
    %c0_30 = arith.constant 0 : index
    %c0_31 = arith.constant 0 : index
    %17 = vector.load %arg11[%c0_29, %c0_30, %c0_31] : memref<18x18x4xf32, #tpu.memory_space<vmem>>, vector<1x18x4xf32>
    tpu.vector_store %arg11[%c0_29, %c0_30, %c0_31], %16 {strides = array<i32>} : memref<18x18x4xf32, #tpu.memory_space<vmem>>, vector<1x18x4xf32>,
    %cst_32 = arith.constant 0.000000e+00 : f32
    %18 = vector.broadcast %cst_32 : f32 to vector<1x18x4xf32>
    %c17_33 = arith.constant 17 : index
    %c0_34 = arith.constant 0 : index
    %c0_35 = arith.constant 0 : index
    %19 = vector.load %arg11[%c17_33, %c0_34, %c0_35] : memref<18x18x4xf32, #tpu.memory_space<vmem>>, vector<1x18x4xf32>
    tpu.vector_store %arg11[%c17_33, %c0_34, %c0_35], %18 {strides = array<i32>} : memref<18x18x4xf32, #tpu.memory_space<vmem>>, vector<1x18x4xf32>,
    %cst_36 = arith.constant 0.000000e+00 : f32
    %20 = vector.broadcast %cst_36 : f32 to vector<16x1x4xf32>
    %c1_37 = arith.constant 1 : index
    %c0_38 = arith.constant 0 : index
    %c0_39 = arith.constant 0 : index
    %21 = vector.load %arg11[%c1_37, %c0_38, %c0_39] : memref<18x18x4xf32, #tpu.memory_space<vmem>>, vector<16x1x4xf32>
    tpu.vector_store %arg11[%c1_37, %c0_38, %c0_39], %20 {strides = array<i32>} : memref<18x18x4xf32, #tpu.memory_space<vmem>>, vector<16x1x4xf32>,
    %cst_40 = arith.constant 0.000000e+00 : f32
    %22 = vector.broadcast %cst_40 : f32 to vector<16x1x4xf32>
    %c1_41 = arith.constant 1 : index
    %c17_42 = arith.constant 17 : index
    %c0_43 = arith.constant 0 : index
    %23 = vector.load %arg11[%c1_41, %c17_42, %c0_43] : memref<18x18x4xf32, #tpu.memory_space<vmem>>, vector<16x1x4xf32>
    tpu.vector_store %arg11[%c1_41, %c17_42, %c0_43], %22 {strides = array<i32>} : memref<18x18x4xf32, #tpu.memory_space<vmem>>, vector<16x1x4xf32>,
    %c0_44 = arith.constant 0 : index
    %c0_45 = arith.constant 0 : index
    %c0_46 = arith.constant 0 : index
    %c0_47 = arith.constant 0 : index
    %24 = vector.load %arg1[%c0_44, %c0_45, %c0_46, %c0_47] : memref<1x16x16x4xf32, #tpu.memory_space<vmem>>, vector<1x16x16x4xf32>
    %25 = vector.shape_cast %24 : vector<1x16x16x4xf32> to vector<16x16x4xf32>
    %26 = vector.shape_cast %25 : vector<16x16x4xf32> to vector<256x4xf32>
    %c0_48 = arith.constant 0 : index
    %c0_49 = arith.constant 0 : index
    %27 = vector.load %arg2[%c0_48, %c0_49] : memref<4x56xf32, #tpu.memory_space<vmem>>, vector<4x56xf32>
    %cst_50 = arith.constant dense<0.000000e+00> : vector<256x56xf32>
    %28 = tpu.matmul %26, %27, %cst_50 {dimension_numbers = #tpu.dot_dimension_numbers<[1], [0], [0], [1], [0, 0, 1, 1], [], []>} : vector<256x4xf32>, vector<4x56xf32>, vector<256x56xf32> -> vector<256x56xf32>
    %c0_51 = arith.constant 0 : index
    %c0_52 = arith.constant 0 : index
    %29 = vector.load %arg3[%c0_51, %c0_52] : memref<1x56xf32, #tpu.memory_space<vmem>>, vector<1x56xf32>
    %30 = vector.broadcast %29 : vector<1x56xf32> to vector<256x56xf32>
    %31 = arith.addf %28, %30 : vector<256x56xf32>
    %32 = vector.extract_strided_slice %31 {offsets = [0, 0], sizes = [256, 16], strides = [1, 1]} : vector<256x56xf32> to vector<256x16xf32>
    %33 = vector.extract_strided_slice %31 {offsets = [0, 16], sizes = [256, 24], strides = [1, 1]} : vector<256x56xf32> to vector<256x24xf32>
    %34 = vector.extract_strided_slice %31 {offsets = [0, 40], sizes = [256, 16], strides = [1, 1]} : vector<256x56xf32> to vector<256x16xf32>
    %35 = vector.shape_cast %34 : vector<256x16xf32> to vector<16x16x16xf32>
    %c1_53 = arith.constant 1 : index
    %c1_54 = arith.constant 1 : index
    %c0_55 = arith.constant 0 : index
    %36 = vector.load %arg9[%c1_53, %c1_54, %c0_55] : memref<18x18x16xf32, #tpu.memory_space<vmem>>, vector<16x16x16xf32>
    tpu.vector_store %arg9[%c1_53, %c1_54, %c0_55], %35 {strides = array<i32>} : memref<18x18x16xf32, #tpu.memory_space<vmem>>, vector<16x16x16xf32>,
    %c0_56 = arith.constant 0 : index
    %c0_57 = arith.constant 0 : index
    %c0_58 = arith.constant 0 : index
    %37 = vector.load %arg9[%c0_56, %c0_57, %c0_58] : memref<18x18x16xf32, #tpu.memory_space<vmem>>, vector<16x16x16xf32>
    %38 = vector.shape_cast %37 : vector<16x16x16xf32> to vector<256x16xf32>
    %c0_59 = arith.constant 0 : index
    %c1_60 = arith.constant 1 : index
    %c0_61 = arith.constant 0 : index
    %39 = vector.load %arg9[%c0_59, %c1_60, %c0_61] : memref<18x18x16xf32, #tpu.memory_space<vmem>>, vector<16x16x16xf32>
    %40 = vector.shape_cast %39 : vector<16x16x16xf32> to vector<256x16xf32>
    %c0_62 = arith.constant 0 : index
    %c2 = arith.constant 2 : index
    %c0_63 = arith.constant 0 : index
    %41 = vector.load %arg9[%c0_62, %c2, %c0_63] : memref<18x18x16xf32, #tpu.memory_space<vmem>>, vector<16x16x16xf32>
    %42 = vector.shape_cast %41 : vector<16x16x16xf32> to vector<256x16xf32>
    %c1_64 = arith.constant 1 : index
    %c0_65 = arith.constant 0 : index
    %c0_66 = arith.constant 0 : index
    %43 = vector.load %arg9[%c1_64, %c0_65, %c0_66] : memref<18x18x16xf32, #tpu.memory_space<vmem>>, vector<16x16x16xf32>
    %44 = vector.shape_cast %43 : vector<16x16x16xf32> to vector<256x16xf32>
    %c1_67 = arith.constant 1 : index
    %c1_68 = arith.constant 1 : index
    %c0_69 = arith.constant 0 : index
    %45 = vector.load %arg9[%c1_67, %c1_68, %c0_69] : memref<18x18x16xf32, #tpu.memory_space<vmem>>, vector<16x16x16xf32>
    %46 = vector.shape_cast %45 : vector<16x16x16xf32> to vector<256x16xf32>
    %c1_70 = arith.constant 1 : index
    %c2_71 = arith.constant 2 : index
    %c0_72 = arith.constant 0 : index
    %47 = vector.load %arg9[%c1_70, %c2_71, %c0_72] : memref<18x18x16xf32, #tpu.memory_space<vmem>>, vector<16x16x16xf32>
    %48 = vector.shape_cast %47 : vector<16x16x16xf32> to vector<256x16xf32>
    %c2_73 = arith.constant 2 : index
    %c0_74 = arith.constant 0 : index
    %c0_75 = arith.constant 0 : index
    %49 = vector.load %arg9[%c2_73, %c0_74, %c0_75] : memref<18x18x16xf32, #tpu.memory_space<vmem>>, vector<16x16x16xf32>
    %50 = vector.shape_cast %49 : vector<16x16x16xf32> to vector<256x16xf32>
    %c2_76 = arith.constant 2 : index
    %c1_77 = arith.constant 1 : index
    %c0_78 = arith.constant 0 : index
    %51 = vector.load %arg9[%c2_76, %c1_77, %c0_78] : memref<18x18x16xf32, #tpu.memory_space<vmem>>, vector<16x16x16xf32>
    %52 = vector.shape_cast %51 : vector<16x16x16xf32> to vector<256x16xf32>
    %c2_79 = arith.constant 2 : index
    %c2_80 = arith.constant 2 : index
    %c0_81 = arith.constant 0 : index
    %53 = vector.load %arg9[%c2_79, %c2_80, %c0_81] : memref<18x18x16xf32, #tpu.memory_space<vmem>>, vector<16x16x16xf32>
    %54 = vector.shape_cast %53 : vector<16x16x16xf32> to vector<256x16xf32>
    %55 = tpu.concatenate %38, %40, %42, %44, %46, %48, %50, %52, %54 in 1 : vector<256x16xf32>, vector<256x16xf32>, vector<256x16xf32>, vector<256x16xf32>, vector<256x16xf32>, vector<256x16xf32>, vector<256x16xf32>, vector<256x16xf32>, vector<256x16xf32> -> vector<256x144xf32>
    %c0_82 = arith.constant 0 : index
    %c0_83 = arith.constant 0 : index
    %56 = vector.load %arg4[%c0_82, %c0_83] : memref<144x24xf32, #tpu.memory_space<vmem>>, vector<144x24xf32>
    %cst_84 = arith.constant dense<0.000000e+00> : vector<256x24xf32>
    %57 = tpu.matmul %55, %56, %cst_84 {dimension_numbers = #tpu.dot_dimension_numbers<[1], [0], [0], [1], [0, 0, 1, 1], [], []>} : vector<256x144xf32>, vector<144x24xf32>, vector<256x24xf32> -> vector<256x24xf32>
    %c0_85 = arith.constant 0 : index
    %c0_86 = arith.constant 0 : index
    %58 = vector.load %arg5[%c0_85, %c0_86] : memref<1x24xf32, #tpu.memory_space<vmem>>, vector<1x24xf32>
    %59 = vector.broadcast %58 : vector<1x24xf32> to vector<256x24xf32>
    %60 = arith.addf %57, %59 : vector<256x24xf32>
    %61 = vector.shape_cast %60 : vector<256x24xf32> to vector<16x16x24xf32>
    %c1_87 = arith.constant 1 : index
    %c1_88 = arith.constant 1 : index
    %c0_89 = arith.constant 0 : index
    %62 = vector.load %arg10[%c1_87, %c1_88, %c0_89] : memref<18x18x24xf32, #tpu.memory_space<vmem>>, vector<16x16x24xf32>
    tpu.vector_store %arg10[%c1_87, %c1_88, %c0_89], %61 {strides = array<i32>} : memref<18x18x24xf32, #tpu.memory_space<vmem>>, vector<16x16x24xf32>,
    %c0_90 = arith.constant 0 : index
    %c0_91 = arith.constant 0 : index
    %c0_92 = arith.constant 0 : index
    %63 = vector.load %arg10[%c0_90, %c0_91, %c0_92] : memref<18x18x24xf32, #tpu.memory_space<vmem>>, vector<16x16x24xf32>
    %64 = vector.shape_cast %63 : vector<16x16x24xf32> to vector<256x24xf32>
    %c0_93 = arith.constant 0 : index
    %c1_94 = arith.constant 1 : index
    %c0_95 = arith.constant 0 : index
    %65 = vector.load %arg10[%c0_93, %c1_94, %c0_95] : memref<18x18x24xf32, #tpu.memory_space<vmem>>, vector<16x16x24xf32>
    %66 = vector.shape_cast %65 : vector<16x16x24xf32> to vector<256x24xf32>
    %c0_96 = arith.constant 0 : index
    %c2_97 = arith.constant 2 : index
    %c0_98 = arith.constant 0 : index
    %67 = vector.load %arg10[%c0_96, %c2_97, %c0_98] : memref<18x18x24xf32, #tpu.memory_space<vmem>>, vector<16x16x24xf32>
    %68 = vector.shape_cast %67 : vector<16x16x24xf32> to vector<256x24xf32>
    %c1_99 = arith.constant 1 : index
    %c0_100 = arith.constant 0 : index
    %c0_101 = arith.constant 0 : index
    %69 = vector.load %arg10[%c1_99, %c0_100, %c0_101] : memref<18x18x24xf32, #tpu.memory_space<vmem>>, vector<16x16x24xf32>
    %70 = vector.shape_cast %69 : vector<16x16x24xf32> to vector<256x24xf32>
    %c1_102 = arith.constant 1 : index
    %c1_103 = arith.constant 1 : index
    %c0_104 = arith.constant 0 : index
    %71 = vector.load %arg10[%c1_102, %c1_103, %c0_104] : memref<18x18x24xf32, #tpu.memory_space<vmem>>, vector<16x16x24xf32>
    %72 = vector.shape_cast %71 : vector<16x16x24xf32> to vector<256x24xf32>
    %c1_105 = arith.constant 1 : index
    %c2_106 = arith.constant 2 : index
    %c0_107 = arith.constant 0 : index
    %73 = vector.load %arg10[%c1_105, %c2_106, %c0_107] : memref<18x18x24xf32, #tpu.memory_space<vmem>>, vector<16x16x24xf32>
    %74 = vector.shape_cast %73 : vector<16x16x24xf32> to vector<256x24xf32>
    %c2_108 = arith.constant 2 : index
    %c0_109 = arith.constant 0 : index
    %c0_110 = arith.constant 0 : index
    %75 = vector.load %arg10[%c2_108, %c0_109, %c0_110] : memref<18x18x24xf32, #tpu.memory_space<vmem>>, vector<16x16x24xf32>
    %76 = vector.shape_cast %75 : vector<16x16x24xf32> to vector<256x24xf32>
    %c2_111 = arith.constant 2 : index
    %c1_112 = arith.constant 1 : index
    %c0_113 = arith.constant 0 : index
    %77 = vector.load %arg10[%c2_111, %c1_112, %c0_113] : memref<18x18x24xf32, #tpu.memory_space<vmem>>, vector<16x16x24xf32>
    %78 = vector.shape_cast %77 : vector<16x16x24xf32> to vector<256x24xf32>
    %c2_114 = arith.constant 2 : index
    %c2_115 = arith.constant 2 : index
    %c0_116 = arith.constant 0 : index
    %79 = vector.load %arg10[%c2_114, %c2_115, %c0_116] : memref<18x18x24xf32, #tpu.memory_space<vmem>>, vector<16x16x24xf32>
    %80 = vector.shape_cast %79 : vector<16x16x24xf32> to vector<256x24xf32>
    %81 = tpu.concatenate %64, %66, %68, %70, %72, %74, %76, %78, %80 in 1 : vector<256x24xf32>, vector<256x24xf32>, vector<256x24xf32>, vector<256x24xf32>, vector<256x24xf32>, vector<256x24xf32>, vector<256x24xf32>, vector<256x24xf32>, vector<256x24xf32> -> vector<256x216xf32>
    %c0_117 = arith.constant 0 : index
    %c0_118 = arith.constant 0 : index
    %82 = vector.load %arg6[%c0_117, %c0_118] : memref<216x24xf32, #tpu.memory_space<vmem>>, vector<216x24xf32>
    %cst_119 = arith.constant dense<0.000000e+00> : vector<256x24xf32>
    %83 = tpu.matmul %81, %82, %cst_119 {dimension_numbers = #tpu.dot_dimension_numbers<[1], [0], [0], [1], [0, 0, 1, 1], [], []>} : vector<256x216xf32>, vector<216x24xf32>, vector<256x24xf32> -> vector<256x24xf32>
    %c0_120 = arith.constant 0 : index
    %c0_121 = arith.constant 0 : index
    %84 = vector.load %arg7[%c0_120, %c0_121] : memref<1x24xf32, #tpu.memory_space<vmem>>, vector<1x24xf32>
    %85 = vector.broadcast %84 : vector<1x24xf32> to vector<256x24xf32>
    %86 = arith.addf %83, %85 : vector<256x24xf32>
    %c1_122 = arith.constant 1 : index
    %c1_123 = arith.constant 1 : index
    %c0_124 = arith.constant 0 : index
    %87 = vector.load %arg11[%c1_122, %c1_123, %c0_124] : memref<18x18x4xf32, #tpu.memory_space<vmem>>, vector<16x16x4xf32>
    tpu.vector_store %arg11[%c1_122, %c1_123, %c0_124], %25 {strides = array<i32>} : memref<18x18x4xf32, #tpu.memory_space<vmem>>, vector<16x16x4xf32>,
    %cst_125 = arith.constant 0.000000e+00 : f32
    %88 = vector.broadcast %cst_125 : f32 to vector<16x16x4xf32>
    %c0_126 = arith.constant 0 : index
    %c0_127 = arith.constant 0 : index
    %c0_128 = arith.constant 0 : index
    %89 = vector.load %arg11[%c0_126, %c0_127, %c0_128] : memref<18x18x4xf32, #tpu.memory_space<vmem>>, vector<16x16x4xf32>
    %90 = arith.addf %88, %89 : vector<16x16x4xf32>
    %c0_129 = arith.constant 0 : index
    %c1_130 = arith.constant 1 : index
    %c0_131 = arith.constant 0 : index
    %91 = vector.load %arg11[%c0_129, %c1_130, %c0_131] : memref<18x18x4xf32, #tpu.memory_space<vmem>>, vector<16x16x4xf32>
    %92 = arith.addf %90, %91 : vector<16x16x4xf32>
    %c0_132 = arith.constant 0 : index
    %c2_133 = arith.constant 2 : index
    %c0_134 = arith.constant 0 : index
    %93 = vector.load %arg11[%c0_132, %c2_133, %c0_134] : memref<18x18x4xf32, #tpu.memory_space<vmem>>, vector<16x16x4xf32>
    %94 = arith.addf %92, %93 : vector<16x16x4xf32>
    %c1_135 = arith.constant 1 : index
    %c0_136 = arith.constant 0 : index
    %c0_137 = arith.constant 0 : index
    %95 = vector.load %arg11[%c1_135, %c0_136, %c0_137] : memref<18x18x4xf32, #tpu.memory_space<vmem>>, vector<16x16x4xf32>
    %96 = arith.addf %94, %95 : vector<16x16x4xf32>
    %c1_138 = arith.constant 1 : index
    %c1_139 = arith.constant 1 : index
    %c0_140 = arith.constant 0 : index
    %97 = vector.load %arg11[%c1_138, %c1_139, %c0_140] : memref<18x18x4xf32, #tpu.memory_space<vmem>>, vector<16x16x4xf32>
    %98 = arith.addf %96, %97 : vector<16x16x4xf32>
    %c1_141 = arith.constant 1 : index
    %c2_142 = arith.constant 2 : index
    %c0_143 = arith.constant 0 : index
    %99 = vector.load %arg11[%c1_141, %c2_142, %c0_143] : memref<18x18x4xf32, #tpu.memory_space<vmem>>, vector<16x16x4xf32>
    %100 = arith.addf %98, %99 : vector<16x16x4xf32>
    %c2_144 = arith.constant 2 : index
    %c0_145 = arith.constant 0 : index
    %c0_146 = arith.constant 0 : index
    %101 = vector.load %arg11[%c2_144, %c0_145, %c0_146] : memref<18x18x4xf32, #tpu.memory_space<vmem>>, vector<16x16x4xf32>
    %102 = arith.addf %100, %101 : vector<16x16x4xf32>
    %c2_147 = arith.constant 2 : index
    %c1_148 = arith.constant 1 : index
    %c0_149 = arith.constant 0 : index
    %103 = vector.load %arg11[%c2_147, %c1_148, %c0_149] : memref<18x18x4xf32, #tpu.memory_space<vmem>>, vector<16x16x4xf32>
    %104 = arith.addf %102, %103 : vector<16x16x4xf32>
    %c2_150 = arith.constant 2 : index
    %c2_151 = arith.constant 2 : index
    %c0_152 = arith.constant 0 : index
    %105 = vector.load %arg11[%c2_150, %c2_151, %c0_152] : memref<18x18x4xf32, #tpu.memory_space<vmem>>, vector<16x16x4xf32>
    %106 = arith.addf %104, %105 : vector<16x16x4xf32>
    %cst_153 = arith.constant 0.111111112 : f32
    %107 = vector.broadcast %cst_153 : f32 to vector<16x16x4xf32>
    %108 = arith.mulf %106, %107 : vector<16x16x4xf32>
    %109 = vector.shape_cast %108 : vector<16x16x4xf32> to vector<256x4xf32>
    %110 = tpu.concatenate %32, %33, %86, %109 in 1 : vector<256x16xf32>, vector<256x24xf32>, vector<256x24xf32>, vector<256x4xf32> -> vector<256x68xf32>
    %111 = vector.shape_cast %110 : vector<256x68xf32> to vector<16x16x68xf32>
    %c0_154 = arith.constant 0 : index
    %c0_155 = arith.constant 0 : index
    %c0_156 = arith.constant 0 : index
    %c0_157 = arith.constant 0 : index
    %112 = vector.load %arg8[%c0_154, %c0_155, %c0_156, %c0_157] : memref<1x16x16x68xf32, #tpu.memory_space<vmem>>, vector<1x16x16x68xf32>
    %113 = vector.shape_cast %112 : vector<1x16x16x68xf32> to vector<16x16x68xf32>
    %114 = vector.shape_cast %111 : vector<16x16x68xf32> to vector<1x16x16x68xf32>
    tpu.vector_store %arg8[%c0_154, %c0_155, %c0_156, %c0_157], %114 {strides = array<i32>} : memref<1x16x16x68xf32, #tpu.memory_space<vmem>>, vector<1x16x16x68xf32>,
    return
  }
  func.func @transform_0(%arg0: i32) -> (i32, i32, i32, i32) {
    %c0_i32 = arith.constant 0 : i32
    %c0_i32_0 = arith.constant 0 : i32
    %c0_i32_1 = arith.constant 0 : i32
    %c0_i32_2 = arith.constant 0 : i32
    return %arg0, %c0_i32, %c0_i32_0, %c0_i32_1 : i32, i32, i32, i32
  }
  func.func @transform_1(%arg0: i32) -> (i32, i32) {
    %c0_i32 = arith.constant 0 : i32
    %c0_i32_0 = arith.constant 0 : i32
    %c0_i32_1 = arith.constant 0 : i32
    return %c0_i32, %c0_i32_0 : i32, i32
  }
  func.func @transform_2(%arg0: i32) -> (i32, i32) {
    %c0_i32 = arith.constant 0 : i32
    %c0_i32_0 = arith.constant 0 : i32
    %c0_i32_1 = arith.constant 0 : i32
    return %c0_i32, %c0_i32_0 : i32, i32
  }
  func.func @transform_3(%arg0: i32) -> (i32, i32) {
    %c0_i32 = arith.constant 0 : i32
    %c0_i32_0 = arith.constant 0 : i32
    %c0_i32_1 = arith.constant 0 : i32
    return %c0_i32, %c0_i32_0 : i32, i32
  }
  func.func @transform_4(%arg0: i32) -> (i32, i32) {
    %c0_i32 = arith.constant 0 : i32
    %c0_i32_0 = arith.constant 0 : i32
    %c0_i32_1 = arith.constant 0 : i32
    return %c0_i32, %c0_i32_0 : i32, i32
  }
  func.func @transform_5(%arg0: i32) -> (i32, i32) {
    %c0_i32 = arith.constant 0 : i32
    %c0_i32_0 = arith.constant 0 : i32
    %c0_i32_1 = arith.constant 0 : i32
    return %c0_i32, %c0_i32_0 : i32, i32
  }
  func.func @transform_6(%arg0: i32) -> (i32, i32) {
    %c0_i32 = arith.constant 0 : i32
    %c0_i32_0 = arith.constant 0 : i32
    %c0_i32_1 = arith.constant 0 : i32
    return %c0_i32, %c0_i32_0 : i32, i32
  }
  func.func @transform_7(%arg0: i32) -> (i32, i32, i32, i32) {
    %c0_i32 = arith.constant 0 : i32
    %c0_i32_0 = arith.constant 0 : i32
    %c0_i32_1 = arith.constant 0 : i32
    %c0_i32_2 = arith.constant 0 : i32
    return %arg0, %c0_i32, %c0_i32_0, %c0_i32_1 : i32, i32, i32, i32
  }
}

</mosaic_0001>

<bundles_post_ra>
// kernel: inception_a.1
= control target key start
LH: loop header
LB: loop body
LE: loop exit
PB: predicated region body
PF: predicated region fallthrough
CT: control target
= control target key end

     0   :  { %12 = vsyncpa [#allocation6], 0  ;;  %s10288_s0 = inlined_call_operand.vmem [shape: f32[2,16,16,4], index: 0, kind: input, shape index: {}]   ;;  %s10289_s1 = inlined_call_operand.vmem [shape: f32[4,56], index: 1, kind: input, shape index: {}]   ;;  %s10290_s2 = inlined_call_operand.vmem [shape: f32[1,56], index: 2, kind: input, shape index: {}]   ;;  %s10291_s3 = inlined_call_operand.vmem [shape: f32[144,24], index: 3, kind: input, shape index: {}]   ;;  %s10292_s4 = inlined_call_operand.vmem [shape: f32[1,24], index: 4, kind: input, shape index: {}]   ;;  %s10293_s5 = inlined_call_operand.vmem [shape: f32[216,24], index: 5, kind: input, shape index: {}]   ;;  %s10294_s6 = inlined_call_operand.vmem [shape: f32[1,24], index: 6, kind: input, shape index: {}]   ;;  %s10295_s7 = inlined_call_operand.hbm [shape: f32[2,16,16,68], index: 7, kind: output, shape index: {}]  }
   0x1   :  { %14 = vsyncpa [#allocation6 + $0x1], 0  ;;  %s6814_s24 = smov 0   ;;  %s6816_s25 = smov 0  }
   0x2   :  { %s6818_s26 = smov 0   ;;  %s6820_s27 = smov 0  }
   0x3 LB: > { %s6835_s28 = sadd.s32 4294967295, %s6757_s27   ;;  %s5605_s29 = sadd.s32 4294967294, %s6757_s27   ;;  %s6757_s27 = sphi %s6820_s27, %s10584_s27   ;;  %s6753_s26 = sphi %s6818_s26, %s10583_s26   ;;  %s6749_s25 = sphi %s6816_s25, %s10582_s25   ;;  %s6745_s24 = sphi %s6814_s24, %s10581_s24  }
   0x4   : > { %s6839_s30 = sadd.s32 1, %s6757_s27   ;;  %s179_s8 = sadd.s32 1, %s6753_s26 }
   0x5   : > { %s176_s9 = ssub.s32 %s6757_s27, %s6839_s30  ;;  %p189_p0 = scmp.ne.s32.totalorder %s6753_s26, %s6749_s25 }
   0x6   : > { %p177_p1 = scmp.eq.s32.totalorder %s176_s9, 0  ;;  %p190_p2 = scmp.eq.s32.totalorder %s6835_s28, 1 }
   0x7   : > { %p195_p3 = scmp.ne.s32.totalorder %s6749_s25, %s6745_s24  ;;  %p196_p4 = scmp.eq.s32.totalorder %s5605_s29, 1 }
   0x8   : > { %s6850_s10 = scalar_select %p177_p1, %s6753_s26, %s179_s8  }
   0x9   : > { %p6852_p5 = por %p190_p2, %p189_p0  ;;  %p6856_p6 = por %p196_p4, %p195_p3 }
   0xa   : > { %p5608_p7 = scmp.ge.s32.totalorder %s6757_s27, 1  ;;  %p240_p8 = scmp.lt.s32.totalorder %s6757_s27, 3 }
   0xc   : > { %p241_p9 = pnand %p5608_p7, %p240_p8 }
   0xe   : > { %244 = sbr.rel (%p241_p9) target bundleno = 1711 (0x6af), region = 48 }
  0x13   : > { %v438_v0 = vld [vmem:[%s10289_s1] sm:$0xf]  ;;  %vm539_vm0 = vcmask 1043456   ;;  %p272_p10 = scmp.lt.s32.totalorder %s6835_s28, 1  ;;  %vm363_vm1 = vcmask 31744   ;;  %vm277_vm2 = vcmask 130048  }
  0x14   : > { %5612 = vmatpush.msk.msra.mxu0 %vm539_vm0, %v438_v0  ;;  %5716 = vmatpush.msk.msra.mxu1 %vm539_vm0, %v438_v0  ;;  %vm280_vm3 = vcmask 123904   ;;  %v10296_v33 = vmov 0.0   ;;  %s6760_s20 = smov 32   ;;  %s6761_s21 = smov 16   ;;  %v6991_v40 = vld [vmem:[%s10290_s2] ss:$0 sm:$0xff] }
  0x15   : > { %5717 = vmatpush.msk.msra.mxu2 %vm539_vm0, %v438_v0  ;;  %s273_s15 = scalar_select %p272_p10, %s6835_s28, 1  ;;  %5718 = vmatpush.msk.msra.mxu3 %vm539_vm0, %v438_v0  ;;  %278 = vst.msk [vmem:[#allocation2] sm:$0xff] %vm277_vm2, %v10296_v33  ;;  %vm287_vm4 = vcmask 122880   ;;  %vm2033_vm5 = vcmask 261120   ;;  %vm2066_vm6 = vcmask 392192   ;;  %vm2099_vm7 = vcmask 523264  }
  0x16   : > { %279 = vst.msk [vmem:[#allocation2 + $0x8] sm:$0xff] %vm277_vm2, %v10296_v33  ;;  %s6762_s29 = smov 88   ;;  %s6765_s17 = smov 48   ;;  %vm2132_vm8 = vcmask 654336   ;;  %vm2165_vm9 = vcmask 785408   ;;  %vm2198_vm10 = vcmask 916480  }
  0x17   : > { %s5714_s16 = sshll.u32 %s273_s15, 8  ;;  %281 = vst.msk [vmem:[#allocation2 + $0x10] sm:$0x3] %vm280_vm3, %v10296_v33  ;;  %s6763_s15 = smov 64   ;;  %vm320_vm11 = vcmask 195584   ;;  %vm323_vm12 = vcmask 189440  }
  0x18   : > { %s6870_s19 = scalar_lea.vmem %s10288_s0, %s5714_s16  ;;  %285 = vst.msk [vmem:[#allocation2 + $0x1a8] sm:$0x3] %vm280_vm3, %v10296_v33  ;;  %s6764_s16 = smov 80   ;;  %vm330_vm13 = vcmask 188416   ;;  %vm3984_vm14 = vcmask 588800   ;;  %vm4049_vm15 = vcmask 982016  }
  0x19   : > { %v406_v1 = vld [vmem:[%s6870_s19] sm:$0xff]  ;;  %v416_v2 = vld [vmem:[%s6870_s19 + $0x50] sm:$0xff]  ;;  %v433_v4 = vld [vmem:[%s6870_s19 + $0xd8] sm:$0xff]  ;;  %283 = vst.msk [vmem:[#allocation2 + $0x198] sm:$0xff] %vm277_vm2, %v10296_v33  ;;  %s6766_s18 = smov 96   ;;  %s6768_s8 = smov 24  }
  0x1a   : > { %v424_v3 = vld [vmem:[%s6870_s19 + $0x90] sm:$0xff]  ;;  %5613 = vmatmul.msk.f32.vlgmr.msra.gmra.mxu0 %vm363_vm1, %v406_v1  ;;  %4533 = vst.msk [vmem:[#allocation4 + $0x19] sm:$0xff] %vm363_vm1, %v406_v1  ;;  %5623 = vmatmul.msk.f32.vlgmr.msra.gmra.mxu1 %vm363_vm1, %v416_v2  ;;  %v425_v5 = vld [vmem:[%s6870_s19 + $0x98] sm:$0xff]  ;;  %v407_v6 = vld [vmem:[%s6870_s19 + $0x8] sm:$0xff]  ;;  %s6769_s14 = smov 72   ;;  %vm4114_vm0 = vcmask 326656  }
  0x1b   : > { %4543 = vst.msk [vmem:[#allocation4 + $0x91] sm:$0xff] %vm363_vm1, %v416_v2  ;;  %5631 = vmatmul.msk.f32.vlgmr.msra.gmra.mxu2 %vm363_vm1, %v424_v3  ;;  %5640 = vmatmul.msk.f32.vlgmr.msra.gmra.mxu3 %vm363_vm1, %v433_v4  ;;  %v417_v7 = vld [vmem:[%s6870_s19 + $0x58] sm:$0xff]  ;;  %v426_v8 = vld [vmem:[%s6870_s19 + $0xa0] sm:$0xff]  ;;  %v408_v10 = vld [vmem:[%s6870_s19 + $0x10] sm:$0xff]  ;;  %vm373_vm3 = vcmask 24576  }
  0x1c   : > { %4551 = vst.msk [vmem:[#allocation4 + $0xf1] sm:$0xff] %vm363_vm1, %v424_v3  ;;  %v434_v9 = vld [vmem:[%s6870_s19 + $0xe0] sm:$0xff]  ;;  %v435_v11 = vld [vmem:[%s6870_s19 + $0xe8] sm:$0xff]  ;;  %v409_v12 = vld [vmem:[%s6870_s19 + $0x18] sm:$0xff] }
  0x1d   : > { %4552 = vst.msk [vmem:[#allocation4 + $0xf9] sm:$0xff] %vm363_vm1, %v425_v5  ;;  %v418_v13 = vld [vmem:[%s6870_s19 + $0x60] sm:$0xff]  ;;  %v419_v15 = vld [vmem:[%s6870_s19 + $0x68] sm:$0xff]  ;;  %v420_v17 = vld [vmem:[%s6870_s19 + $0x70] sm:$0xff] }
  0x1e   : > { %4560 = vst.msk [vmem:[#allocation4 + $0x159] sm:$0xff] %vm363_vm1, %v433_v4  ;;  %v410_v14 = vld [vmem:[%s6870_s19 + $0x20] sm:$0xff]  ;;  %v427_v16 = vld [vmem:[%s6870_s19 + $0xa8] sm:$0xff]  ;;  %v428_v18 = vld [vmem:[%s6870_s19 + $0xb0] sm:$0xff] }
  0x1f   : > { %4534 = vst.msk [vmem:[#allocation4 + $0x21] sm:$0xff] %vm363_vm1, %v407_v6  ;;  %v436_v19 = vld [vmem:[%s6870_s19 + $0xf0] sm:$0xff]  ;;  %v411_v20 = vld [vmem:[%s6870_s19 + $0x28] sm:$0xff]  ;;  %v421_v21 = vld [vmem:[%s6870_s19 + $0x78] sm:$0xff] }
  0x20   : > { %4544 = vst.msk [vmem:[#allocation4 + $0x99] sm:$0xff] %vm363_vm1, %v417_v7  ;;  %v429_v22 = vld [vmem:[%s6870_s19 + $0xb8] sm:$0xff]  ;;  %v412_v24 = vld [vmem:[%s6870_s19 + $0x30] sm:$0xff]  ;;  %v422_v25 = vld [vmem:[%s6870_s19 + $0x80] sm:$0xff] }
  0x21   : > { %4553 = vst.msk [vmem:[#allocation4 + $0x109] sm:$0xff] %vm363_vm1, %v426_v8  ;;  %v437_v23 = vld [vmem:[%s6870_s19 + $0xf8] sm:$0xff]  ;;  %v430_v26 = vld [vmem:[%s6870_s19 + $0xc0] sm:$0xff]  ;;  %v423_v28 = vld [vmem:[%s6870_s19 + $0x88] sm:$0xff] }
  0x22   : > { %5614 = vmatmul.msk.f32.gmra.mxu0 %vm363_vm1, %v407_v6  ;;  %5624 = vmatmul.msk.f32.gmra.mxu1 %vm363_vm1, %v417_v7  ;;  %4561 = vst.msk [vmem:[#allocation4 + $0x169] sm:$0xff] %vm363_vm1, %v434_v9  ;;  %v413_v27 = vld [vmem:[%s6870_s19 + $0x38] sm:$0xff]  ;;  %v431_v29 = vld [vmem:[%s6870_s19 + $0xc8] sm:$0xff]  ;;  %v414_v30 = vld [vmem:[%s6870_s19 + $0x40] sm:$0xff] }
  0x23   : > { %5632 = vmatmul.msk.f32.gmra.mxu2 %vm363_vm1, %v425_v5  ;;  %5641 = vmatmul.msk.f32.gmra.mxu3 %vm363_vm1, %v434_v9  ;;  %4535 = vst.msk [vmem:[#allocation4 + $0x31] sm:$0xff] %vm363_vm1, %v408_v10  ;;  %v432_v31 = vld [vmem:[%s6870_s19 + $0xd0] sm:$0xff]  ;;  %v415_v32 = vld [vmem:[%s6870_s19 + $0x48] sm:$0xff]  ;;  %s6767_s19 = smov 112  }
  0x24   : > { %4562 = vst.msk [vmem:[#allocation4 + $0x171] sm:$0xff] %vm363_vm1, %v435_v11  ;;  %v880_v34 = vld [vmem:[#allocation2 + $0x2] sm:$0xff]  ;;  %v881_v35 = vld [vmem:[#allocation2 + $0xa] sm:$0xff] }
  0x25   : > { %4536 = vst.msk [vmem:[#allocation4 + $0x39] sm:$0xff] %vm363_vm1, %v409_v12  ;;  %v5789_v36 = vpack.i.bf16 %v881_v35, %v880_v34  ;;  %v848_v37 = vld [vmem:[#allocation2 + $0x1] sm:$0xff]  ;;  %v849_v38 = vld [vmem:[#allocation2 + $0x9] sm:$0xff] }
  0x26   : > { %4545 = vst.msk [vmem:[#allocation4 + $0xa9] sm:$0xff] %vm363_vm1, %v418_v13  ;;  %v5784_v39 = vpack.i.bf16 %v849_v38, %v848_v37 }
  0x27   : > { %4537 = vst.msk [vmem:[#allocation4 + $0x49] sm:$0xff] %vm363_vm1, %v410_v14  ;;  %5790 = vrot.lane.b32.xlu0 %v5789_v36, %s6760_s20 }
  0x28   : > { %4546 = vst.msk [vmem:[#allocation4 + $0xb1] sm:$0xff] %vm363_vm1, %v419_v15  ;;  %5785 = vrot.lane.b32.xlu2 %v5784_v39, %s6761_s21 }
  0x29   : > { %4554 = vst.msk [vmem:[#allocation4 + $0x111] sm:$0xff] %vm363_vm1, %v427_v16 }
  0x2a   : > { %5615 = vmatmul.msk.f32.gmra.mxu0 %vm363_vm1, %v408_v10  ;;  %5625 = vmatmul.msk.f32.gmra.mxu1 %vm363_vm1, %v418_v13  ;;  %4547 = vst.msk [vmem:[#allocation4 + $0xc1] sm:$0xff] %vm363_vm1, %v420_v17 }
  0x2b   : > { %5633 = vmatmul.msk.f32.gmra.mxu2 %vm363_vm1, %v426_v8  ;;  %5642 = vmatmul.msk.f32.gmra.mxu3 %vm363_vm1, %v435_v11  ;;  %4555 = vst.msk [vmem:[#allocation4 + $0x121] sm:$0xff] %vm363_vm1, %v428_v18 }
  0x2c   : > { %4563 = vst.msk [vmem:[#allocation4 + $0x181] sm:$0xff] %vm363_vm1, %v436_v19 }
  0x2d   : > { %4538 = vst.msk [vmem:[#allocation4 + $0x51] sm:$0xff] %vm363_vm1, %v411_v20 }
  0x2e   : > { %4548 = vst.msk [vmem:[#allocation4 + $0xc9] sm:$0xff] %vm363_vm1, %v421_v21 }
  0x2f   : > { %4556 = vst.msk [vmem:[#allocation4 + $0x129] sm:$0xff] %vm363_vm1, %v429_v22 }
  0x30   : > { %4564 = vst.msk [vmem:[#allocation4 + $0x189] sm:$0xff] %vm363_vm1, %v437_v23 }
  0x31   : > { %4539 = vst.msk [vmem:[#allocation4 + $0x61] sm:$0xff] %vm363_vm1, %v412_v24 }
  0x32   : > { %5616 = vmatmul.msk.f32.gmra.mxu0 %vm363_vm1, %v409_v12  ;;  %5626 = vmatmul.msk.f32.gmra.mxu1 %vm363_vm1, %v419_v15  ;;  %4549 = vst.msk [vmem:[#allocation4 + $0xd9] sm:$0xff] %vm363_vm1, %v422_v25 }
  0x33   : > { %5634 = vmatmul.msk.f32.gmra.mxu2 %vm363_vm1, %v427_v16  ;;  %5643 = vmatmul.msk.f32.gmra.mxu3 %vm363_vm1, %v436_v19  ;;  %4557 = vst.msk [vmem:[#allocation4 + $0x139] sm:$0xff] %vm363_vm1, %v430_v26 }
  0x34   : > { %4540 = vst.msk [vmem:[#allocation4 + $0x69] sm:$0xff] %vm363_vm1, %v413_v27 }
  0x35   : > { %4550 = vst.msk [vmem:[#allocation4 + $0xe1] sm:$0xff] %vm363_vm1, %v423_v28 }
  0x36   : > { %4558 = vst.msk [vmem:[#allocation4 + $0x141] sm:$0xff] %vm363_vm1, %v431_v29 }
  0x37   : > { %4541 = vst.msk [vmem:[#allocation4 + $0x79] sm:$0xff] %vm363_vm1, %v414_v30 }
  0x38   : > { %4559 = vst.msk [vmem:[#allocation4 + $0x151] sm:$0xff] %vm363_vm1, %v432_v31 }
  0x39   : > { %4542 = vst.msk [vmem:[#allocation4 + $0x81] sm:$0xff] %vm363_vm1, %v415_v32 }
  0x3a   : > { %5617 = vmatmul.msk.f32.gmra.mxu0 %vm363_vm1, %v410_v14  ;;  %5627 = vmatmul.msk.f32.gmra.mxu1 %vm363_vm1, %v420_v17  ;;  %284 = vst.msk [vmem:[#allocation2 + $0x1a0] sm:$0xff] %vm277_vm2, %v10296_v33 }
  0x3b   : > { %5635 = vmatmul.msk.f32.gmra.mxu2 %vm363_vm1, %v428_v18  ;;  %5644 = vmatmul.msk.f32.gmra.mxu3 %vm363_vm1, %v437_v23  ;;  %364 = vst.msk [vmem:[#allocation4] sm:$0xff] %vm363_vm1, %v10296_v33 }
  0x3c   : > { %365 = vst.msk [vmem:[#allocation4 + $0x8] sm:$0xff] %vm363_vm1, %v10296_v33 }
  0x3d   : > { %369 = vst.msk [vmem:[#allocation4 + $0x198] sm:$0xff] %vm363_vm1, %v10296_v33 }
  0x3e   : > { %370 = vst.msk [vmem:[#allocation4 + $0x1a0] sm:$0xff] %vm363_vm1, %v10296_v33 }
  0x3f   : > { %304 = vst.msk [vmem:[#allocation2 + $0x29] sm:$0x1] %vm287_vm4, %v10296_v33 }
  0x40   : > { %288 = vst.msk [vmem:[#allocation2 + $0x18] sm:$0x1] %vm287_vm4, %v10296_v33 }
  0x41   : > { %289 = vst.msk [vmem:[#allocation2 + $0x30] sm:$0x1] %vm287_vm4, %v10296_v33 }
  0x42   : > { %5618 = vmatmul.msk.f32.gmra.mxu0 %vm363_vm1, %v411_v20  ;;  %5628 = vmatmul.msk.f32.gmra.mxu1 %vm363_vm1, %v421_v21  ;;  %290 = vst.msk [vmem:[#allocation2 + $0x48] sm:$0x1] %vm287_vm4, %v10296_v33 }
  0x43   : > { %5636 = vmatmul.msk.f32.gmra.mxu2 %vm363_vm1, %v429_v22  ;;  %291 = vst.msk [vmem:[#allocation2 + $0x60] sm:$0x1] %vm287_vm4, %v10296_v33 }
  0x44   : > { %292 = vst.msk [vmem:[#allocation2 + $0x78] sm:$0x1] %vm287_vm4, %v10296_v33 }
  0x45   : > { %293 = vst.msk [vmem:[#allocation2 + $0x90] sm:$0x1] %vm287_vm4, %v10296_v33 }
  0x46   : > { %294 = vst.msk [vmem:[#allocation2 + $0xa8] sm:$0x1] %vm287_vm4, %v10296_v33 }
  0x47   : > { %295 = vst.msk [vmem:[#allocation2 + $0xc0] sm:$0x1] %vm287_vm4, %v10296_v33 }
  0x48   : > { %296 = vst.msk [vmem:[#allocation2 + $0xd8] sm:$0x1] %vm287_vm4, %v10296_v33 }
  0x49   : > { %297 = vst.msk [vmem:[#allocation2 + $0xf0] sm:$0x1] %vm287_vm4, %v10296_v33 }
  0x4a   : > { %5619 = vmatmul.msk.f32.gmra.mxu0 %vm363_vm1, %v412_v24  ;;  %5629 = vmatmul.msk.f32.gmra.mxu1 %vm363_vm1, %v422_v25  ;;  %298 = vst.msk [vmem:[#allocation2 + $0x108] sm:$0x1] %vm287_vm4, %v10296_v33 }
  0x4b   : > { %5637 = vmatmul.msk.f32.gmra.mxu2 %vm363_vm1, %v430_v26  ;;  %299 = vst.msk [vmem:[#allocation2 + $0x120] sm:$0x1] %vm287_vm4, %v10296_v33 }
  0x4c   : > { %300 = vst.msk [vmem:[#allocation2 + $0x138] sm:$0x1] %vm287_vm4, %v10296_v33 }
  0x4d   : > { %301 = vst.msk [vmem:[#allocation2 + $0x150] sm:$0x1] %vm287_vm4, %v10296_v33 }
  0x4e   : > { %302 = vst.msk [vmem:[#allocation2 + $0x168] sm:$0x1] %vm287_vm4, %v10296_v33 }
  0x4f   : > { %303 = vst.msk [vmem:[#allocation2 + $0x180] sm:$0x1] %vm287_vm4, %v10296_v33 }
  0x50   : > { %305 = vst.msk [vmem:[#allocation2 + $0x41] sm:$0x1] %vm287_vm4, %v10296_v33 }
  0x51   : > { %306 = vst.msk [vmem:[#allocation2 + $0x59] sm:$0x1] %vm287_vm4, %v10296_v33 }
  0x52   : > { %5620 = vmatmul.msk.f32.gmra.mxu0 %vm363_vm1, %v413_v27  ;;  %5630 = vmatmul.msk.f32.gmra.mxu1 %vm363_vm1, %v423_v28  ;;  %307 = vst.msk [vmem:[#allocation2 + $0x71] sm:$0x1] %vm287_vm4, %v10296_v33 }
  0x53   : > { %5638 = vmatmul.msk.f32.gmra.mxu2 %vm363_vm1, %v431_v29  ;;  %308 = vst.msk [vmem:[#allocation2 + $0x89] sm:$0x1] %vm287_vm4, %v10296_v33 }
  0x54   : > { %309 = vst.msk [vmem:[#allocation2 + $0xa1] sm:$0x1] %vm287_vm4, %v10296_v33 }
  0x55   : > { %310 = vst.msk [vmem:[#allocation2 + $0xb9] sm:$0x1] %vm287_vm4, %v10296_v33 }
  0x56   : > { %311 = vst.msk [vmem:[#allocation2 + $0xd1] sm:$0x1] %vm287_vm4, %v10296_v33 }
  0x57   : > { %312 = vst.msk [vmem:[#allocation2 + $0xe9] sm:$0x1] %vm287_vm4, %v10296_v33 }
  0x58   : > { %313 = vst.msk [vmem:[#allocation2 + $0x101] sm:$0x1] %vm287_vm4, %v10296_v33 }
  0x59   : > { %314 = vst.msk [vmem:[#allocation2 + $0x119] sm:$0x1] %vm287_vm4, %v10296_v33 }
  0x5a   : > { %5621 = vmatmul.msk.f32.gmra.mxu0 %vm363_vm1, %v414_v30  ;;  %315 = vst.msk [vmem:[#allocation2 + $0x131] sm:$0x1] %vm287_vm4, %v10296_v33 }
  0x5b   : > { %5639 = vmatmul.msk.f32.gmra.mxu2 %vm363_vm1, %v432_v31  ;;  %316 = vst.msk [vmem:[#allocation2 + $0x149] sm:$0x1] %vm287_vm4, %v10296_v33 }
  0x5c   : > { %317 = vst.msk [vmem:[#allocation2 + $0x161] sm:$0x1] %vm287_vm4, %v10296_v33 }
  0x5d   : > { %318 = vst.msk [vmem:[#allocation2 + $0x179] sm:$0x1] %vm287_vm4, %v10296_v33 }
  0x5e   : > { %319 = vst.msk [vmem:[#allocation2 + $0x191] sm:$0x1] %vm287_vm4, %v10296_v33  ;;  %vm5494_vm4 = vcmask 556032  }
  0x62   : > { %5622 = vmatmul.msk.f32.gmra.mxu0 %vm363_vm1, %v415_v32  ;;  %vm4210_vm1 = vcmask 719872  }
  0x97   : > { %v560_v41 = vpop.f32.mrf.mxu0  ;;  %v590_v42 = vpop.f32.mrf.mxu1 }
  0x98   : > { %v6994_v43 = vadd.f32 %v6991_v40, %v560_v41  ;;  %v6997_v44 = vadd.f32 %v6991_v40, %v590_v42 }
  0x9a   : > { %10387 = vst [vmem:[#allocation8_spill] sm:$0xff] %v6994_v43  ;;  %708 = vrot.lane.b32.xlu1 %v6997_v44, %s6762_s29  ;;  %688 = vrot.lane.b32.xlu0 %v6994_v43, %s6762_s29 }
  0x9b   : > { %10388 = vst [vmem:[#allocation9_spill] sm:$0xff] %v6997_v44 }
  0x9e   : > { %v614_v45 = vpop.f32.mrf.mxu2  ;;  %v641_v46 = vpop.f32.mrf.mxu3 }
  0x9f   : > { %v7004_v47 = vadd.f32 %v6991_v40, %v614_v45  ;;  %v563_v48 = vpop.f32.mrf.mxu0  ;;  %v593_v49 = vpop.f32.mrf.mxu1  ;;  %v7014_v52 = vadd.f32 %v6991_v40, %v641_v46 }
  0xa0   : > { %v7007_v50 = vadd.f32 %v6991_v40, %v593_v49  ;;  %v7027_v58 = vadd.f32 %v6991_v40, %v563_v48  ;;  %v7194_v46 = vpop.permute.xlu0 %5790 }
  0xa1   : > { %10389 = vst [vmem:[#allocation10_spill] sm:$0xff] %v7004_v47 }
  0xa2   : > { %10390 = vst [vmem:[#allocation11_spill] sm:$0xff] %v7007_v50  ;;  %724 = vrot.lane.b32.xlu0 %v7004_v47, %s6762_s29  ;;  %710 = vrot.lane.b32.xlu2 %v7007_v50, %s6762_s29 }
  0xa3   : > { %10391 = vst [vmem:[#allocation12_spill] sm:$0xff] %v7014_v52 }
  0xa4   : > { %10394 = vst [vmem:[#allocation15_spill] sm:$0xff] %v7027_v58 }
  0xa6   : > { %v617_v51 = vpop.f32.mrf.mxu2  ;;  %v644_v55 = vpop.f32.mrf.mxu3 }
  0xa7   : > { %v7017_v53 = vadd.f32 %v6991_v40, %v617_v51  ;;  %v566_v54 = vpop.f32.mrf.mxu0  ;;  %v596_v56 = vpop.f32.mrf.mxu1  ;;  %v7024_v57 = vadd.f32 %v6991_v40, %v644_v55 }
  0xa8   : > { %v7039_v0 = vadd.f32 %v6991_v40, %v566_v54  ;;  %v7045_v2 = vadd.f32 %v6991_v40, %v596_v56 }
  0xa9   : > { %10392 = vst [vmem:[#allocation13_spill] sm:$0xff] %v7017_v53  ;;  %726 = vrot.lane.b32.xlu1 %v7017_v53, %s6762_s29 }
  0xaa   : > { %742 = vrot.lane.b32.xlu0 %v7014_v52, %s6762_s29  ;;  %10393 = vst [vmem:[#allocation14_spill] sm:$0xff] %v7024_v57 }
  0xab   : > { %10396 = vst [vmem:[#allocation17_spill] sm:$0xff] %v7039_v0 }
  0xac   : > { %10398 = vst [vmem:[#allocation19_spill] sm:$0xff] %v7045_v2 }
  0xae   : > { %v620_v59 = vpop.f32.mrf.mxu2  ;;  %v647_v62 = vpop.f32.mrf.mxu3 }
  0xaf   : > { %v7030_v60 = vadd.f32 %v6991_v40, %v620_v59  ;;  %v569_v61 = vpop.f32.mrf.mxu0  ;;  %v599_v63 = vpop.f32.mrf.mxu1  ;;  %v7042_v1 = vadd.f32 %v6991_v40, %v647_v62 }
  0xb0   : > { %v7054_v6 = vadd.f32 %v6991_v40, %v569_v61  ;;  %v7069_v11 = vadd.f32 %v6991_v40, %v599_v63 }
  0xb1   : > { %10395 = vst [vmem:[#allocation16_spill] sm:$0xff] %v7030_v60  ;;  %728 = vrot.lane.b32.xlu2 %v7030_v60, %s6762_s29  ;;  %744 = vrot.lane.b32.xlu1 %v7024_v57, %s6762_s29 }
  0xb2   : > { %690 = vrot.lane.b32.xlu0 %v7027_v58, %s6762_s29  ;;  %10397 = vst [vmem:[#allocation18_spill] sm:$0xff] %v7042_v1 }
  0xb3   : > { %10399 = vst [vmem:[#allocation20_spill] sm:$0xff] %v7054_v6 }
  0xb4   : > { %10402 = vst [vmem:[#allocation23_spill] sm:$0xff] %v7069_v11 }
  0xb6   : > { %v623_v4 = vpop.f32.mrf.mxu2  ;;  %v650_v13 = vpop.f32.mrf.mxu3 }
  0xb7   : > { %v572_v3 = vpop.f32.mrf.mxu0  ;;  %v602_v5 = vpop.f32.mrf.mxu1  ;;  %v7060_v8 = vadd.f32 %v6991_v40, %v623_v4  ;;  %v7075_v15 = vadd.f32 %v6991_v40, %v650_v13  ;;  %v2248_v4 = vld [vmem:[%s10291_s3 + $0x88] sm:$0xff] }
  0xb8   : > { %v7057_v7 = vadd.f32 %v6991_v40, %v572_v3  ;;  %v7072_v12 = vadd.f32 %v6991_v40, %v602_v5  ;;  %v2247_v5 = vld [vmem:[%s10291_s3 + $0x80] sm:$0xff]  ;;  %2476 = vmatpush.msrb.mxu2 %v2248_v4 }
  0xb9   : > { %746 = vrot.lane.b32.xlu2 %v7042_v1, %s6762_s29  ;;  %692 = vrot.lane.b32.xlu1 %v7039_v0, %s6762_s29  ;;  %10401 = vst [vmem:[#allocation22_spill] sm:$0xff] %v7060_v8 }
  0xba   : > { %712 = vrot.lane.b32.xlu0 %v7045_v2, %s6762_s29  ;;  %10400 = vst [vmem:[#allocation21_spill] sm:$0xff] %v7057_v7  ;;  %2477 = vmatpush.msrb.mxu2 %v2247_v5 }
  0xbb   : > { %10403 = vst [vmem:[#allocation24_spill] sm:$0xff] %v7072_v12 }
  0xbc   : > { %10404 = vst [vmem:[#allocation25_spill] sm:$0xff] %v7075_v15 }
  0xbe   : > { %v626_v10 = vpop.f32.mrf.mxu2  ;;  %v653_v23 = vpop.f32.mrf.mxu3 }
  0xbf   : > { %v575_v9 = vpop.f32.mrf.mxu0  ;;  %v605_v14 = vpop.f32.mrf.mxu1  ;;  %v7087_v19 = vadd.f32 %v6991_v40, %v626_v10  ;;  %v7102_v25 = vadd.f32 %v6991_v40, %v653_v23 }
  0xc0   : > { %v7084_v18 = vadd.f32 %v6991_v40, %v575_v9  ;;  %v7090_v20 = vadd.f32 %v6991_v40, %v605_v14 }
  0xc1   : > { %696 = vrot.lane.b32.xlu2 %v7057_v7, %s6762_s29  ;;  %694 = vrot.lane.b32.xlu1 %v7054_v6, %s6762_s29  ;;  %10406 = vst [vmem:[#allocation27_spill] sm:$0xff] %v7087_v19 }
  0xc2   : > { %730 = vrot.lane.b32.xlu0 %v7060_v8, %s6762_s29  ;;  %10405 = vst [vmem:[#allocation26_spill] sm:$0xff] %v7084_v18 }
  0xc3   : > { %10407 = vst [vmem:[#allocation28_spill] sm:$0xff] %v7090_v20 }
  0xc4   : > { %10409 = vst [vmem:[#allocation30_spill] sm:$0xff] %v7102_v25 }
  0xc6   : > { %v629_v17 = vpop.f32.mrf.mxu2 }
  0xc7   : > { %v578_v16 = vpop.f32.mrf.mxu0  ;;  %v608_v21 = vpop.f32.mrf.mxu1  ;;  %v7099_v24 = vadd.f32 %v6991_v40, %v629_v17 }
  0xc8   : > { %v7105_v26 = vadd.f32 %v6991_v40, %v578_v16  ;;  %v7114_v30 = vadd.f32 %v6991_v40, %v608_v21 }
  0xc9   : > { %716 = vrot.lane.b32.xlu2 %v7072_v12, %s6762_s29  ;;  %714 = vrot.lane.b32.xlu1 %v7069_v11, %s6762_s29  ;;  %10408 = vst [vmem:[#allocation29_spill] sm:$0xff] %v7099_v24 }
  0xca   : > { %748 = vrot.lane.b32.xlu0 %v7075_v15, %s6762_s29  ;;  %10410 = vst [vmem:[#allocation31_spill] sm:$0xff] %v7105_v26 }
  0xcb   : > { %10411 = vst [vmem:[#allocation32_spill] sm:$0xff] %v7114_v30 }
  0xce   : > { %v632_v27 = vpop.f32.mrf.mxu2 }
  0xcf   : > { %v581_v22 = vpop.f32.mrf.mxu0  ;;  %v611_v28 = vpop.f32.mrf.mxu1  ;;  %v7120_v32 = vadd.f32 %v6991_v40, %v632_v27 }
  0xd0   : > { %v7117_v31 = vadd.f32 %v6991_v40, %v611_v28  ;;  %v7129_v36 = vadd.f32 %v6991_v40, %v581_v22 }
  0xd1   : > { %698 = vrot.lane.b32.xlu2 %v7084_v18, %s6762_s29  ;;  %732 = vrot.lane.b32.xlu1 %v7087_v19, %s6762_s29  ;;  %10413 = vst [vmem:[#allocation34_spill] sm:$0xff] %v7120_v32 }
  0xd2   : > { %718 = vrot.lane.b32.xlu0 %v7090_v20, %s6762_s29  ;;  %10412 = vst [vmem:[#allocation33_spill] sm:$0xff] %v7117_v31 }
  0xd3   : > { %10414 = vst [vmem:[#allocation35_spill] sm:$0xff] %v7129_v36 }
  0xd6   : > { %v635_v34 = vpop.f32.mrf.mxu2 }
  0xd7   : > { %v584_v29 = vpop.f32.mrf.mxu0  ;;  %v7144_v41 = vadd.f32 %v6991_v40, %v635_v34 }
  0xd8   : > { %v7132_v37 = vadd.f32 %v6991_v40, %v584_v29 }
  0xd9   : > { %734 = vrot.lane.b32.xlu2 %v7099_v24, %s6762_s29  ;;  %750 = vrot.lane.b32.xlu1 %v7102_v25, %s6762_s29  ;;  %10417 = vst [vmem:[#allocation38_spill] sm:$0xff] %v7144_v41 }
  0xda   : > { %700 = vrot.lane.b32.xlu0 %v7105_v26, %s6762_s29  ;;  %10415 = vst [vmem:[#allocation36_spill] sm:$0xff] %v7132_v37 }
  0xde   : > { %v638_v39 = vpop.f32.mrf.mxu2 }
  0xdf   : > { %v587_v35 = vpop.f32.mrf.mxu0  ;;  %v7147_v42 = vadd.f32 %v6991_v40, %v638_v39 }
  0xe0   : > { %v7135_v38 = vadd.f32 %v6991_v40, %v587_v35  ;;  %v7161_v40 = vpop.permute.xlu2 %5785 }
  0xe1   : > { %722 = vrot.lane.b32.xlu2 %v7117_v31, %s6762_s29  ;;  %720 = vrot.lane.b32.xlu1 %v7114_v30, %s6762_s29  ;;  %10418 = vst [vmem:[#allocation39_spill] sm:$0xff] %v7147_v42 }
  0xe2   : > { %736 = vrot.lane.b32.xlu0 %v7120_v32, %s6762_s29  ;;  %10416 = vst [vmem:[#allocation37_spill] sm:$0xff] %v7135_v38 }
  0xe9   : > { %704 = vrot.lane.b32.xlu2 %v7132_v37, %s6762_s29  ;;  %702 = vrot.lane.b32.xlu1 %v7129_v36, %s6762_s29 }
  0xea   : > { %706 = vrot.lane.b32.xlu0 %v7135_v38, %s6762_s29 }
  0xf1   : > { %740 = vrot.lane.b32.xlu2 %v7147_v42, %s6762_s29  ;;  %738 = vrot.lane.b32.xlu1 %v7144_v41, %s6762_s29 }
  0xfc   : > { %v711_v45 = vpop.permute.xlu2 %710 }
  0xfd   : > { %795 = vst.msk [vmem:[#allocation2 + $0x99] sm:$0xff] %vm277_vm2, %v711_v45 }
 0x104   : > { %v861_v54 = vld [vmem:[#allocation2 + $0x99] sm:$0xff] }
 0x105   : > { %v7251_v35 = vld [vmem:[#allocation2 + $0x9a] sm:$0xff] }
 0x10b   : > { %v729_v48 = vpop.permute.xlu2 %728 }
 0x10c   : > { %804 = vst.msk [vmem:[#allocation2 + $0x109] sm:$0xff] %vm277_vm2, %v729_v48  ;;  %v709_v49 = vpop.permute.xlu1 %708  ;;  %v689_v51 = vpop.permute.xlu0 %688 }
 0x10d   : > { %794 = vst.msk [vmem:[#allocation2 + $0x91] sm:$0xff] %vm277_vm2, %v709_v49 }
 0x10e   : > { %784 = vst.msk [vmem:[#allocation2 + $0x19] sm:$0xff] %vm277_vm2, %v689_v51 }
 0x113   : > { %v747_v55 = vpop.permute.xlu2 %746 }
 0x114   : > { %813 = vst.msk [vmem:[#allocation2 + $0x171] sm:$0xff] %vm277_vm2, %v747_v55  ;;  %v725_v56 = vpop.permute.xlu0 %724  ;;  %v860_v59 = vld [vmem:[#allocation2 + $0x91] sm:$0xff] }
 0x115   : > { %802 = vst.msk [vmem:[#allocation2 + $0xf1] sm:$0xff] %vm277_vm2, %v725_v56  ;;  %v7227_v61 = vpack.i.bf16 %v861_v54, %v860_v59  ;;  %v944_v17 = vld [vmem:[#allocation2 + $0x19] sm:$0xff] }
 0x116   : > { %v7249_v34 = vld [vmem:[#allocation2 + $0x92] sm:$0xff] }
 0x117   : > { %5800 = vrot.lane.b32.xlu2 %v7227_v61, %s6761_s21  ;;  %v5839_v49 = vpack.i.bf16 %v7251_v35, %v7249_v34  ;;  %v7257_v54 = vld [vmem:[#allocation2 + $0x18] sm:$0xff] }
 0x11b   : > { %v727_v62 = vpop.permute.xlu1 %726  ;;  %v697_v63 = vpop.permute.xlu2 %696 }
 0x11c   : > { %803 = vst.msk [vmem:[#allocation2 + $0xf9] sm:$0xff] %vm277_vm2, %v727_v62  ;;  %v743_v3 = vpop.permute.xlu0 %742  ;;  %v1017_v62 = vld [vmem:[#allocation2 + $0x90] sm:$0xff] }
 0x11d   : > { %788 = vst.msk [vmem:[#allocation2 + $0x49] sm:$0xff] %vm277_vm2, %v697_v63  ;;  %v1018_v63 = vld [vmem:[#allocation2 + $0x98] sm:$0xff] }
 0x11e   : > { %811 = vst.msk [vmem:[#allocation2 + $0x159] sm:$0xff] %vm277_vm2, %v743_v3  ;;  %v5844_v5 = vpack.i.bf16 %v1018_v63, %v1017_v62  ;;  %v930_v62 = vld [vmem:[#allocation2 + $0xf0] sm:$0xff] }
 0x123   : > { %v745_v9 = vpop.permute.xlu1 %744  ;;  %v717_v10 = vpop.permute.xlu2 %716 }
 0x124   : > { %812 = vst.msk [vmem:[#allocation2 + $0x169] sm:$0xff] %vm277_vm2, %v745_v9  ;;  %v691_v13 = vpop.permute.xlu0 %690  ;;  %v963_v9 = vld [vmem:[#allocation2 + $0xf9] sm:$0xff] }
 0x125   : > { %798 = vst.msk [vmem:[#allocation2 + $0xc1] sm:$0xff] %vm277_vm2, %v717_v10  ;;  %v7275_v10 = vld [vmem:[#allocation2 + $0xf2] sm:$0xff] }
 0x126   : > { %785 = vst.msk [vmem:[#allocation2 + $0x21] sm:$0xff] %vm277_vm2, %v691_v13 }
 0x12b   : > { %v699_v14 = vpop.permute.xlu2 %698  ;;  %v693_v16 = vpop.permute.xlu1 %692 }
 0x12c   : > { %789 = vst.msk [vmem:[#allocation2 + $0x51] sm:$0xff] %vm277_vm2, %v699_v14  ;;  %v713_v21 = vpop.permute.xlu0 %712 }
 0x12d   : > { %786 = vst.msk [vmem:[#allocation2 + $0x31] sm:$0xff] %vm277_vm2, %v693_v16  ;;  %v945_v22 = vld [vmem:[#allocation2 + $0x21] sm:$0xff] }
 0x12e   : > { %v882_v23 = vld [vmem:[#allocation2 + $0x1a] sm:$0xff]  ;;  %v883_v27 = vld [vmem:[#allocation2 + $0x22] sm:$0xff]  ;;  %v5824_v28 = vpack.i.bf16 %v945_v22, %v944_v17  ;;  %796 = vst.msk [vmem:[#allocation2 + $0xa9] sm:$0xff] %vm277_vm2, %v713_v21 }
 0x12f   : > { %v5804_v29 = vpack.i.bf16 %v883_v27, %v882_v23  ;;  %v913_v48 = vld [vmem:[#allocation2 + $0x20] sm:$0xff] }
 0x130   : > { %5825 = vrot.lane.b32.xlu2 %v5824_v28, %s6763_s15  ;;  %5795 = vrot.lane.b32.xlu0 %v5824_v28, %s6761_s21  ;;  %v5814_v55 = vpack.i.bf16 %v913_v48, %v7257_v54  ;;  %v7277_v17 = vld [vmem:[#allocation2 + $0xfa] sm:$0xff]  ;;  %v879_v48 = vld [vmem:[#allocation2 + $0x171] sm:$0xff] }
 0x131   : > { %5805 = vrot.lane.b32.xlu1 %v5804_v29, %s6760_s20 }
 0x133   : > { %v735_v39 = vpop.permute.xlu2 %734  ;;  %v695_v45 = vpop.permute.xlu1 %694  ;;  %v1075_v21 = vld [vmem:[#allocation2 + $0x4a] sm:$0xff]  ;;  %v1076_v22 = vld [vmem:[#allocation2 + $0x52] sm:$0xff] }
 0x134   : > { %807 = vst.msk [vmem:[#allocation2 + $0x129] sm:$0xff] %vm277_vm2, %v735_v39  ;;  %v731_v51 = vpop.permute.xlu0 %730  ;;  %v7280_v27 = vpack.i.bf16 %v1076_v22, %v1075_v21  ;;  %v5854_v39 = vpack.i.bf16 %v7277_v17, %v7275_v10 }
 0x135   : > { %787 = vst.msk [vmem:[#allocation2 + $0x39] sm:$0xff] %vm277_vm2, %v695_v45  ;;  %v878_v45 = vld [vmem:[#allocation2 + $0x169] sm:$0xff] }
 0x136   : > { %805 = vst.msk [vmem:[#allocation2 + $0x111] sm:$0xff] %vm277_vm2, %v731_v51 }
 0x138   : > { %5840 = vrot.lane.b32.xlu2 %v5839_v49, %s6764_s16  ;;  %5810 = vrot.lane.b32.xlu0 %v5839_v49, %s6760_s20 }
 0x139   : > { %5815 = vrot.lane.b32.xlu1 %v5814_v55, %s6765_s17  ;;  %v931_v55 = vld [vmem:[#allocation2 + $0xf8] sm:$0xff] }
 0x13a   : > { %v5859_v63 = vpack.i.bf16 %v931_v55, %v930_v62 }
 0x13b   : > { %v723_v56 = vpop.permute.xlu2 %722  ;;  %v715_v59 = vpop.permute.xlu1 %714  ;;  %v873_v60 = vld [vmem:[#allocation2 + $0x129] sm:$0xff] }
 0x13c   : > { %801 = vst.msk [vmem:[#allocation2 + $0xe1] sm:$0xff] %vm277_vm2, %v723_v56  ;;  %v7265_v3 = vld [vmem:[#allocation2 + $0x32] sm:$0xff]  ;;  %v749_v4 = vpop.permute.xlu0 %748  ;;  %v1074_v13 = vld [vmem:[#allocation2 + $0x3a] sm:$0xff]  ;;  %v5879_v56 = vpack.i.bf16 %v879_v48, %v878_v45  ;;  %v7434_v53 = vld [vmem:[#allocation2 + $0x12a] sm:$0xff] }
 0x13d   : > { %797 = vst.msk [vmem:[#allocation2 + $0xb1] sm:$0xff] %vm277_vm2, %v715_v59  ;;  %5645 = vmatmul.msk.f32.vlgmr.msrb.gmra.mxu2 %vm277_vm2, %v7265_v3  ;;  %v5919_v55 = vpack.i.bf16 %v1074_v13, %v7265_v3 }
 0x13e   : > { %814 = vst.msk [vmem:[#allocation2 + $0x181] sm:$0xff] %vm277_vm2, %v749_v4  ;;  %v1005_v4 = vld [vmem:[#allocation2 + $0x172] sm:$0xff] }
 0x140   : > { %5845 = vrot.lane.b32.xlu2 %v5844_v5, %s6766_s18  ;;  %5820 = vrot.lane.b32.xlu0 %v5844_v5, %s6765_s17 }
 0x141   : > { %5830 = vrot.lane.b32.xlu1 %v7227_v61, %s6763_s15  ;;  %v962_v61 = vld [vmem:[#allocation2 + $0xf1] sm:$0xff] }
 0x142   : > { %v5864_v28 = vpack.i.bf16 %v963_v9, %v962_v61  ;;  %v1035_v61 = vld [vmem:[#allocation2 + $0x168] sm:$0xff] }
 0x143   : > { %v705_v14 = vpop.permute.xlu2 %704  ;;  %v733_v16 = vpop.permute.xlu1 %732  ;;  %v1088_v24 = vld [vmem:[#allocation2 + $0xe2] sm:$0xff] }
 0x144   : > { %792 = vst.msk [vmem:[#allocation2 + $0x79] sm:$0xff] %vm277_vm2, %v705_v14  ;;  %v719_v23 = vpop.permute.xlu0 %718 }
 0x145   : > { %806 = vst.msk [vmem:[#allocation2 + $0x121] sm:$0xff] %vm277_vm2, %v733_v16  ;;  %5646 = vmatmul.msk.f32.gmra.mxu2 %vm277_vm2, %v1074_v13  ;;  %v852_v16 = vld [vmem:[#allocation2 + $0x31] sm:$0xff] }
 0x146   : > { %799 = vst.msk [vmem:[#allocation2 + $0xc9] sm:$0xff] %vm277_vm2, %v719_v23 }
 0x148   : > { %5865 = vrot.lane.b32.xlu2 %v5864_v28, %s6763_s15  ;;  %5835 = vrot.lane.b32.xlu0 %v5804_v29, %s6764_s16  ;;  %v1004_v29 = vld [vmem:[#allocation2 + $0x16a] sm:$0xff] }
 0x149   : > { %5855 = vrot.lane.b32.xlu1 %v5854_v39, %s6760_s20  ;;  %v5899_v9 = vpack.i.bf16 %v1005_v4, %v1004_v29  ;;  %v924_v4 = vld [vmem:[#allocation2 + $0xa8] sm:$0xff] }
 0x14b   : > { %v741_v49 = vpop.permute.xlu2 %740  ;;  %v751_v51 = vpop.permute.xlu1 %750 }
 0x14c   : > { %810 = vst.msk [vmem:[#allocation2 + $0x151] sm:$0xff] %vm277_vm2, %v741_v49  ;;  %v701_v59 = vpop.permute.xlu0 %700  ;;  %v894_v49 = vld [vmem:[#allocation2 + $0xaa] sm:$0xff]  ;;  %v872_v19 = vld [vmem:[#allocation2 + $0x121] sm:$0xff] }
 0x14d   : > { %815 = vst.msk [vmem:[#allocation2 + $0x189] sm:$0xff] %vm277_vm2, %v751_v51  ;;  %5647 = vmatmul.msk.f32.gmra.mxu2 %vm277_vm2, %v1075_v21  ;;  %v853_v21 = vld [vmem:[#allocation2 + $0x39] sm:$0xff]  ;;  %v904_v52 = vld [vmem:[#allocation2 + $0x122] sm:$0xff] }
 0x14e   : > { %790 = vst.msk [vmem:[#allocation2 + $0x61] sm:$0xff] %vm277_vm2, %v701_v59  ;;  %v5909_v45 = vpack.i.bf16 %v853_v21, %v852_v16  ;;  %v7320_v16 = vld [vmem:[#allocation2 + $0x38] sm:$0xff] }
 0x150   : > { %5880 = vrot.lane.b32.xlu2 %v5879_v56, %s6761_s21  ;;  %5850 = vrot.lane.b32.xlu0 %v5864_v28, %s6761_s21  ;;  %v1036_v28 = vld [vmem:[#allocation2 + $0x170] sm:$0xff] }
 0x151   : > { %5860 = vrot.lane.b32.xlu1 %v5859_v63, %s6765_s17 }
 0x153   : > { %v721_v5 = vpop.permute.xlu1 %720 }
 0x154   : > { %800 = vst.msk [vmem:[#allocation2 + $0xd9] sm:$0xff] %vm277_vm2, %v721_v5  ;;  %v737_v14 = vpop.permute.xlu0 %736  ;;  %v925_v5 = vld [vmem:[#allocation2 + $0xb0] sm:$0xff] }
 0x155   : > { %5648 = vmatmul.msk.f32.gmra.mxu2 %vm277_vm2, %v1076_v22  ;;  %808 = vst.msk [vmem:[#allocation2 + $0x139] sm:$0xff] %vm277_vm2, %v737_v14  ;;  %v5904_v22 = vpack.i.bf16 %v1036_v28, %v1035_v61  ;;  %v7318_v14 = vld [vmem:[#allocation2 + $0x30] sm:$0xff]  ;;  %v5934_v3 = vpack.i.bf16 %v925_v5, %v924_v4  ;;  %v7476_v20 = vld [vmem:[#allocation2 + $0x60] sm:$0xff] }
 0x156   : > { %v5929_v21 = vpack.i.bf16 %v7320_v16, %v7318_v14  ;;  %v957_v61 = vld [vmem:[#allocation2 + $0xb1] sm:$0xff]  ;;  %v870_v4 = vld [vmem:[#allocation2 + $0x109] sm:$0xff] }
 0x157   : > { %v871_v5 = vld [vmem:[#allocation2 + $0x111] sm:$0xff] }
 0x158   : > { %5900 = vrot.lane.b32.xlu2 %v5899_v9, %s6764_s16  ;;  %5870 = vrot.lane.b32.xlu0 %v5854_v39, %s6764_s16  ;;  %v7308_v39 = vld [vmem:[#allocation2 + $0xb2] sm:$0xff] }
 0x159   : > { %5895 = vrot.lane.b32.xlu1 %v5879_v56, %s6763_s15  ;;  %v5924_v56 = vpack.i.bf16 %v7308_v39, %v894_v49 }
 0x15b   : > { %v703_v23 = vpop.permute.xlu1 %702  ;;  %v1087_v41 = vld [vmem:[#allocation2 + $0xda] sm:$0xff] }
 0x15c   : > { %791 = vst.msk [vmem:[#allocation2 + $0x69] sm:$0xff] %vm277_vm2, %v703_v23  ;;  %v707_v48 = vpop.permute.xlu0 %706  ;;  %v956_v23 = vld [vmem:[#allocation2 + $0xa9] sm:$0xff]  ;;  %v6119_v37 = vpack.i.bf16 %v1088_v24, %v1087_v41  ;;  %v936_v58 = vld [vmem:[#allocation2 + $0x138] sm:$0xff] }
 0x15d   : > { %793 = vst.msk [vmem:[#allocation2 + $0x81] sm:$0xff] %vm277_vm2, %v707_v48  ;;  %v5944_v28 = vpack.i.bf16 %v957_v61, %v956_v23  ;;  %v7335_v48 = vld [vmem:[#allocation2 + $0x10a] sm:$0xff] }
 0x15e   : > { %v975_v23 = vld [vmem:[#allocation2 + $0x189] sm:$0xff] }
 0x160   : > { %5905 = vrot.lane.b32.xlu2 %v5904_v22, %s6766_s18  ;;  %5875 = vrot.lane.b32.xlu0 %v5859_v63, %s6766_s18 }
 0x161   : > { %5910 = vrot.lane.b32.xlu1 %v5909_v45, %s6761_s21 }
 0x163   : > { %v1077_v51 = vld [vmem:[#allocation2 + $0x62] sm:$0xff]  ;;  %v1078_v63 = vld [vmem:[#allocation2 + $0x6a] sm:$0xff] }
 0x164   : > { %5649 = vmatmul.msk.f32.gmra.mxu2 %vm277_vm2, %v1077_v51  ;;  %v1079_v59 = vld [vmem:[#allocation2 + $0x7a] sm:$0xff]  ;;  %v1080_v62 = vld [vmem:[#allocation2 + $0x82] sm:$0xff]  ;;  %v7323_v13 = vpack.i.bf16 %v1078_v63, %v1077_v51  ;;  %v7337_v51 = vld [vmem:[#allocation2 + $0x112] sm:$0xff] }
 0x165   : > { %v7313_v29 = vpack.i.bf16 %v1080_v62, %v1079_v59  ;;  %v857_v47 = vld [vmem:[#allocation2 + $0x69] sm:$0xff] }
 0x168   : > { %5920 = vrot.lane.b32.xlu2 %v5919_v55, %s6760_s20  ;;  %5885 = vrot.lane.b32.xlu0 %v5899_v9, %s6760_s20  ;;  %v739_v9 = vpop.permute.xlu1 %738 }
 0x169   : > { %5925 = vrot.lane.b32.xlu1 %v5924_v56, %s6760_s20  ;;  %809 = vst.msk [vmem:[#allocation2 + $0x141] sm:$0xff] %vm277_vm2, %v739_v9 }
 0x16c   : > { %5650 = vmatmul.msk.f32.gmra.mxu2 %vm277_vm2, %v1078_v63  ;;  %v933_v63 = vld [vmem:[#allocation2 + $0x110] sm:$0xff] }
 0x170   : > { %5930 = vrot.lane.b32.xlu2 %v5929_v21, %s6765_s17  ;;  %5890 = vrot.lane.b32.xlu0 %v5904_v22, %s6765_s17  ;;  %v5974_v22 = vpack.i.bf16 %v7337_v51, %v7335_v48  ;;  %v906_v38 = vld [vmem:[#allocation2 + $0x13a] sm:$0xff]  ;;  %v907_v0 = vld [vmem:[#allocation2 + $0x142] sm:$0xff] }
 0x171   : > { %5935 = vrot.lane.b32.xlu1 %v5934_v3, %s6765_s17  ;;  %v937_v6 = vld [vmem:[#allocation2 + $0x140] sm:$0xff] }
 0x174   : > { %5651 = vmatmul.msk.f32.gmra.mxu2 %vm277_vm2, %v1079_v59  ;;  %v7345_v59 = vpop.permute.xlu2 %5800 }
 0x178   : > { %5945 = vrot.lane.b32.xlu2 %v5944_v28, %s6763_s15  ;;  %5915 = vrot.lane.b32.xlu0 %v5944_v28, %s6761_s21  ;;  %v854_v28 = vld [vmem:[#allocation2 + $0x49] sm:$0xff] }
 0x179   : > { %5950 = vrot.lane.b32.xlu1 %v5919_v55, %s6764_s16  ;;  %v932_v55 = vld [vmem:[#allocation2 + $0x108] sm:$0xff] }
 0x17a   : > { %v5979_v9 = vpack.i.bf16 %v933_v63, %v932_v55  ;;  %v855_v55 = vld [vmem:[#allocation2 + $0x51] sm:$0xff]  ;;  %v942_v63 = vld [vmem:[#allocation2 + $0x180] sm:$0xff] }
 0x17c   : > { %5652 = vmatmul.msk.f32.gmra.mxu2 %vm277_vm2, %v1080_v62  ;;  %v5969_v62 = vpack.i.bf16 %v871_v5, %v870_v4  ;;  %v897_v4 = vld [vmem:[#allocation2 + $0xca] sm:$0xff]  ;;  %v7372_v5 = vld [vmem:[#allocation2 + $0x182] sm:$0xff] }
 0x180   : > { %5975 = vrot.lane.b32.xlu2 %v5974_v22, %s6760_s20  ;;  %5940 = vrot.lane.b32.xlu0 %v5909_v45, %s6763_s15  ;;  %v974_v45 = vld [vmem:[#allocation2 + $0x181] sm:$0xff] }
 0x181   : > { %5960 = vrot.lane.b32.xlu1 %v5929_v21, %s6766_s18  ;;  %v6004_v61 = vpack.i.bf16 %v975_v23, %v974_v45 }
 0x184   : > { %5653 = vmatmul.msk.f32.gmra.mxu2 %vm277_vm2, %v7249_v34 }
 0x188   : > { %5980 = vrot.lane.b32.xlu2 %v5979_v9, %s6765_s17  ;;  %5955 = vrot.lane.b32.xlu0 %v5924_v56, %s6764_s16  ;;  %v7362_v56 = vpack.i.bf16 %v855_v55, %v854_v28  ;;  %v927_v55 = vld [vmem:[#allocation2 + $0xc8] sm:$0xff] }
 0x189   : > { %5970 = vrot.lane.b32.xlu1 %v5969_v62, %s6761_s21 }
 0x18a   : > { %v7352_v21 = vpop.permute.xlu2 %5825 }
 0x18c   : > { %5654 = vmatmul.msk.f32.gmra.mxu2 %vm277_vm2, %v7251_v35 }
 0x190   : > { %6005 = vrot.lane.b32.xlu2 %v6004_v61, %s6763_s15  ;;  %5965 = vrot.lane.b32.xlu0 %v5934_v3, %s6766_s18  ;;  %v943_v3 = vld [vmem:[#allocation2 + $0x188] sm:$0xff]  ;;  %v926_v61 = vld [vmem:[#allocation2 + $0xc0] sm:$0xff] }
 0x191   : > { %5990 = vrot.lane.b32.xlu1 %v5974_v22, %s6764_s16  ;;  %v896_v22 = vld [vmem:[#allocation2 + $0xc2] sm:$0xff]  ;;  %v7376_v45 = vpack.i.bf16 %v943_v3, %v942_v63  ;;  %v6039_v33 = vpack.i.bf16 %v927_v55, %v926_v61  ;;  %v7407_v61 = vld [vmem:[#allocation2 + $0x50] sm:$0xff] }
 0x192   : > { %v7359_v34 = vpop.permute.xlu2 %5840  ;;  %v864_v63 = vld [vmem:[#allocation2 + $0xc1] sm:$0xff]  ;;  %v865_v3 = vld [vmem:[#allocation2 + $0xc9] sm:$0xff] }
 0x193   : > { %v7391_v25 = vpack.i.bf16 %v865_v3, %v864_v63 }
 0x194   : > { %5655 = vmatmul.msk.f32.gmra.mxu2 %vm277_vm2, %v894_v49  ;;  %v7374_v49 = vld [vmem:[#allocation2 + $0x18a] sm:$0xff] }
 0x195   : > { %v6009_v23 = vpack.i.bf16 %v7374_v49, %v7372_v5 }
 0x198   : > { %6015 = vrot.lane.b32.xlu2 %v7362_v56, %s6761_s21  ;;  %5985 = vrot.lane.b32.xlu0 %v5969_v62, %s6763_s15 }
 0x199   : > { %5995 = vrot.lane.b32.xlu1 %v5979_v9, %s6766_s18  ;;  %v6029_v9 = vpack.i.bf16 %v897_v4, %v896_v22 }
 0x19a   : > { %v7368_v35 = vpop.permute.xlu2 %5845 }
 0x19c   : > { %5656 = vmatmul.msk.f32.gmra.mxu2 %vm277_vm2, %v7308_v39 }
 0x1a0   : > { %6030 = vrot.lane.b32.xlu2 %v6029_v9, %s6760_s20  ;;  %6010 = vrot.lane.b32.xlu0 %v6009_v23, %s6764_s16 }
 0x1a1   : > { %6000 = vrot.lane.b32.xlu1 %v7376_v45, %s6765_s17 }
 0x1a2   : > { %v7384_v62 = vpop.permute.xlu2 %5865  ;;  %v7388_v28 = vpop.permute.xlu0 %5795 }
 0x1a3   : > { %10419 = vst [vmem:[#allocation40_spill] sm:$0xff] %v7384_v62  ;;  %v7386_v39 = vpop.permute.xlu1 %5805 }
 0x1a4   : > { %5657 = vmatmul.msk.f32.gmra.mxu2 %vm277_vm2, %v896_v22  ;;  %v7405_v22 = vld [vmem:[#allocation2 + $0x48] sm:$0xff] }
 0x1a5   : > { %v6034_v55 = vpack.i.bf16 %v7407_v61, %v7405_v22 }
 0x1a8   : > { %6040 = vrot.lane.b32.xlu2 %v6039_v33, %s6765_s17  ;;  %6025 = vrot.lane.b32.xlu0 %v7280_v27, %s6760_s20 }
 0x1a9   : > { %6020 = vrot.lane.b32.xlu1 %v7391_v25, %s6761_s21 }
 0x1aa   : > { %v7398_v23 = vpop.permute.xlu2 %5880  ;;  %v7402_v57 = vpop.permute.xlu0 %5810 }
 0x1ab   : > { %10420 = vst [vmem:[#allocation41_spill] sm:$0xff] %v7398_v23  ;;  %v7400_v1 = vpop.permute.xlu1 %5815  ;;  %v876_v23 = vld [vmem:[#allocation2 + $0x151] sm:$0xff] }
 0x1ac   : > { %5658 = vmatmul.msk.f32.gmra.mxu2 %vm277_vm2, %v897_v4 }
 0x1b0   : > { %6055 = vrot.lane.b32.xlu2 %v7280_v27, %s6764_s16  ;;  %6035 = vrot.lane.b32.xlu0 %v6034_v55, %s6765_s17 }
 0x1b1   : > { %6045 = vrot.lane.b32.xlu1 %v7362_v56, %s6763_s15 }
 0x1b2   : > { %v7416_v63 = vpop.permute.xlu2 %5900  ;;  %v7420_v4 = vpop.permute.xlu0 %5820 }
 0x1b3   : > { %10421 = vst [vmem:[#allocation42_spill] sm:$0xff] %v7416_v63  ;;  %v7418_v3 = vpop.permute.xlu1 %5830  ;;  %v877_v63 = vld [vmem:[#allocation2 + $0x159] sm:$0xff] }
 0x1b4   : > { %5659 = vmatmul.msk.f32.gmra.mxu2 %vm277_vm2, %v1087_v41 }
 0x1b8   : > { %6065 = vrot.lane.b32.xlu2 %v6034_v55, %s6766_s18  ;;  %6050 = vrot.lane.b32.xlu0 %v7391_v25, %s6763_s15  ;;  %v7436_v55 = vpack.i.bf16 %v873_v60, %v872_v19  ;;  %v934_v60 = vld [vmem:[#allocation2 + $0x120] sm:$0xff]  ;;  %v935_v19 = vld [vmem:[#allocation2 + $0x128] sm:$0xff] }
 0x1b9   : > { %6060 = vrot.lane.b32.xlu1 %v6029_v9, %s6764_s16  ;;  %v6079_v9 = vpack.i.bf16 %v7434_v53, %v904_v52  ;;  %v6084_v8 = vpack.i.bf16 %v935_v19, %v934_v60  ;;  %v866_v19 = vld [vmem:[#allocation2 + $0xd9] sm:$0xff] }
 0x1ba   : > { %v7427_v27 = vpop.permute.xlu2 %5905  ;;  %v7431_v42 = vpop.permute.xlu0 %5835 }
 0x1bb   : > { %10422 = vst [vmem:[#allocation43_spill] sm:$0xff] %v7427_v27  ;;  %v7429_v15 = vpop.permute.xlu1 %5855 }
 0x1bc   : > { %10423 = vst [vmem:[#allocation44_spill] sm:$0xff] %v7429_v15  ;;  %5660 = vmatmul.msk.f32.gmra.mxu2 %vm277_vm2, %v1088_v24  ;;  %v858_v15 = vld [vmem:[#allocation2 + $0x79] sm:$0xff] }
 0x1c0   : > { %6075 = vrot.lane.b32.xlu2 %v7436_v55, %s6761_s21  ;;  %6080 = vrot.lane.b32.xlu0 %v6079_v9, %s6760_s20 }
 0x1c1   : > { %6070 = vrot.lane.b32.xlu1 %v6039_v33, %s6766_s18 }
 0x1c2   : > { %v7443_v32 = vpop.permute.xlu2 %5920  ;;  %v7447_v31 = vpop.permute.xlu0 %5850 }
 0x1c3   : > { %v7445_v30 = vpop.permute.xlu1 %5860  ;;  %10425 = vst [vmem:[#allocation46_spill] sm:$0xff] %v7447_v31 }
 0x1c4   : > { %10424 = vst [vmem:[#allocation45_spill] sm:$0xff] %v7445_v30  ;;  %5661 = vmatmul.msk.f32.gmra.mxu2 %vm277_vm2, %v7275_v10  ;;  %v856_v10 = vld [vmem:[#allocation2 + $0x61] sm:$0xff] }
 0x1c5   : > { %v7463_v44 = vpack.i.bf16 %v857_v47, %v856_v10  ;;  %v7478_v47 = vld [vmem:[#allocation2 + $0x68] sm:$0xff] }
 0x1c6   : > { %v6124_v10 = vpack.i.bf16 %v7478_v47, %v7476_v20 }
 0x1c8   : > { %6095 = vrot.lane.b32.xlu2 %v6079_v9, %s6764_s16  ;;  %6085 = vrot.lane.b32.xlu0 %v6084_v8, %s6765_s17 }
 0x1c9   : > { %6090 = vrot.lane.b32.xlu1 %v7436_v55, %s6763_s15 }
 0x1ca   : > { %v7455_v33 = vpop.permute.xlu2 %5930  ;;  %v7459_v11 = vpop.permute.xlu0 %5870 }
 0x1cb   : > { %v7457_v12 = vpop.permute.xlu1 %5895  ;;  %10427 = vst [vmem:[#allocation48_spill] sm:$0xff] %v7459_v11  ;;  %v1042_v11 = vld [vmem:[#allocation2 + $0x39] sm:$0xff] }
 0x1cc   : > { %10426 = vst [vmem:[#allocation47_spill] sm:$0xff] %v7457_v12  ;;  %5662 = vmatmul.msk.f32.gmra.mxu2 %vm277_vm2, %v7277_v17  ;;  %v867_v17 = vld [vmem:[#allocation2 + $0xe1] sm:$0xff] }
 0x1d0   : > { %6100 = vrot.lane.b32.xlu2 %v6084_v8, %s6766_s18  ;;  %6105 = vrot.lane.b32.xlu0 %v7463_v44, %s6761_s21  ;;  %v7482_v8 = vpack.i.bf16 %v867_v17, %v866_v19  ;;  %v929_v19 = vld [vmem:[#allocation2 + $0xe0] sm:$0xff] }
 0x1d1   : > { %6115 = vrot.lane.b32.xlu1 %v7323_v13, %s6760_s20 }
 0x1d2   : > { %v7472_v60 = vpop.permute.xlu2 %5945  ;;  %v7474_v50 = vpop.permute.xlu0 %5875 }
 0x1d3   : > { %v7470_v9 = vpop.permute.xlu1 %5910  ;;  %10428 = vst [vmem:[#allocation49_spill] sm:$0xff] %v7474_v50 }
 0x1d4   : > { %5663 = vmatmul.msk.f32.gmra.mxu2 %vm277_vm2, %v7335_v48  ;;  %v928_v48 = vld [vmem:[#allocation2 + $0xd8] sm:$0xff] }
 0x1d5   : > { %v6129_v17 = vpack.i.bf16 %v929_v19, %v928_v48 }
 0x1d8   : > { %6110 = vrot.lane.b32.xlu2 %v7482_v8, %s6761_s21  ;;  %6120 = vrot.lane.b32.xlu0 %v6119_v37, %s6760_s20 }
 0x1d9   : > { %6125 = vrot.lane.b32.xlu1 %v6124_v10, %s6765_s17 }
 0x1da   : > { %v7492_v2 = vpop.permute.xlu2 %5975  ;;  %v7494_v7 = vpop.permute.xlu0 %5885 }
 0x1db   : > { %v7490_v36 = vpop.permute.xlu1 %5925  ;;  %10430 = vst [vmem:[#allocation51_spill] sm:$0xff] %v7492_v2  ;;  %v938_v2 = vld [vmem:[#allocation2 + $0x150] sm:$0xff] }
 0x1dc   : > { %10429 = vst [vmem:[#allocation50_spill] sm:$0xff] %v7490_v36  ;;  %5664 = vmatmul.msk.f32.gmra.mxu2 %vm277_vm2, %v7337_v51  ;;  %v6169_v51 = vpack.i.bf16 %v907_v0, %v906_v38 }
 0x1dd   : > { %10431 = vst [vmem:[#allocation52_spill] sm:$0xff] %v7494_v7  ;;  %v969_v7 = vld [vmem:[#allocation2 + $0x141] sm:$0xff] }
 0x1e0   : > { %6135 = vrot.lane.b32.xlu2 %v7463_v44, %s6763_s15  ;;  %6130 = vrot.lane.b32.xlu0 %v6129_v17, %s6765_s17 }
 0x1e1   : > { %6140 = vrot.lane.b32.xlu1 %v7482_v8, %s6763_s15 }
 0x1e2   : > { %v7505_v41 = vpop.permute.xlu2 %5980  ;;  %v7507_v18 = vpop.permute.xlu0 %5890 }
 0x1e3   : > { %v7503_v24 = vpop.permute.xlu1 %5935  ;;  %10432 = vst [vmem:[#allocation53_spill] sm:$0xff] %v7505_v41  ;;  %v859_v41 = vld [vmem:[#allocation2 + $0x81] sm:$0xff] }
 0x1e4   : > { %10433 = vst [vmem:[#allocation54_spill] sm:$0xff] %v7507_v18  ;;  %5665 = vmatmul.msk.f32.gmra.mxu2 %vm277_vm2, %v904_v52  ;;  %v6174_v52 = vpack.i.bf16 %v937_v6, %v936_v58  ;;  %v7534_v58 = vpack.i.bf16 %v877_v63, %v876_v23  ;;  %v7540_v6 = vpop.f32.mrf.mxu2  ;;  %v909_v23 = vld [vmem:[#allocation2 + $0x15a] sm:$0xff] }
 0x1e5   : > { %10435 = vst [vmem:[#allocation56_spill] sm:$0xff] %v7540_v6 }
 0x1e8   : > { %6150 = vrot.lane.b32.xlu2 %v6119_v37, %s6764_s16  ;;  %6145 = vrot.lane.b32.xlu0 %v7323_v13, %s6764_s16 }
 0x1e9   : > { %6170 = vrot.lane.b32.xlu1 %v6169_v51, %s6760_s20 }
 0x1ea   : > { %v7516_v19 = vpop.permute.xlu2 %6005  ;;  %v7518_v26 = vpop.permute.xlu0 %5915 }
 0x1eb   : > { %v7514_v48 = vpop.permute.xlu1 %5950  ;;  %10434 = vst [vmem:[#allocation55_spill] sm:$0xff] %v7516_v19  ;;  %v968_v19 = vld [vmem:[#allocation2 + $0x139] sm:$0xff] }
 0x1ec   : > { %5666 = vmatmul.msk.f32.gmra.mxu2 %vm277_vm2, %v7434_v53  ;;  %v7532_v53 = vpack.i.bf16 %v969_v7, %v968_v19  ;;  %v908_v7 = vld [vmem:[#allocation2 + $0x152] sm:$0xff]  ;;  %v7558_v18 = vpop.f32.mrf.mxu2 }
 0x1ed   : > { %v6199_v63 = vpack.i.bf16 %v909_v23, %v908_v7  ;;  %10440 = vst [vmem:[#allocation61_spill] sm:$0xff] %v7558_v18 }
 0x1f0   : > { %6160 = vrot.lane.b32.xlu2 %v6129_v17, %s6766_s18  ;;  %6155 = vrot.lane.b32.xlu0 %v6124_v10, %s6766_s18 }
 0x1f1   : > { %6175 = vrot.lane.b32.xlu1 %v6174_v52, %s6765_s17 }
 0x1f2   : > { %v7527_v13 = vpop.permute.xlu2 %6015  ;;  %v7529_v43 = vpop.permute.xlu0 %5940 }
 0x1f3   : > { %v7525_v37 = vpop.permute.xlu1 %5960 }
 0x1f4   : > { %5667 = vmatmul.msk.f32.gmra.mxu2 %vm277_vm2, %v906_v38  ;;  %v7573_v31 = vpop.f32.mrf.mxu2 }
 0x1f5   : > { %10443 = vst [vmem:[#allocation64_spill] sm:$0xff] %v7573_v31 }
 0x1f8   : > { %6180 = vrot.lane.b32.xlu2 %v7532_v53, %s6763_s15  ;;  %6165 = vrot.lane.b32.xlu0 %v7532_v53, %s6761_s21 }
 0x1f9   : > { %6195 = vrot.lane.b32.xlu1 %v7534_v58, %s6761_s21 }
 0x1fa   : > { %v7546_v17 = vpop.permute.xlu2 %6030  ;;  %v7548_v38 = vpop.permute.xlu0 %5955 }
 0x1fb   : > { %v7544_v10 = vpop.permute.xlu1 %5970  ;;  %10437 = vst [vmem:[#allocation58_spill] sm:$0xff] %v7546_v17 }
 0x1fc   : > { %10436 = vst [vmem:[#allocation57_spill] sm:$0xff] %v7544_v10  ;;  %5668 = vmatmul.msk.f32.gmra.mxu2 %vm277_vm2, %v907_v0  ;;  %v939_v10 = vld [vmem:[#allocation2 + $0x158] sm:$0xff] }
 0x1fd   : > { %v6204_v0 = vpack.i.bf16 %v939_v10, %v938_v2 }
 0x200   : > { %6200 = vrot.lane.b32.xlu2 %v6199_v63, %s6760_s20  ;;  %6185 = vrot.lane.b32.xlu0 %v6169_v51, %s6764_s16 }
 0x201   : > { %6215 = vrot.lane.b32.xlu1 %v6199_v63, %s6764_s16 }
 0x202   : > { %v7556_v12 = vpop.permute.xlu2 %6040  ;;  %v7560_v27 = vpop.permute.xlu0 %5965 }
 0x203   : > { %v7554_v19 = vpop.permute.xlu1 %5990  ;;  %10439 = vst [vmem:[#allocation60_spill] sm:$0xff] %v7556_v12 }
 0x204   : > { %10438 = vst [vmem:[#allocation59_spill] sm:$0xff] %v7554_v19  ;;  %5669 = vmatmul.msk.f32.gmra.mxu2 %vm277_vm2, %v908_v7  ;;  %v6224_v7 = vpack.i.bf16 %v859_v41, %v858_v15  ;;  %v7593_v41 = vpop.f32.mrf.mxu2 }
 0x205   : > { %10446 = vst [vmem:[#allocation67_spill] sm:$0xff] %v7593_v41  ;;  %v1040_v41 = vld [vmem:[#allocation2 + $0x1a0] sm:$0xff] }
 0x208   : > { %6205 = vrot.lane.b32.xlu2 %v6204_v0, %s6765_s17  ;;  %6190 = vrot.lane.b32.xlu0 %v6174_v52, %s6766_s18 }
 0x209   : > { %6220 = vrot.lane.b32.xlu1 %v6204_v0, %s6766_s18  ;;  %v1099_v0 = vld [vmem:[#allocation2 + $0x16a] sm:$0xff] }
 0x20a   : > { %v7568_v63 = vpop.permute.xlu2 %6055  ;;  %v7570_v19 = vpop.permute.xlu0 %5985 }
 0x20b   : > { %v7566_v51 = vpop.permute.xlu1 %5995  ;;  %10442 = vst [vmem:[#allocation63_spill] sm:$0xff] %v7570_v19  ;;  %v7586_v19 = vld [vmem:[#allocation2 + $0x78] sm:$0xff] }
 0x20c   : > { %10441 = vst [vmem:[#allocation62_spill] sm:$0xff] %v7566_v51  ;;  %5670 = vmatmul.msk.f32.gmra.mxu2 %vm277_vm2, %v909_v23  ;;  %v7588_v23 = vld [vmem:[#allocation2 + $0x80] sm:$0xff]  ;;  %v1100_v51 = vld [vmem:[#allocation2 + $0x172] sm:$0xff] }
 0x20d   : > { %v6234_v15 = vpack.i.bf16 %v7588_v23, %v7586_v19 }
 0x210   : > { %6230 = vrot.lane.b32.xlu2 %v7313_v29, %s6760_s20  ;;  %6210 = vrot.lane.b32.xlu0 %v7534_v58, %s6763_s15 }
 0x211   : > { %6225 = vrot.lane.b32.xlu1 %v6224_v7, %s6761_s21 }
 0x212   : > { %v7582_v52 = vpop.permute.xlu2 %6065  ;;  %v7584_v10 = vpop.permute.xlu0 %6010 }
 0x213   : > { %v7580_v2 = vpop.permute.xlu1 %6000  ;;  %10445 = vst [vmem:[#allocation66_spill] sm:$0xff] %v7584_v10 }
 0x214   : > { %10444 = vst [vmem:[#allocation65_spill] sm:$0xff] %v7580_v2  ;;  %5671 = vmatmul.msk.f32.gmra.mxu2 %vm277_vm2, %v1099_v0  ;;  %v1041_v0 = vld [vmem:[#allocation2 + $0x31] sm:$0xff] }
 0x215   : > { %v6264_v62 = vpack.i.bf16 %v1042_v11, %v1041_v0 }
 0x218   : > { %6235 = vrot.lane.b32.xlu2 %v6234_v15, %s6765_s17  ;;  %6240 = vrot.lane.b32.xlu0 %v6224_v7, %s6763_s15 }
 0x219   : > { %6250 = vrot.lane.b32.xlu1 %v7313_v29, %s6764_s16  ;;  %v7608_v29 = vpop.f32.mrf.mxu2  ;;  %s6771_s16 = smov 40  }
 0x21a   : > { %v7599_v10 = vpop.permute.xlu2 %6075  ;;  %v7603_v31 = vpop.permute.xlu0 %6025  ;;  %10449 = vst [vmem:[#allocation70_spill] sm:$0xff] %v7608_v29  ;;  %v2244_v29 = vld [vmem:[%s10291_s3 + $0x68] sm:$0xff] }
 0x21b   : > { %10447 = vst [vmem:[#allocation68_spill] sm:$0xff] %v7599_v10  ;;  %v7601_v2 = vpop.permute.xlu1 %6020  ;;  %v1039_v10 = vld [vmem:[#allocation2 + $0x198] sm:$0xff] }
 0x21c   : > { %10448 = vst [vmem:[#allocation69_spill] sm:$0xff] %v7601_v2  ;;  %5672 = vmatmul.msk.f32.gmra.mxu2 %vm277_vm2, %v1100_v51  ;;  %v6259_v11 = vpack.i.bf16 %v1040_v41, %v1039_v10  ;;  %v1050_v10 = vld [vmem:[#allocation2 + $0x99] sm:$0xff]  ;;  %v5837_v2 = vunpack.i.l.bf16 %v7431_v42 }
 0x220   : > { %6265 = vrot.lane.b32.xlu2 %v6264_v62, %s6767_s19  ;;  %6245 = vrot.lane.b32.xlu0 %v7376_v45, %s6766_s18 }
 0x221   : > { %6255 = vrot.lane.b32.xlu1 %v6234_v15, %s6766_s18  ;;  %v7630_v15 = vpop.f32.mrf.mxu2 }
 0x222   : > { %v7612_v30 = vpop.permute.xlu2 %6095  ;;  %v7616_v18 = vpop.permute.xlu0 %6035  ;;  %10454 = vst [vmem:[#allocation75_spill] sm:$0xff] %v7630_v15 }
 0x223   : > { %10450 = vst [vmem:[#allocation71_spill] sm:$0xff] %v7612_v30  ;;  %v7614_v50 = vpop.permute.xlu1 %6045  ;;  %v1051_v30 = vld [vmem:[#allocation2 + $0xa9] sm:$0xff] }
 0x224   : > { %5673 = vmatmul.msk.f32.gmra.mxu2 %vm277_vm2, %v7372_v5  ;;  %v1049_v5 = vld [vmem:[#allocation2 + $0x91] sm:$0xff] }
 0x225   : > { %v6284_v41 = vpack.i.bf16 %v1050_v10, %v1049_v5  ;;  %v1060_v10 = vld [vmem:[#allocation2 + $0x111] sm:$0xff] }
 0x228   : > { %6280 = vrot.lane.b32.xlu2 %v6224_v7, %s6767_s19  ;;  %6270 = vrot.lane.b32.xlu0 %v7362_v56, %s6767_s19  ;;  %v2246_v7 = vld [vmem:[%s10291_s3 + $0x78] sm:$0xff]  ;;  %v2245_v56 = vld [vmem:[%s10291_s3 + $0x70] sm:$0xff] }
 0x229   : > { %6260 = vrot.lane.b32.xlu1 %v6259_v11, %s6766_s18  ;;  %2349 = vmatpush.msrb.mxu1 %v2246_v7  ;;  %v1059_v11 = vld [vmem:[#allocation2 + $0x109] sm:$0xff] }
 0x22a   : > { %v7624_v45 = vpop.permute.xlu2 %6100  ;;  %v7628_v51 = vpop.permute.xlu0 %6050  ;;  %v6309_v15 = vpack.i.bf16 %v1060_v10, %v1059_v11  ;;  %v1058_v11 = vld [vmem:[#allocation2 + $0xf9] sm:$0xff]  ;;  %v1057_v10 = vld [vmem:[#allocation2 + $0xf1] sm:$0xff] }
 0x22b   : > { %10451 = vst [vmem:[#allocation72_spill] sm:$0xff] %v7624_v45  ;;  %v7626_v62 = vpop.permute.xlu1 %6060  ;;  %2350 = vmatpush.msrb.mxu1 %v2245_v56  ;;  %v2232_v45 = vld [vmem:[%s10291_s3 + $0x8] sm:$0xff] }
 0x22c   : > { %10452 = vst [vmem:[#allocation73_spill] sm:$0xff] %v7626_v62  ;;  %5674 = vmatmul.msk.f32.gmra.mxu2 %vm277_vm2, %v7374_v49 }
 0x22d   : > { %10453 = vst [vmem:[#allocation74_spill] sm:$0xff] %v7628_v51  ;;  %2351 = vmatpush.msrb.mxu1 %v2244_v29  ;;  %v2242_v29 = vld [vmem:[%s10291_s3 + $0x58] sm:$0xff] }
 0x230   : > { %6295 = vrot.lane.b32.xlu2 %v7391_v25, %s6767_s19  ;;  %6285 = vrot.lane.b32.xlu0 %v6284_v41, %s6767_s19  ;;  %v1052_v25 = vld [vmem:[#allocation2 + $0xb1] sm:$0xff]  ;;  %v2243_v41 = vld [vmem:[%s10291_s3 + $0x60] sm:$0xff] }
 0x231   : > { %6275 = vrot.lane.b32.xlu1 %v7463_v44, %s6767_s19  ;;  %v6289_v44 = vpack.i.bf16 %v1052_v25, %v1051_v30  ;;  %2352 = vmatpush.msrb.mxu1 %v2243_v41  ;;  %v2241_v25 = vld [vmem:[%s10291_s3 + $0x50] sm:$0xff] }
 0x232   : > { %v7645_v49 = vpop.permute.xlu2 %6110  ;;  %v7649_v5 = vpop.permute.xlu0 %6080 }
 0x233   : > { %10455 = vst [vmem:[#allocation76_spill] sm:$0xff] %v7645_v49  ;;  %v7647_v0 = vpop.permute.xlu1 %6070  ;;  %2353 = vmatpush.msrb.mxu1 %v2242_v29  ;;  %v1067_v29 = vld [vmem:[#allocation2 + $0x169] sm:$0xff] }
 0x234   : > { %10456 = vst [vmem:[#allocation77_spill] sm:$0xff] %v7649_v5 }
 0x235   : > { %2354 = vmatpush.msrb.mxu1 %v2241_v25 }
 0x238   : > { %6310 = vrot.lane.b32.xlu2 %v6309_v15, %s6767_s19  ;;  %6300 = vrot.lane.b32.xlu0 %v7482_v8, %s6767_s19  ;;  %v6304_v15 = vpack.i.bf16 %v1058_v11, %v1057_v10  ;;  %v1071_v8 = vld [vmem:[#allocation2 + $0x199] sm:$0xff]  ;;  %v1068_v10 = vld [vmem:[#allocation2 + $0x171] sm:$0xff] }
 0x239   : > { %6290 = vrot.lane.b32.xlu1 %v6289_v44, %s6767_s19  ;;  %v1072_v44 = vld [vmem:[#allocation2 + $0x1a1] sm:$0xff] }
 0x23a   : > { %v7663_v30 = vpop.permute.xlu2 %6135  ;;  %v7665_v56 = vpop.permute.xlu0 %6085 }
 0x23b   : > { %v7661_v7 = vpop.permute.xlu1 %6090  ;;  %10458 = vst [vmem:[#allocation79_spill] sm:$0xff] %v7665_v56  ;;  %v2238_v56 = vld [vmem:[%s10291_s3 + $0x38] sm:$0xff] }
 0x23c   : > { %10457 = vst [vmem:[#allocation78_spill] sm:$0xff] %v7661_v7  ;;  %v6339_v7 = vpack.i.bf16 %v1072_v44, %v1071_v8 }
 0x240   : > { %6325 = vrot.lane.b32.xlu2 %v7534_v58, %s6767_s19  ;;  %6315 = vrot.lane.b32.xlu0 %v7436_v55, %s6767_s19  ;;  %v2240_v58 = vld [vmem:[%s10291_s3 + $0x48] sm:$0xff]  ;;  %v2239_v55 = vld [vmem:[%s10291_s3 + $0x40] sm:$0xff] }
 0x241   : > { %6305 = vrot.lane.b32.xlu1 %v6304_v15, %s6767_s19  ;;  %2355 = vmatpush.msrb.mxu1 %v2240_v58  ;;  %v6329_v15 = vpack.i.bf16 %v1068_v10, %v1067_v29  ;;  %v1069_v58 = vld [vmem:[#allocation2 + $0x181] sm:$0xff]  ;;  %v1070_v29 = vld [vmem:[#allocation2 + $0x189] sm:$0xff] }
 0x242   : > { %v7678_v41 = vpop.permute.xlu2 %6150  ;;  %v7682_v11 = vpop.permute.xlu0 %6105  ;;  %v6334_v10 = vpack.i.bf16 %v1070_v29, %v1069_v58  ;;  %v2236_v58 = vld [vmem:[%s10291_s3 + $0x28] sm:$0xff]  ;;  %v2235_v29 = vld [vmem:[%s10291_s3 + $0x20] sm:$0xff] }
 0x243   : > { %10459 = vst [vmem:[#allocation80_spill] sm:$0xff] %v7678_v41  ;;  %v7680_v5 = vpop.permute.xlu1 %6115  ;;  %2356 = vmatpush.msrb.mxu1 %v2239_v55  ;;  %v5787_v41 = vunpack.i.l.bf16 %v7161_v40 }
 0x245   : > { %2357 = vmatpush.msrb.mxu1 %v2238_v56  ;;  %v2234_v56 = vld [vmem:[%s10291_s3 + $0x18] sm:$0xff] }
 0x248   : > { %6340 = vrot.lane.b32.xlu2 %v6339_v7, %s6767_s19  ;;  %6330 = vrot.lane.b32.xlu0 %v6329_v15, %s6767_s19 }
 0x249   : > { %6320 = vrot.lane.b32.xlu1 %v7532_v53, %s6767_s19  ;;  %v2237_v53 = vld [vmem:[%s10291_s3 + $0x30] sm:$0xff] }
 0x24a   : > { %v7694_v25 = vpop.permute.xlu2 %6160  ;;  %v7698_v44 = vpop.permute.xlu0 %6120  ;;  %2358 = vmatpush.msrb.mxu1 %v2237_v53 }
 0x24b   : > { %10460 = vst [vmem:[#allocation81_spill] sm:$0xff] %v7694_v25  ;;  %v7696_v8 = vpop.permute.xlu1 %6125  ;;  %v5827_v25 = vunpack.i.l.bf16 %v7352_v21 }
 0x24c   : > { %10461 = vst [vmem:[#allocation82_spill] sm:$0xff] %v7698_v44  ;;  %2359 = vmatpush.msrb.mxu1 %v2236_v58 }
 0x24e   : > { %2360 = vmatpush.msrb.mxu1 %v2235_v29  ;;  %v2231_v29 = vld [vmem:[%s10291_s3] sm:$0xff] }
 0x250   : > { %2361 = vmatpush.msrb.mxu1 %v2234_v56 }
 0x251   : > { %6335 = vrot.lane.b32.xlu1 %v6334_v10, %s6767_s19  ;;  %v2233_v10 = vld [vmem:[%s10291_s3 + $0x10] sm:$0xff]  ;;  %s6770_s19 = smov 120  }
 0x252   : > { %v7709_v15 = vpop.permute.xlu2 %6180  ;;  %v7711_v55 = vpop.permute.xlu0 %6130  ;;  %2362 = vmatpush.msrb.mxu1 %v2233_v10 }
 0x253   : > { %v7707_v7 = vpop.permute.xlu1 %6140  ;;  %10463 = vst [vmem:[#allocation84_spill] sm:$0xff] %v7709_v15 }
 0x254   : > { %10462 = vst [vmem:[#allocation83_spill] sm:$0xff] %v7707_v7  ;;  %2363 = vmatpush.msrb.mxu1 %v2232_v45  ;;  %v816_v45 = vld [vmem:[#allocation2] sm:$0xff]  ;;  %v5792_v7 = vunpack.i.l.bf16 %v7194_v46 }
 0x255   : > { %10464 = vst [vmem:[#allocation85_spill] sm:$0xff] %v7711_v55 }
 0x256   : > { %2364 = vmatpush.msrb.mxu1 %v2231_v29 }
 0x25a   : > { %v7725_v53 = vpop.permute.xlu2 %6200  ;;  %v7729_v58 = vpop.permute.xlu0 %6145 }
 0x25b   : > { %10465 = vst [vmem:[#allocation86_spill] sm:$0xff] %v7725_v53  ;;  %v7727_v15 = vpop.permute.xlu1 %6170 }
 0x25c   : > { %10466 = vst [vmem:[#allocation87_spill] sm:$0xff] %v7727_v15 }
 0x262   : > { %v7737_v44 = vpop.permute.xlu2 %6205  ;;  %v7741_v53 = vpop.permute.xlu0 %6155 }
 0x263   : > { %10467 = vst [vmem:[#allocation88_spill] sm:$0xff] %v7737_v44  ;;  %v7739_v56 = vpop.permute.xlu1 %6175  ;;  %v2001_v44 = vsel %vm277_vm2, %v816_v45, %v5787_v41  ;;  %v5962_v41 = vunpack.i.l.bf16 %v7525_v37  ;;  %v5793_v45 = vunpack.i.h.bf16 %v7194_v46 }
 0x264   : > { %10468 = vst [vmem:[#allocation89_spill] sm:$0xff] %v7739_v56  ;;  %v5817_v56 = vunpack.i.l.bf16 %v7400_v1 }
 0x26a   : > { %v7745_v10 = vpop.permute.xlu2 %6230  ;;  %v7747_v49 = vpop.permute.xlu0 %6165 }
 0x26b   : > { %v7743_v15 = vpop.permute.xlu1 %6195  ;;  %10470 = vst [vmem:[#allocation91_spill] sm:$0xff] %v7747_v49  ;;  %v5788_v49 = vunpack.i.h.bf16 %v7161_v40 }
 0x26c   : > { %10469 = vst [vmem:[#allocation90_spill] sm:$0xff] %v7743_v15  ;;  %v2034_v15 = vsel %vm2033_vm5, %v2001_v44, %v5792_v7  ;;  %v5818_v7 = vunpack.i.h.bf16 %v7400_v1  ;;  %v5963_v1 = vunpack.i.h.bf16 %v7525_v37  ;;  %v5807_v37 = vunpack.i.l.bf16 %v7386_v39 }
 0x26d   : > { %v2067_v6 = vsel %vm2066_vm6, %v2034_v15, %v5817_v56 }
 0x26e   : > { %v2100_v44 = vsel %vm2099_vm7, %v2067_v6, %v5827_v25  ;;  %v5838_v6 = vunpack.i.h.bf16 %v7431_v42 }
 0x26f   : > { %v2133_v51 = vsel %vm2132_vm8, %v2100_v44, %v5837_v2 }
 0x270   : > { %v2166_v36 = vsel %vm2165_vm9, %v2133_v51, %v5962_v41 }
 0x272   : > { %v7753_v29 = vpop.permute.xlu2 %6235  ;;  %v7757_v55 = vpop.permute.xlu0 %6185 }
 0x273   : > { %v7751_v17 = vpop.permute.xlu1 %6215  ;;  %10472 = vst [vmem:[#allocation93_spill] sm:$0xff] %v7757_v55 }
 0x274   : > { %10471 = vst [vmem:[#allocation92_spill] sm:$0xff] %v7751_v17  ;;  %v817_v17 = vld [vmem:[#allocation2 + $0x8] sm:$0xff] }
 0x275   : > { %v2002_v40 = vsel %vm277_vm2, %v817_v17, %v5788_v49  ;;  %v5828_v17 = vunpack.i.h.bf16 %v7352_v21  ;;  %v5797_v21 = vunpack.i.l.bf16 %v7388_v28 }
 0x276   : > { %v2035_v46 = vsel %vm2033_vm5, %v2002_v40, %v5793_v45  ;;  %v5932_v40 = vunpack.i.l.bf16 %v7455_v33 }
 0x277   : > { %v2003_v45 = vsel %vm277_vm2, %v7257_v54, %v5797_v21  ;;  %v6667_v54 = vld [vmem:[#allocation2 + $0x20] sm:$0xff] }
 0x27a   : > { %v6266_v62 = vpop.permute.xlu2 %6265  ;;  %v7771_v56 = vpop.permute.xlu0 %6190 }
 0x27b   : > { %v7766_v55 = vpop.permute.xlu1 %6220  ;;  %v6267_v15 = vunpack.i.l.bf16 %v6266_v62  ;;  %v6268_v49 = vunpack.i.h.bf16 %v6266_v62 }
 0x27c   : > { %10473 = vst [vmem:[#allocation94_spill] sm:$0xff] %v7766_v55  ;;  %v2068_v55 = vsel %vm2066_vm6, %v2035_v46, %v5818_v7  ;;  %v5942_v7 = vunpack.i.l.bf16 %v7529_v43  ;;  %v5798_v46 = vunpack.i.h.bf16 %v7388_v28  ;;  %v5943_v28 = vunpack.i.h.bf16 %v7529_v43 }
 0x27d   : > { %v2199_v12 = vsel %vm2198_vm10, %v2166_v36, %v6267_v15  ;;  %v2101_v2 = vsel %vm2099_vm7, %v2068_v55, %v5828_v17  ;;  %v2036_v15 = vsel %vm2033_vm5, %v2003_v45, %v5807_v37  ;;  %v6067_v17 = vunpack.i.l.bf16 %v7582_v52 }
 0x27e   : > { %2365 = vmatmul.f32.vlgmr.msrb.gmra.mxu1 %v2199_v12  ;;  %v2134_v36 = vsel %vm2132_vm8, %v2101_v2, %v5838_v6  ;;  %v2069_v6 = vsel %vm2066_vm6, %v2036_v15, %v5932_v40  ;;  %v5808_v2 = vunpack.i.h.bf16 %v7386_v39 }
 0x27f   : > { %v2167_v51 = vsel %vm2165_vm9, %v2134_v36, %v5963_v1  ;;  %v2102_v1 = vsel %vm2099_vm7, %v2069_v6, %v5942_v7  ;;  %v5912_v7 = vunpack.i.l.bf16 %v7470_v9 }
 0x280   : > { %v2200_v12 = vsel %vm2198_vm10, %v2167_v51, %v6268_v49  ;;  %v5952_v49 = vunpack.i.l.bf16 %v7514_v48  ;;  %v2004_v51 = vsel %vm277_vm2, %v6667_v54, %v5798_v46  ;;  %v5922_v54 = vunpack.i.l.bf16 %v7443_v32 }
 0x281   : > { %v2037_v39 = vsel %vm2033_vm5, %v2004_v51, %v5808_v2  ;;  %v2005_v43 = vsel %vm277_vm2, %v7318_v14, %v5912_v7  ;;  %v6047_v2 = vunpack.i.l.bf16 %v7614_v50  ;;  %v6057_v7 = vunpack.i.l.bf16 %v7568_v63 }
 0x282   : > { %v7784_v44 = vpop.permute.xlu0 %6210  ;;  %v2135_v37 = vsel %vm2132_vm8, %v2102_v1, %v5952_v49  ;;  %v5953_v1 = vunpack.i.h.bf16 %v7514_v48  ;;  %v2038_v51 = vsel %vm2033_vm5, %v2005_v43, %v5922_v54  ;;  %v6058_v54 = vunpack.i.h.bf16 %v7568_v63 }
 0x283   : > { %v7781_v25 = vpop.permute.xlu1 %6225  ;;  %v2168_v40 = vsel %vm2165_vm9, %v2135_v37, %v6067_v17  ;;  %v6037_v17 = vunpack.i.l.bf16 %v7616_v18  ;;  %v6137_v63 = vunpack.i.l.bf16 %v7663_v30 }
 0x285   : > { %v2071_v37 = vsel %vm2066_vm6, %v2038_v51, %v6037_v17 }
 0x286   : > { %2368 = vmatmul.f32.gmra.mxu1 %v2200_v12  ;;  %v5933_v12 = vunpack.i.h.bf16 %v7455_v33  ;;  %v6068_v33 = vunpack.i.h.bf16 %v7582_v52 }
 0x288   : > { %v2070_v46 = vsel %vm2066_vm6, %v2037_v39, %v5933_v12  ;;  %v5913_v12 = vunpack.i.h.bf16 %v7470_v9  ;;  %v5923_v9 = vunpack.i.h.bf16 %v7443_v32 }
 0x289   : > { %v2103_v6 = vsel %vm2099_vm7, %v2070_v46, %v5943_v28  ;;  %v2104_v28 = vsel %vm2099_vm7, %v2071_v37, %v6047_v2 }
 0x28a   : > { %v7791_v42 = vpop.permute.xlu0 %6240  ;;  %v2137_v46 = vsel %vm2132_vm8, %v2104_v28, %v6057_v7  ;;  %v6281_v28 = vpop.permute.xlu2 %6280  ;;  %v6128_v7 = vunpack.i.h.bf16 %v7696_v8 }
 0x28b   : > { %v7789_v41 = vpop.permute.xlu1 %6250 }
 0x292   : > { %v7797_v55 = vpop.permute.xlu0 %6245 }
 0x293   : > { %v7795_v62 = vpop.permute.xlu1 %6255 }
 0x29a   : > { %v6271_v36 = vpop.permute.xlu0 %6270 }
 0x29b   : > { %v6272_v21 = vunpack.i.l.bf16 %v6271_v36  ;;  %v7814_v45 = vpop.permute.xlu1 %6260  ;;  %v6273_v49 = vunpack.i.h.bf16 %v6271_v36  ;;  %v6157_v36 = vunpack.i.l.bf16 %v7741_v53 }
 0x29d   : > { %v2201_v15 = vsel %vm2198_vm10, %v2168_v40, %v6272_v21  ;;  %v2136_v21 = vsel %vm2132_vm8, %v2103_v6, %v5953_v1  ;;  %v2006_v40 = vsel %vm277_vm2, %v7320_v16, %v5913_v12  ;;  %v2170_v43 = vsel %vm2165_vm9, %v2137_v46, %v6157_v36 }
 0x29e   : > { %2371 = vmatmul.f32.gmra.mxu1 %v2201_v15  ;;  %v2169_v52 = vsel %vm2165_vm9, %v2136_v21, %v6068_v33  ;;  %v6038_v15 = vunpack.i.h.bf16 %v7616_v18  ;;  %v6048_v33 = vunpack.i.h.bf16 %v7614_v50  ;;  %v2039_v6 = vsel %vm2033_vm5, %v2006_v40, %v5923_v9 }
 0x29f   : > { %v2202_v14 = vsel %vm2198_vm10, %v2169_v52, %v6273_v49  ;;  %v6017_v16 = vunpack.i.l.bf16 %v7527_v13  ;;  %v6027_v18 = vunpack.i.l.bf16 %v7603_v31  ;;  %v6158_v49 = vunpack.i.h.bf16 %v7741_v53 }
 0x2a0   : > { %v2072_v1 = vsel %vm2066_vm6, %v2039_v6, %v6038_v15  ;;  %v6127_v50 = vunpack.i.l.bf16 %v7696_v8  ;;  %v6147_v53 = vunpack.i.l.bf16 %v7729_v58  ;;  %v6257_v36 = vunpack.i.l.bf16 %v7795_v62 }
 0x2a1   : > { %v2105_v32 = vsel %vm2099_vm7, %v2072_v1, %v6048_v33  ;;  %v2007_v2 = vsel %vm277_vm2, %v7405_v22, %v6017_v16  ;;  %v6028_v22 = vunpack.i.h.bf16 %v7603_v31  ;;  %v6282_v46 = vunpack.i.l.bf16 %v6281_v28 }
 0x2a2   : > { %v2138_v51 = vsel %vm2132_vm8, %v2105_v32, %v6058_v54  ;;  %v2040_v52 = vsel %vm2033_vm5, %v2007_v2, %v6027_v18  ;;  %v6107_v6 = vunpack.i.l.bf16 %v7682_v11  ;;  %v6148_v31 = vunpack.i.h.bf16 %v7729_v58 }
 0x2a3   : > { %v6276_v48 = vpop.permute.xlu1 %6275  ;;  %v2171_v12 = vsel %vm2165_vm9, %v2138_v51, %v6158_v49  ;;  %v2073_v37 = vsel %vm2066_vm6, %v2040_v52, %v6127_v50  ;;  %v6138_v8 = vunpack.i.h.bf16 %v7663_v30  ;;  %v6258_v1 = vunpack.i.h.bf16 %v7795_v62 }
 0x2a4   : > { %v6277_v39 = vunpack.i.l.bf16 %v6276_v48  ;;  %v6278_v21 = vunpack.i.h.bf16 %v6276_v48  ;;  %v6018_v48 = vunpack.i.h.bf16 %v7527_v13  ;;  %v2106_v40 = vsel %vm2099_vm7, %v2073_v37, %v6137_v63 }
 0x2a5   : > { %v2139_v15 = vsel %vm2132_vm8, %v2106_v40, %v6147_v53  ;;  %v2009_v16 = vsel %vm277_vm2, %v7476_v20, %v6107_v6  ;;  %v6237_v18 = vunpack.i.l.bf16 %v7753_v29  ;;  %v6242_v58 = vunpack.i.l.bf16 %v7791_v42  ;;  %v6286_v20 = vpop.permute.xlu0 %6285 }
 0x2a6   : > { %2374 = vmatmul.f32.gmra.mxu1 %v2202_v14  ;;  %v2203_v17 = vsel %vm2198_vm10, %v2170_v43, %v6277_v39  ;;  %v2204_v14 = vsel %vm2198_vm10, %v2171_v12, %v6278_v21  ;;  %v2172_v39 = vsel %vm2165_vm9, %v2139_v15, %v6257_v36  ;;  %v2008_v9 = vsel %vm277_vm2, %v7407_v61, %v6018_v48 }
 0x2a7   : > { %v2041_v33 = vsel %vm2033_vm5, %v2008_v9, %v6028_v22  ;;  %v2205_v43 = vsel %vm2198_vm10, %v2172_v39, %v6282_v46  ;;  %v6283_v54 = vunpack.i.h.bf16 %v6281_v28  ;;  %v6108_v30 = vunpack.i.h.bf16 %v7682_v11 }
 0x2a8   : > { %v2074_v13 = vsel %vm2066_vm6, %v2041_v33, %v6128_v7  ;;  %v6252_v21 = vunpack.i.l.bf16 %v7789_v41  ;;  %v6118_v52 = vunpack.i.h.bf16 %v7680_v5  ;;  %v6238_v37 = vunpack.i.h.bf16 %v7753_v29 }
 0x2a9   : > { %v2107_v61 = vsel %vm2099_vm7, %v2074_v13, %v6138_v8  ;;  %v2010_v12 = vsel %vm277_vm2, %v7478_v47, %v6108_v30  ;;  %v6227_v11 = vunpack.i.l.bf16 %v7781_v25  ;;  %v6287_v53 = vunpack.i.l.bf16 %v6286_v20 }
 0x2aa   : > { %v2140_v49 = vsel %vm2132_vm8, %v2107_v61, %v6148_v31  ;;  %v5847_v63 = vunpack.i.l.bf16 %v7368_v35  ;;  %v6243_v36 = vunpack.i.h.bf16 %v7791_v42  ;;  %v2043_v48 = vsel %vm2033_vm5, %v2010_v12, %v6118_v52 }
 0x2ab   : > { %v2173_v32 = vsel %vm2165_vm9, %v2140_v49, %v6258_v1  ;;  %v2011_v47 = vsel %vm277_vm2, %v7586_v19, %v6227_v11  ;;  %v6253_v29 = vunpack.i.h.bf16 %v7789_v41  ;;  %v6232_v40 = vunpack.i.l.bf16 %v7745_v10 }
 0x2ac   : > { %v2206_v2 = vsel %vm2198_vm10, %v2173_v32, %v6283_v54  ;;  %v5822_v15 = vunpack.i.l.bf16 %v7420_v4  ;;  %v6228_v39 = vunpack.i.h.bf16 %v7781_v25  ;;  %v6288_v9 = vunpack.i.h.bf16 %v6286_v20  ;;  %v6291_v25 = vpop.permute.xlu1 %6290 }
 0x2ad   : > { %v2044_v42 = vsel %vm2033_vm5, %v2011_v47, %v6232_v40  ;;  %v5848_v19 = vunpack.i.h.bf16 %v7368_v35  ;;  %v5832_v33 = vunpack.i.l.bf16 %v7418_v3  ;;  %v10474_v1 = vmov 0.0  }
 0x2ae   : > { %2377 = vmatmul.f32.gmra.mxu1 %v2203_v17  ;;  %v6117_v17 = vunpack.i.l.bf16 %v7680_v5  ;;  %v2076_v5 = vsel %vm2066_vm6, %v2043_v48, %v6238_v37  ;;  %v2077_v41 = vsel %vm2066_vm6, %v2044_v42, %v5822_v15  ;;  %v2012_v13 = vsel %vm277_vm2, %v7588_v23, %v6228_v39  ;;  %321 = vst.msk [vmem:[#allocation3] sm:$0xff] %vm320_vm11, %v10474_v1  ;;  %v6669_v39 = vld [vmem:[#allocation2 + $0x98] sm:$0xff] }
 0x2af   : > { %v2109_v7 = vsel %vm2099_vm7, %v2076_v5, %v6243_v36  ;;  %v2110_v8 = vsel %vm2099_vm7, %v2077_v41, %v5832_v33  ;;  %v5842_v35 = vunpack.i.l.bf16 %v7359_v34  ;;  %322 = vst.msk [vmem:[#allocation3 + $0x8] sm:$0xff] %vm320_vm11, %v10474_v1  ;;  %v5833_v49 = vunpack.i.h.bf16 %v7418_v3  ;;  %v6296_v36 = vpop.permute.xlu2 %6295 }
 0x2b0   : > { %v2042_v62 = vsel %vm2033_vm5, %v2009_v16, %v6117_v17  ;;  %v2142_v46 = vsel %vm2132_vm8, %v2109_v7, %v6253_v29  ;;  %326 = vst.msk [vmem:[#allocation3 + $0x198] sm:$0xff] %vm320_vm11, %v10474_v1  ;;  %v6292_v17 = vunpack.i.l.bf16 %v6291_v25  ;;  %v5967_v16 = vunpack.i.l.bf16 %v7560_v27 }
 0x2b1   : > { %v2075_v50 = vsel %vm2066_vm6, %v2042_v62, %v6237_v18  ;;  %v2175_v6 = vsel %vm2165_vm9, %v2142_v46, %v5848_v19  ;;  %v2143_v61 = vsel %vm2132_vm8, %v2110_v8, %v5842_v35  ;;  %327 = vst.msk [vmem:[#allocation3 + $0x1a0] sm:$0xff] %vm320_vm11, %v10474_v1  ;;  %v5843_v54 = vunpack.i.h.bf16 %v7359_v34 }
 0x2b2   : > { %v2108_v51 = vsel %vm2099_vm7, %v2075_v50, %v6242_v58  ;;  %v2208_v31 = vsel %vm2198_vm10, %v2175_v6, %v6288_v9  ;;  %324 = vst.msk [vmem:[#allocation3 + $0x10] sm:$0x3] %vm323_vm12, %v10474_v1  ;;  %v2176_v58 = vsel %vm2165_vm9, %v2143_v61, %v5967_v16  ;;  %v5802_v50 = vunpack.i.l.bf16 %v7345_v59 }
 0x2b3   : > { %328 = vst.msk [vmem:[#allocation3 + $0x1a8] sm:$0x3] %vm323_vm12, %v10474_v1  ;;  %v5968_v34 = vunpack.i.h.bf16 %v7560_v27  ;;  %v5937_v37 = vunpack.i.l.bf16 %v7503_v24  ;;  %v6668_v27 = vld [vmem:[#allocation2 + $0x90] sm:$0xff]  ;;  %v5947_v5 = vunpack.i.l.bf16 %v7472_v60  ;;  %v6072_v47 = vunpack.i.l.bf16 %v7647_v0 }
 0x2b4   : > { %347 = vst.msk [vmem:[#allocation3 + $0x29] sm:$0x1] %vm330_vm13, %v10474_v1  ;;  %v5803_v29 = vunpack.i.h.bf16 %v7345_v59  ;;  %v5813_v40 = vunpack.i.h.bf16 %v7402_v57  ;;  %v5938_v42 = vunpack.i.h.bf16 %v7503_v24  ;;  %v5917_v19 = vunpack.i.l.bf16 %v7518_v26 }
 0x2b5   : > { %331 = vst.msk [vmem:[#allocation3 + $0x18] sm:$0x1] %vm330_vm13, %v10474_v1  ;;  %v5958_v41 = vunpack.i.h.bf16 %v7548_v38  ;;  %v5948_v33 = vunpack.i.h.bf16 %v7472_v60  ;;  %v6073_v6 = vunpack.i.h.bf16 %v7647_v0  ;;  %v10476_v0 = vld [vmem:[#allocation50_spill] sm:$0xff]  ;;  %v5918_v16 = vunpack.i.h.bf16 %v7518_v26  ;;  %v10479_v26 = vld [vmem:[#allocation81_spill] sm:$0xff] }
 0x2b6   : > { %2380 = vmatmul.f32.gmra.mxu1 %v2204_v14  ;;  %v2141_v14 = vsel %vm2132_vm8, %v2108_v51, %v6252_v21  ;;  %v2639_v30 = vld [vmem:[#allocation3 + $0x1] sm:$0xff]  ;;  %v6293_v21 = vunpack.i.h.bf16 %v6291_v25  ;;  %v5812_v51 = vunpack.i.l.bf16 %v7402_v57  ;;  %332 = vst.msk [vmem:[#allocation3 + $0x30] sm:$0x1] %vm330_vm13, %v10474_v1  ;;  %v2014_v57 = vsel %vm277_vm2, %v6669_v39, %v5803_v29  ;;  %v10484_v39 = vld [vmem:[#allocation83_spill] sm:$0xff] }
 0x2b7   : > { %v2174_v22 = vsel %vm2165_vm9, %v2141_v14, %v5847_v63  ;;  %v2671_v62 = vld [vmem:[#allocation3 + $0x2] sm:$0xff]  ;;  %333 = vst.msk [vmem:[#allocation3 + $0x48] sm:$0x1] %vm330_vm13, %v10474_v1  ;;  %v2047_v24 = vsel %vm2033_vm5, %v2014_v57, %v5813_v40  ;;  %v5927_v35 = vunpack.i.l.bf16 %v10476_v0  ;;  %v10483_v40 = vld [vmem:[#allocation58_spill] sm:$0xff]  ;;  %v6142_v57 = vunpack.i.l.bf16 %v10484_v39 }
 0x2b8   : > { %v2207_v28 = vsel %vm2198_vm10, %v2174_v22, %v6287_v53  ;;  %334 = vst.msk [vmem:[#allocation3 + $0x60] sm:$0x1] %vm330_vm13, %v10474_v1  ;;  %v2013_v53 = vsel %vm277_vm2, %v6668_v27, %v5802_v50  ;;  %v5957_v22 = vunpack.i.l.bf16 %v7548_v38  ;;  %v2080_v46 = vsel %vm2066_vm6, %v2047_v24, %v5938_v42  ;;  %v6670_v38 = vld [vmem:[#allocation2 + $0xa8] sm:$0xff]  ;;  %v10475_v25 = vld [vmem:[#allocation60_spill] sm:$0xff]  ;;  %v10482_v29 = vld [vmem:[#allocation85_spill] sm:$0xff] }
 0x2b9   : > { %v2672_v20 = vld [vmem:[#allocation3 + $0xa] sm:$0xff]  ;;  %335 = vst.msk [vmem:[#allocation3 + $0x78] sm:$0x1] %vm330_vm13, %v10474_v1  ;;  %v2046_v63 = vsel %vm2033_vm5, %v2013_v53, %v5812_v51  ;;  %v6042_v8 = vunpack.i.l.bf16 %v10475_v25  ;;  %v10481_v53 = vld [vmem:[#allocation56_spill] sm:$0xff]  ;;  %v6163_v42 = vunpack.i.h.bf16 %v10479_v26 }
 0x2ba   : > { %v6349_v12 = vpack.i.bf16 %v2672_v20, %v2671_v62  ;;  %336 = vst.msk [vmem:[#allocation3 + $0x90] sm:$0x1] %vm330_vm13, %v10474_v1  ;;  %v2079_v48 = vsel %vm2066_vm6, %v2046_v63, %v5937_v37  ;;  %v6043_v20 = vunpack.i.h.bf16 %v10475_v25  ;;  %v10480_v51 = vld [vmem:[#allocation69_spill] sm:$0xff]  ;;  %v5928_v37 = vunpack.i.h.bf16 %v10476_v0  ;;  %v10486_v0 = vld [vmem:[#allocation80_spill] sm:$0xff] }
 0x2bb   : > { %337 = vst.msk [vmem:[#allocation3 + $0xa8] sm:$0x1] %vm330_vm13, %v10474_v1  ;;  %v2112_v7 = vsel %vm2099_vm7, %v2079_v48, %v5947_v5 }
 0x2bc   : > { %6350 = vrot.lane.b32.xlu1 %v6349_v12, %s6765_s17  ;;  %338 = vst.msk [vmem:[#allocation3 + $0xc0] sm:$0x1] %vm330_vm13, %v10474_v1  ;;  %v2145_v15 = vsel %vm2132_vm8, %v2112_v7, %v5957_v22  ;;  %v6672_v22 = vld [vmem:[#allocation2 + $0xc0] sm:$0xff]  ;;  %v6032_v7 = vunpack.i.l.bf16 %v10483_v40 }
 0x2bd   : > { %339 = vst.msk [vmem:[#allocation3 + $0xd8] sm:$0x1] %vm330_vm13, %v10474_v1  ;;  %v2178_v59 = vsel %vm2165_vm9, %v2145_v15, %v6072_v47 }
 0x2be   : > { %2383 = vmatmul.f32.gmra.mxu1 %v2205_v43  ;;  %v6233_v43 = vunpack.i.h.bf16 %v7745_v10  ;;  %v5823_v10 = vunpack.i.h.bf16 %v7420_v4  ;;  %v2209_v4 = vsel %vm2198_vm10, %v2176_v58, %v6292_v17  ;;  %340 = vst.msk [vmem:[#allocation3 + $0xf0] sm:$0x1] %vm330_vm13, %v10474_v1 }
 0x2bf   : > { %341 = vst.msk [vmem:[#allocation3 + $0x108] sm:$0x1] %vm330_vm13, %v10474_v1 }
 0x2c0   : > { %v2045_v23 = vsel %vm2033_vm5, %v2012_v13, %v6233_v43  ;;  %342 = vst.msk [vmem:[#allocation3 + $0x120] sm:$0x1] %vm330_vm13, %v10474_v1  ;;  %v6298_v13 = vunpack.i.h.bf16 %v6296_v36  ;;  %v2015_v43 = vsel %vm277_vm2, %v6670_v38, %v5917_v19 }
 0x2c1   : > { %v2078_v18 = vsel %vm2066_vm6, %v2045_v23, %v5823_v10  ;;  %343 = vst.msk [vmem:[#allocation3 + $0x138] sm:$0x1] %vm330_vm13, %v10474_v1  ;;  %v10477_v23 = vld [vmem:[#allocation74_spill] sm:$0xff] }
 0x2c2   : > { %v2111_v32 = vsel %vm2099_vm7, %v2078_v18, %v5833_v49  ;;  %344 = vst.msk [vmem:[#allocation3 + $0x150] sm:$0x1] %vm330_vm13, %v10474_v1  ;;  %v6052_v10 = vunpack.i.l.bf16 %v10477_v23  ;;  %v2048_v18 = vsel %vm2033_vm5, %v2015_v43, %v5927_v35  ;;  %v6301_v49 = vpop.permute.xlu0 %6300  ;;  %v6306_v43 = vpop.permute.xlu1 %6305  ;;  %v6152_v35 = vunpack.i.l.bf16 %v10486_v0 }
 0x2c3   : > { %v2144_v3 = vsel %vm2132_vm8, %v2111_v32, %v5843_v54  ;;  %345 = vst.msk [vmem:[#allocation3 + $0x168] sm:$0x1] %vm330_vm13, %v10474_v1  ;;  %v2081_v58 = vsel %vm2066_vm6, %v2048_v18, %v6042_v8  ;;  %v8034_v54 = vld [vmem:[%s10292_s4] ss:$0 sm:$0xff]  ;;  %v6302_v50 = vunpack.i.l.bf16 %v6301_v49  ;;  %v6673_v8 = vld [vmem:[#allocation2 + $0xc8] sm:$0xff] }
 0x2c4   : > { %v2177_v11 = vsel %vm2165_vm9, %v2144_v3, %v5968_v34  ;;  %346 = vst.msk [vmem:[#allocation3 + $0x180] sm:$0x1] %vm330_vm13, %v10474_v1  ;;  %v2114_v62 = vsel %vm2099_vm7, %v2081_v58, %v6052_v10  ;;  %v6022_v34 = vunpack.i.l.bf16 %v10480_v51  ;;  %v6033_v10 = vunpack.i.h.bf16 %v10483_v40 }
 0x2c5   : > { %v2210_v14 = vsel %vm2198_vm10, %v2177_v11, %v6293_v21  ;;  %348 = vst.msk [vmem:[#allocation3 + $0x41] sm:$0x1] %vm330_vm13, %v10474_v1  ;;  %v6671_v21 = vld [vmem:[#allocation2 + $0xb0] sm:$0xff]  ;;  %v6053_v11 = vunpack.i.h.bf16 %v10477_v23  ;;  %v6133_v23 = vunpack.i.h.bf16 %v10482_v29 }
 0x2c6   : > { %2386 = vmatmul.f32.gmra.mxu1 %v2206_v2  ;;  %v2640_v2 = vld [vmem:[#allocation3 + $0x9] sm:$0xff]  ;;  %349 = vst.msk [vmem:[#allocation3 + $0x59] sm:$0x1] %vm330_vm13, %v10474_v1  ;;  %v2016_v3 = vsel %vm277_vm2, %v6671_v21, %v5918_v16  ;;  %v2017_v5 = vsel %vm277_vm2, %v6672_v22, %v6022_v34 }
 0x2c7   : > { %v6344_v52 = vpack.i.bf16 %v2640_v2, %v2639_v30  ;;  %350 = vst.msk [vmem:[#allocation3 + $0x71] sm:$0x1] %vm330_vm13, %v10474_v1  ;;  %v6162_v30 = vunpack.i.l.bf16 %v10479_v26  ;;  %v10487_v16 = vld [vmem:[#allocation49_spill] sm:$0xff] }
 0x2c8   : > { %351 = vst.msk [vmem:[#allocation3 + $0x89] sm:$0x1] %vm330_vm13, %v10474_v1  ;;  %v5877_v18 = vunpack.i.l.bf16 %v10487_v16 }
 0x2c9   : > { %6345 = vrot.lane.b32.xlu0 %v6344_v52, %s6768_s8  ;;  %352 = vst.msk [vmem:[#allocation3 + $0xa1] sm:$0x1] %vm330_vm13, %v10474_v1 }
 0x2ca   : > { %353 = vst.msk [vmem:[#allocation3 + $0xb9] sm:$0x1] %vm330_vm13, %v10474_v1 }
 0x2cb   : > { %354 = vst.msk [vmem:[#allocation3 + $0xd1] sm:$0x1] %vm330_vm13, %v10474_v1 }
 0x2cc   : > { %355 = vst.msk [vmem:[#allocation3 + $0xe9] sm:$0x1] %vm330_vm13, %v10474_v1 }
 0x2cd   : > { %356 = vst.msk [vmem:[#allocation3 + $0x101] sm:$0x1] %vm330_vm13, %v10474_v1 }
 0x2ce   : > { %2389 = vmatmul.f32.gmra.mxu1 %v2207_v28  ;;  %v6297_v28 = vunpack.i.l.bf16 %v6296_v36  ;;  %357 = vst.msk [vmem:[#allocation3 + $0x119] sm:$0x1] %vm330_vm13, %v10474_v1  ;;  %v2049_v36 = vsel %vm2033_vm5, %v2016_v3, %v5928_v37 }
 0x2cf   : > { %358 = vst.msk [vmem:[#allocation3 + $0x131] sm:$0x1] %vm330_vm13, %v10474_v1  ;;  %v2082_v48 = vsel %vm2066_vm6, %v2049_v36, %v6043_v20 }
 0x2d0   : > { %v2211_v9 = vsel %vm2198_vm10, %v2178_v59, %v6297_v28  ;;  %359 = vst.msk [vmem:[#allocation3 + $0x149] sm:$0x1] %vm330_vm13, %v10474_v1  ;;  %v6132_v28 = vunpack.i.l.bf16 %v10482_v29  ;;  %v2115_v15 = vsel %vm2099_vm7, %v2082_v48, %v6053_v11  ;;  %v6303_v59 = vunpack.i.h.bf16 %v6301_v49 }
 0x2d1   : > { %360 = vst.msk [vmem:[#allocation3 + $0x161] sm:$0x1] %vm330_vm13, %v10474_v1  ;;  %v6143_v49 = vunpack.i.h.bf16 %v10484_v39  ;;  %v6153_v11 = vunpack.i.h.bf16 %v10486_v0  ;;  %v6308_v48 = vunpack.i.h.bf16 %v6306_v43 }
 0x2d2   : > { %361 = vst.msk [vmem:[#allocation3 + $0x179] sm:$0x1] %vm330_vm13, %v10474_v1 }
 0x2d3   : > { %362 = vst.msk [vmem:[#allocation3 + $0x191] sm:$0x1] %vm330_vm13, %v10474_v1 }
 0x2d6   : > { %2392 = vmatmul.f32.gmra.mxu1 %v2208_v31  ;;  %v2113_v31 = vsel %vm2099_vm7, %v2080_v46, %v5948_v33  ;;  %v6023_v46 = vunpack.i.h.bf16 %v10480_v51 }
 0x2d7   : > { %v2146_v60 = vsel %vm2132_vm8, %v2113_v31, %v5958_v41 }
 0x2d8   : > { %v2179_v17 = vsel %vm2165_vm9, %v2146_v60, %v6073_v6  ;;  %v2018_v60 = vsel %vm277_vm2, %v6673_v8, %v6023_v46  ;;  %v10492_v46 = vld [vmem:[#allocation48_spill] sm:$0xff] }
 0x2d9   : > { %v2212_v61 = vsel %vm2198_vm10, %v2179_v17, %v6298_v13  ;;  %v10485_v13 = vld [vmem:[#allocation61_spill] sm:$0xff]  ;;  %v6307_v17 = vunpack.i.l.bf16 %v6306_v43  ;;  %v2051_v58 = vsel %vm2033_vm5, %v2018_v60, %v6033_v10 }
 0x2de   : > { %2395 = vmatmul.f32.gmra.mxu1 %v2209_v4  ;;  %v10478_v4 = vld [vmem:[#allocation73_spill] sm:$0xff] }
 0x2df   : > { %v6062_v32 = vunpack.i.l.bf16 %v10478_v4  ;;  %v6063_v47 = vunpack.i.h.bf16 %v10478_v4  ;;  %v8094_v4 = vpop.f32.mrf.mxu2 }
 0x2e1   : > { %v2147_v12 = vsel %vm2132_vm8, %v2114_v62, %v6062_v32  ;;  %v2148_v33 = vsel %vm2132_vm8, %v2115_v15, %v6063_v47  ;;  %v10488_v32 = vld [vmem:[#allocation76_spill] sm:$0xff]  ;;  %v10489_v62 = vld [vmem:[#allocation82_spill] sm:$0xff] }
 0x2e2   : > { %v2180_v27 = vsel %vm2165_vm9, %v2147_v12, %v6162_v30  ;;  %v2181_v6 = vsel %vm2165_vm9, %v2148_v33, %v6163_v42  ;;  %v6112_v26 = vunpack.i.l.bf16 %v10488_v32  ;;  %v2084_v30 = vsel %vm2066_vm6, %v2051_v58, %v6133_v23  ;;  %v6674_v12 = vld [vmem:[#allocation2 + $0xd8] sm:$0xff] }
 0x2e3   : > { %v2213_v63 = vsel %vm2198_vm10, %v2180_v27, %v6302_v50  ;;  %v2214_v38 = vsel %vm2198_vm10, %v2181_v6, %v6303_v59  ;;  %v6122_v50 = vunpack.i.l.bf16 %v10489_v62  ;;  %v6113_v47 = vunpack.i.h.bf16 %v10488_v32 }
 0x2e4   : > { %v2019_v37 = vsel %vm277_vm2, %v6674_v12, %v6112_v26  ;;  %v5873_v32 = vunpack.i.h.bf16 %v10492_v46 }
 0x2e6   : > { %2398 = vmatmul.f32.gmra.mxu1 %v2210_v14 }
 0x2e7   : > { %v8116_v59 = vpop.f32.mrf.mxu2 }
 0x2ee   : > { %2401 = vmatmul.f32.gmra.mxu1 %v2211_v9  ;;  %v2050_v9 = vsel %vm2033_vm5, %v2017_v5, %v6032_v7  ;;  %v5878_v5 = vunpack.i.h.bf16 %v10487_v16  ;;  %v6123_v7 = vunpack.i.h.bf16 %v10489_v62 }
 0x2ef   : > { %v2083_v19 = vsel %vm2066_vm6, %v2050_v9, %v6132_v28  ;;  %v10491_v28 = vld [vmem:[#allocation40_spill] sm:$0xff]  ;;  %v8137_v26 = vpop.f32.mrf.mxu2 }
 0x2f0   : > { %v2116_v25 = vsel %vm2099_vm7, %v2083_v19, %v6142_v57  ;;  %v5867_v40 = vunpack.i.l.bf16 %v10491_v28  ;;  %v6311_v57 = vpop.permute.xlu2 %6310  ;;  %v5872_v19 = vunpack.i.l.bf16 %v10492_v46 }
 0x2f6   : > { %2404 = vmatmul.f32.gmra.mxu1 %v2212_v61  ;;  %v2149_v61 = vsel %vm2132_vm8, %v2116_v25, %v6152_v35  ;;  %v10493_v25 = vld [vmem:[#allocation62_spill] sm:$0xff]  ;;  %v5868_v35 = vunpack.i.h.bf16 %v10491_v28 }
 0x2f7   : > { %v2182_v21 = vsel %vm2165_vm9, %v2149_v61, %v5877_v18  ;;  %v5997_v8 = vunpack.i.l.bf16 %v10493_v25  ;;  %v10494_v61 = vld [vmem:[#allocation64_spill] sm:$0xff] }
 0x2f8   : > { %v2215_v3 = vsel %vm2198_vm10, %v2182_v21, %v6307_v17  ;;  %v6676_v21 = vld [vmem:[#allocation2 + $0xf0] sm:$0xff] }
 0x2fb   : > { %v2366_v2 = vpop.f32.mrf.mxu1 }
 0x2fc   : > { %v2367_v52 = vadd.f32 %v8034_v54, %v2366_v2 }
 0x2fe   : > { %v2480_v14 = vadd.f32 %v10481_v53, %v2367_v52  ;;  %2407 = vmatmul.f32.gmra.mxu1 %v2213_v63  ;;  %v2117_v52 = vsel %vm2099_vm7, %v2084_v30, %v6143_v49  ;;  %v10490_v63 = vld [vmem:[#allocation45_spill] sm:$0xff]  ;;  %v10495_v49 = vld [vmem:[#allocation46_spill] sm:$0xff]  ;;  %v6313_v30 = vunpack.i.h.bf16 %v6311_v57 }
 0x2ff   : > { %v5862_v36 = vunpack.i.l.bf16 %v10490_v63  ;;  %v2150_v22 = vsel %vm2132_vm8, %v2117_v52, %v6153_v11  ;;  %v5852_v58 = vunpack.i.l.bf16 %v10495_v49  ;;  %v10497_v52 = vld [vmem:[#allocation44_spill] sm:$0xff] }
 0x300   : > { %2575 = vst.msk [vmem:[#allocation3 + $0x19] sm:$0xff] %vm320_vm11, %v2480_v14  ;;  %v2052_v14 = vsel %vm2033_vm5, %v2019_v37, %v6122_v50  ;;  %v2183_v42 = vsel %vm2165_vm9, %v2150_v22, %v5878_v5  ;;  %v5998_v50 = vunpack.i.h.bf16 %v10493_v25  ;;  %v5857_v12 = vunpack.i.l.bf16 %v10497_v52  ;;  %v10498_v37 = vld [vmem:[#allocation63_spill] sm:$0xff] }
 0x301   : > { %v2085_v29 = vsel %vm2066_vm6, %v2052_v14, %v5862_v36  ;;  %v2216_v39 = vsel %vm2198_vm10, %v2183_v42, %v6308_v48  ;;  %v5987_v11 = vunpack.i.l.bf16 %v10498_v37  ;;  %v10499_v36 = vld [vmem:[#allocation67_spill] sm:$0xff]  ;;  %v5853_v22 = vunpack.i.h.bf16 %v10495_v49 }
 0x302   : > { %v10501_v42 = vld [vmem:[#allocation59_spill] sm:$0xff] }
 0x303   : > { %v2369_v24 = vpop.f32.mrf.mxu1 }
 0x304   : > { %v2370_v41 = vadd.f32 %v8034_v54, %v2369_v24  ;;  %v2118_v24 = vsel %vm2099_vm7, %v2085_v29, %v5867_v40  ;;  %v10500_v40 = vld [vmem:[#allocation72_spill] sm:$0xff] }
 0x305   : > { %v2151_v43 = vsel %vm2132_vm8, %v2118_v24, %v5872_v19 }
 0x306   : > { %v2483_v31 = vadd.f32 %v10485_v13, %v2370_v41  ;;  %2410 = vmatmul.f32.gmra.mxu1 %v2214_v38  ;;  %v6675_v41 = vld [vmem:[#allocation2 + $0xe0] sm:$0xff]  ;;  %v6312_v38 = vunpack.i.l.bf16 %v6311_v57  ;;  %v2184_v10 = vsel %vm2165_vm9, %v2151_v43, %v5997_v8 }
 0x307   : > { %v2735_v2 = vld [vmem:[#allocation3 + $0x19] sm:$0xff]  ;;  %v2020_v33 = vsel %vm277_vm2, %v6675_v41, %v6113_v47 }
 0x308   : > { %2576 = vst.msk [vmem:[#allocation3 + $0x21] sm:$0xff] %vm320_vm11, %v2483_v31  ;;  %v2703_v9 = vld [vmem:[#allocation3 + $0x18] sm:$0xff]  ;;  %v2053_v13 = vsel %vm2033_vm5, %v2020_v33, %v6123_v7  ;;  %v5863_v31 = vunpack.i.h.bf16 %v10490_v63  ;;  %v2217_v17 = vsel %vm2198_vm10, %v2184_v10, %v6312_v38  ;;  %v6316_v63 = vpop.permute.xlu0 %6315  ;;  %v6102_v7 = vunpack.i.l.bf16 %v10500_v40  ;;  %v10502_v38 = vld [vmem:[#allocation57_spill] sm:$0xff] }
 0x309   : > { %v6317_v57 = vunpack.i.l.bf16 %v6316_v63  ;;  %v5858_v33 = vunpack.i.h.bf16 %v10497_v52  ;;  %v5972_v43 = vunpack.i.l.bf16 %v10502_v38 }
 0x30a   : > { %v2086_v60 = vsel %vm2066_vm6, %v2053_v13, %v5863_v31 }
 0x30b   : > { %v2119_v18 = vsel %vm2099_vm7, %v2086_v60, %v5868_v35  ;;  %v10503_v60 = vld [vmem:[#allocation70_spill] sm:$0xff] }
 0x30c   : > { %v2152_v62 = vsel %vm2132_vm8, %v2119_v18, %v5873_v32 }
 0x30e   : > { %2413 = vmatmul.f32.gmra.mxu1 %v2215_v3  ;;  %v2021_v3 = vsel %vm277_vm2, %v6676_v21, %v5852_v58  ;;  %v6678_v58 = vld [vmem:[#allocation2 + $0x108] sm:$0xff]  ;;  %v6318_v21 = vunpack.i.h.bf16 %v6316_v63 }
 0x30f   : > { %v2736_v20 = vld [vmem:[#allocation3 + $0x21] sm:$0xff]  ;;  %v2054_v14 = vsel %vm2033_vm5, %v2021_v3, %v5857_v12  ;;  %v2023_v32 = vsel %vm277_vm2, %v6678_v58, %v5972_v43  ;;  %v10505_v3 = vld [vmem:[#allocation51_spill] sm:$0xff]  ;;  %v10506_v12 = vld [vmem:[#allocation78_spill] sm:$0xff] }
 0x310   : > { %v2673_v51 = vld [vmem:[#allocation3 + $0x1a] sm:$0xff]  ;;  %v2674_v34 = vld [vmem:[#allocation3 + $0x22] sm:$0xff]  ;;  %v6369_v27 = vpack.i.bf16 %v2736_v20, %v2735_v2 }
 0x311   : > { %v6359_v53 = vpack.i.bf16 %v2674_v34, %v2673_v51  ;;  %v2704_v15 = vld [vmem:[#allocation3 + $0x20] sm:$0xff]  ;;  %v10496_v2 = vld [vmem:[#allocation53_spill] sm:$0xff] }
 0x312   : > { %6370 = vrot.lane.b32.xlu0 %v6369_v27, %s6766_s18  ;;  %6355 = vrot.lane.b32.xlu1 %v6369_v27, %s6768_s8  ;;  %v6364_v6 = vpack.i.bf16 %v2704_v15, %v2703_v9  ;;  %v5982_v20 = vunpack.i.l.bf16 %v10496_v2  ;;  %v5992_v15 = vunpack.i.l.bf16 %v10501_v42  ;;  %v6677_v9 = vld [vmem:[#allocation2 + $0xf8] sm:$0xff]  ;;  %v5983_v46 = vunpack.i.h.bf16 %v10496_v2 }
 0x313   : > { %6360 = vrot.lane.b32.xlu2 %v6359_v53, %s6765_s17  ;;  %v2185_v53 = vsel %vm2165_vm9, %v2152_v62, %v5998_v50  ;;  %v2022_v24 = vsel %vm277_vm2, %v6677_v9, %v5853_v22  ;;  %v10504_v62 = vld [vmem:[#allocation79_spill] sm:$0xff]  ;;  %v5977_v2 = vunpack.i.l.bf16 %v10505_v3 }
 0x314   : > { %v2087_v5 = vsel %vm2066_vm6, %v2054_v14, %v5982_v20  ;;  %v2055_v8 = vsel %vm2033_vm5, %v2022_v24, %v5858_v33  ;;  %v6087_v50 = vunpack.i.l.bf16 %v10504_v62  ;;  %v10507_v22 = vld [vmem:[#allocation75_spill] sm:$0xff]  ;;  %v6088_v9 = vunpack.i.h.bf16 %v10504_v62 }
 0x315   : > { %v2120_v28 = vsel %vm2099_vm7, %v2087_v5, %v5987_v11  ;;  %v2088_v35 = vsel %vm2066_vm6, %v2055_v8, %v5983_v46  ;;  %v2056_v11 = vsel %vm2033_vm5, %v2023_v32, %v5977_v2  ;;  %v5978_v46 = vunpack.i.h.bf16 %v10505_v3 }
 0x316   : > { %2416 = vmatmul.f32.gmra.mxu1 %v2216_v39  ;;  %v8163_v39 = vpop.f32.mrf.mxu2  ;;  %v2153_v41 = vsel %vm2132_vm8, %v2120_v28, %v5992_v15  ;;  %v2089_v14 = vsel %vm2066_vm6, %v2056_v11, %v6087_v50  ;;  %v10508_v15 = vld [vmem:[#allocation71_spill] sm:$0xff]  ;;  %v6193_v8 = vunpack.i.h.bf16 %v7771_v56 }
 0x317   : > { %v2186_v31 = vsel %vm2165_vm9, %v2153_v41, %v6102_v7  ;;  %v6679_v7 = vld [vmem:[#allocation2 + $0x110] sm:$0xff]  ;;  %v6093_v41 = vunpack.i.h.bf16 %v10506_v12 }
 0x318   : > { %v2219_v25 = vsel %vm2198_vm10, %v2186_v31, %v6317_v57  ;;  %v6097_v57 = vunpack.i.l.bf16 %v10508_v15 }
 0x31a   : > { %3440 = vrot.lane.b32.xlu1 %v2673_v51, %s6770_s19 }
 0x31b   : > { %6365 = vrot.lane.b32.xlu2 %v6364_v6, %s6769_s14  ;;  %v2372_v0 = vpop.f32.mrf.mxu1  ;;  %v5988_v6 = vunpack.i.h.bf16 %v10498_v37  ;;  %v6092_v37 = vunpack.i.l.bf16 %v10506_v12 }
 0x31c   : > { %v2373_v23 = vadd.f32 %v8034_v54, %v2372_v0 }
 0x31e   : > { %v2486_v16 = vadd.f32 %v10494_v61, %v2373_v23  ;;  %2419 = vmatmul.f32.gmra.mxu1 %v2217_v17  ;;  %v2121_v61 = vsel %vm2099_vm7, %v2088_v35, %v5988_v6  ;;  %v8192_v20 = vpop.f32.mrf.mxu2 }
 0x320   : > { %2577 = vst.msk [vmem:[#allocation3 + $0x31] sm:$0xff] %vm320_vm11, %v2486_v16  ;;  %v6103_v16 = vunpack.i.h.bf16 %v10500_v40  ;;  %v2122_v40 = vsel %vm2099_vm7, %v2089_v14, %v6092_v37 }
 0x323   : > { %3442 = vrot.lane.b32.xlu2 %v2674_v34, %s6770_s19  ;;  %v2375_v51 = vpop.f32.mrf.mxu1  ;;  %v2218_v34 = vsel %vm2198_vm10, %v2185_v53, %v6313_v30  ;;  %v5993_v30 = vunpack.i.h.bf16 %v10501_v42 }
 0x324   : > { %v2376_v27 = vadd.f32 %v8034_v54, %v2375_v51 }
 0x325   : > { %v2154_v52 = vsel %vm2132_vm8, %v2121_v61, %v5993_v30  ;;  %v6098_v61 = vunpack.i.h.bf16 %v10508_v15 }
 0x326   : > { %v2489_v48 = vadd.f32 %v10499_v36, %v2376_v27  ;;  %2422 = vmatmul.f32.gmra.mxu1 %v2218_v34  ;;  %v2187_v53 = vsel %vm2165_vm9, %v2154_v52, %v6103_v16  ;;  %v5973_v34 = vunpack.i.h.bf16 %v10502_v38  ;;  %v8221_v31 = vpop.f32.mrf.mxu2 }
 0x327   : > { %v2832_v47 = vld [vmem:[#allocation3 + $0x31] sm:$0xff]  ;;  %v2220_v63 = vsel %vm2198_vm10, %v2187_v53, %v6318_v21 }
 0x328   : > { %v8154_v29 = vld [vmem:[#allocation3 + $0x30] sm:$0xff]  ;;  %2578 = vst.msk [vmem:[#allocation3 + $0x39] sm:$0xff] %vm320_vm11, %v2489_v48  ;;  %3696 = vrot.lane.b32.xlu1 %v2832_v47, %s6771_s16  ;;  %v6321_v48 = vpop.permute.xlu1 %6320  ;;  %v2024_v42 = vsel %vm277_vm2, %v6679_v7, %v5973_v34  ;;  %v10513_v34 = vld [vmem:[#allocation84_spill] sm:$0xff]  ;;  %v10515_v7 = vld [vmem:[#allocation91_spill] sm:$0xff] }
 0x329   : > { %3568 = vrot.lane.b32.xlu0 %v8154_v29, %s6761_s21  ;;  %v6322_v24 = vunpack.i.l.bf16 %v6321_v48  ;;  %v2057_v33 = vsel %vm2033_vm5, %v2024_v42, %v5978_v46  ;;  %v6323_v16 = vunpack.i.h.bf16 %v6321_v48  ;;  %v6680_v21 = vld [vmem:[#allocation2 + $0x120] sm:$0xff]  ;;  %v6182_v14 = vunpack.i.l.bf16 %v10513_v34 }
 0x32a   : > { %v2090_v38 = vsel %vm2066_vm6, %v2057_v33, %v6088_v9  ;;  %v6167_v42 = vunpack.i.l.bf16 %v10515_v7 }
 0x32b   : > { %v2378_v19 = vpop.f32.mrf.mxu1 }
 0x32c   : > { %v2379_v13 = vadd.f32 %v8034_v54, %v2378_v19  ;;  %v2155_v19 = vsel %vm2132_vm8, %v2122_v40, %v6097_v57 }
 0x32e   : > { %v2492_v0 = vadd.f32 %v10503_v60, %v2379_v13  ;;  %2425 = vmatmul.f32.gmra.mxu1 %v2219_v25  ;;  %v2123_v60 = vsel %vm2099_vm7, %v2090_v38, %v6093_v41  ;;  %v8250_v37 = vpop.f32.mrf.mxu2 }
 0x32f   : > { %v8177_v23 = vld [vmem:[#allocation3 + $0x39] sm:$0xff]  ;;  %v2156_v30 = vsel %vm2132_vm8, %v2123_v60, %v6098_v61 }
 0x330   : > { %v2675_v10 = vld [vmem:[#allocation3 + $0x32] sm:$0xff]  ;;  %v8179_v17 = vld [vmem:[#allocation3 + $0x3a] sm:$0xff]  ;;  %2579 = vst.msk [vmem:[#allocation3 + $0x49] sm:$0xff] %vm320_vm11, %v2492_v0  ;;  %v6389_v18 = vpack.i.bf16 %v8177_v23, %v2832_v47  ;;  %v6192_v47 = vunpack.i.l.bf16 %v7771_v56  ;;  %v2189_v50 = vsel %vm2165_vm9, %v2156_v30, %v6193_v8 }
 0x331   : > { %v6379_v49 = vpack.i.bf16 %v8179_v17, %v2675_v10  ;;  %v2706_v36 = vld [vmem:[#allocation3 + $0x38] sm:$0xff]  ;;  %v10509_v0 = vld [vmem:[#allocation68_spill] sm:$0xff]  ;;  %v2222_v2 = vsel %vm2198_vm10, %v2189_v50, %v6323_v16 }
 0x332   : > { %6390 = vrot.lane.b32.xlu1 %v6389_v18, %s6766_s18  ;;  %6375 = vrot.lane.b32.xlu2 %v6389_v18, %s6768_s8  ;;  %v6384_v28 = vpack.i.bf16 %v2706_v36, %v8154_v29  ;;  %v2188_v13 = vsel %vm2165_vm9, %v2155_v19, %v6192_v47  ;;  %v6077_v35 = vunpack.i.l.bf16 %v10509_v0  ;;  %v10510_v18 = vld [vmem:[#allocation77_spill] sm:$0xff]  ;;  %v10516_v8 = vld [vmem:[#allocation87_spill] sm:$0xff]  ;;  %v4193_v61 = vld [vmem:[%s10293_s5 + $0x70] sm:$0xff] }
 0x333   : > { %6380 = vrot.lane.b32.xlu0 %v6379_v49, %s6765_s17  ;;  %v2381_v51 = vpop.f32.mrf.mxu1  ;;  %v2221_v43 = vsel %vm2198_vm10, %v2188_v13, %v6322_v24  ;;  %v6082_v49 = vunpack.i.l.bf16 %v10510_v18  ;;  %v6083_v47 = vunpack.i.h.bf16 %v10510_v18  ;;  %v6682_v13 = vld [vmem:[#allocation2 + $0x138] sm:$0xff]  ;;  %v6172_v60 = vunpack.i.l.bf16 %v10516_v8 }
 0x334   : > { %v2382_v27 = vadd.f32 %v8034_v54, %v2381_v51  ;;  %v2025_v3 = vsel %vm277_vm2, %v6680_v21, %v6077_v35  ;;  %v8245_v51 = vpop.permute.xlu2 %6325  ;;  %v2027_v38 = vsel %vm277_vm2, %v6682_v13, %v6167_v42 }
 0x335   : > { %v6328_v18 = vunpack.i.h.bf16 %v8245_v51 }
 0x336   : > { %v2495_v5 = vadd.f32 %v10507_v22, %v2382_v27  ;;  %2428 = vmatmul.f32.gmra.mxu1 %v2220_v63  ;;  %v10512_v27 = vld [vmem:[#allocation93_spill] sm:$0xff]  ;;  %v10514_v63 = vld [vmem:[#allocation94_spill] sm:$0xff]  ;;  %v6078_v22 = vunpack.i.h.bf16 %v10509_v0  ;;  %v8298_v16 = vpop.f32.mrf.mxu2 }
 0x337   : > { %v8234_v58 = vld [vmem:[#allocation3 + $0x48] sm:$0xff]  ;;  %v6187_v53 = vunpack.i.l.bf16 %v10512_v27  ;;  %v6223_v0 = vunpack.i.h.bf16 %v10514_v63 }
 0x338   : > { %2580 = vst.msk [vmem:[#allocation3 + $0x51] sm:$0xff] %vm320_vm11, %v2495_v5  ;;  %v2739_v48 = vld [vmem:[#allocation3 + $0x49] sm:$0xff] }
 0x33a   : > { %3446 = vrot.lane.b32.xlu1 %v8179_v17, %s6770_s19  ;;  %3824 = vrot.lane.b32.xlu2 %v2675_v10, %s6763_s15 }
 0x33b   : > { %6385 = vrot.lane.b32.xlu0 %v6384_v28, %s6769_s14  ;;  %v2384_v29 = vpop.f32.mrf.mxu1 }
 0x33c   : > { %v2385_v6 = vadd.f32 %v8034_v54, %v2384_v29 }
 0x33e   : > { %v2498_v25 = vadd.f32 %v8094_v4, %v2385_v6  ;;  %2431 = vmatmul.f32.gmra.mxu1 %v2221_v43  ;;  %v10511_v4 = vld [vmem:[#allocation89_spill] sm:$0xff]  ;;  %v6188_v43 = vunpack.i.h.bf16 %v10512_v27  ;;  %v4191_v27 = vld [vmem:[%s10293_s5 + $0x60] sm:$0xff] }
 0x33f   : > { %v6177_v32 = vunpack.i.l.bf16 %v10511_v4  ;;  %v8248_v12 = vld [vmem:[#allocation3 + $0x51] sm:$0xff]  ;;  %v6178_v40 = vunpack.i.h.bf16 %v10511_v4  ;;  %v6212_v4 = vunpack.i.l.bf16 %v7784_v44 }
 0x340   : > { %2581 = vst.msk [vmem:[#allocation3 + $0x61] sm:$0xff] %vm320_vm11, %v2498_v25  ;;  %v8260_v5 = vpack.i.bf16 %v8248_v12, %v2739_v48  ;;  %v8277_v29 = vld [vmem:[#allocation3 + $0x4a] sm:$0xff]  ;;  %v8279_v19 = vld [vmem:[#allocation3 + $0x52] sm:$0xff]  ;;  %v6183_v25 = vunpack.i.h.bf16 %v10513_v34  ;;  %v8324_v34 = vpop.permute.xlu0 %6330 }
 0x341   : > { %v6399_v35 = vpack.i.bf16 %v8279_v19, %v8277_v29 }
 0x342   : > { %3570 = vrot.lane.b32.xlu1 %v2706_v36, %s6761_s21  ;;  %3572 = vrot.lane.b32.xlu2 %v8234_v58, %s6761_s21  ;;  %v6222_v36 = vunpack.i.l.bf16 %v10514_v63  ;;  %v6683_v63 = vld [vmem:[#allocation2 + $0x140] sm:$0xff] }
 0x343   : > { %3444 = vrot.lane.b32.xlu0 %v2675_v10, %s6770_s19  ;;  %v2387_v56 = vpop.f32.mrf.mxu1  ;;  %v2058_v10 = vsel %vm2033_vm5, %v2025_v3, %v6082_v49  ;;  %v2060_v49 = vsel %vm2033_vm5, %v2027_v38, %v6172_v60  ;;  %v4192_v3 = vld [vmem:[%s10293_s5 + $0x68] sm:$0xff] }
 0x344   : > { %v2388_v62 = vadd.f32 %v8034_v54, %v2387_v56  ;;  %v2091_v11 = vsel %vm2066_vm6, %v2058_v10, %v6177_v32  ;;  %v10517_v56 = vld [vmem:[#allocation88_spill] sm:$0xff] }
 0x345   : > { %v2124_v28 = vsel %vm2099_vm7, %v2091_v11, %v6182_v14  ;;  %v6207_v30 = vunpack.i.l.bf16 %v10517_v56  ;;  %v8318_v11 = vld [vmem:[#allocation3 + $0x50] sm:$0xff] }
 0x346   : > { %v2501_v52 = vadd.f32 %v8116_v59, %v2388_v62  ;;  %2434 = vmatmul.f32.gmra.mxu1 %v2222_v2  ;;  %v6327_v59 = vunpack.i.l.bf16 %v8245_v51  ;;  %v2157_v57 = vsel %vm2132_vm8, %v2124_v28, %v6187_v53  ;;  %v6168_v62 = vunpack.i.h.bf16 %v10515_v7 }
 0x347   : > { %v2190_v24 = vsel %vm2165_vm9, %v2157_v57, %v6222_v36  ;;  %v2093_v51 = vsel %vm2066_vm6, %v2060_v49, %v6207_v30  ;;  %v6404_v28 = vpack.i.bf16 %v8318_v11, %v8234_v58  ;;  %v6332_v7 = vunpack.i.l.bf16 %v8324_v34  ;;  %v8348_v58 = vld [vmem:[#allocation3 + $0x61] sm:$0xff] }
 0x348   : > { %2582 = vst.msk [vmem:[#allocation3 + $0x69] sm:$0xff] %vm320_vm11, %v2501_v52  ;;  %v2126_v53 = vsel %vm2099_vm7, %v2093_v51, %v6212_v4  ;;  %v2028_v36 = vsel %vm277_vm2, %v6683_v63, %v6168_v62  ;;  %v4185_v4 = vld [vmem:[%s10293_s5 + $0x30] sm:$0xff]  ;;  %v10523_v63 = vld [vmem:[#allocation47_spill] sm:$0xff] }
 0x34a   : > { %3826 = vrot.lane.b32.xlu1 %v8179_v17, %s6763_s15  ;;  %6410 = vrot.lane.b32.xlu2 %v8260_v5, %s6766_s18  ;;  %v6681_v17 = vld [vmem:[#allocation2 + $0x128] sm:$0xff] }
 0x34b   : > { %3698 = vrot.lane.b32.xlu0 %v8177_v23, %s6771_s16  ;;  %v2390_v15 = vpop.f32.mrf.mxu1  ;;  %v2026_v46 = vsel %vm277_vm2, %v6681_v17, %v6078_v22  ;;  %v2223_v23 = vsel %vm2198_vm10, %v2190_v24, %v6327_v59  ;;  %v4190_v59 = vld [vmem:[%s10293_s5 + $0x58] sm:$0xff]  ;;  %v6213_v24 = vunpack.i.h.bf16 %v7784_v44  ;;  %v8350_v17 = vpop.f32.mrf.mxu2 }
 0x34c   : > { %v2391_v9 = vadd.f32 %v8034_v54, %v2390_v15  ;;  %v2059_v41 = vsel %vm2033_vm5, %v2026_v46, %v6083_v47  ;;  %v6173_v47 = vunpack.i.h.bf16 %v10516_v8  ;;  %v10519_v15 = vld [vmem:[#allocation43_spill] sm:$0xff]  ;;  %v6208_v46 = vunpack.i.h.bf16 %v10517_v56 }
 0x34d   : > { %v2092_v6 = vsel %vm2066_vm6, %v2059_v41, %v6178_v40  ;;  %v1103_v40 = vld [vmem:[#allocation2 + $0x19a] sm:$0xff]  ;;  %v5907_v57 = vunpack.i.l.bf16 %v10519_v15  ;;  %v6333_v56 = vunpack.i.h.bf16 %v8324_v34 }
 0x34e   : > { %v2504_v33 = vadd.f32 %v8137_v26, %v2391_v9  ;;  %2437 = vmatmul.f32.gmra.mxu1 %v2223_v23  ;;  %v4194_v26 = vld [vmem:[%s10293_s5 + $0x78] sm:$0xff]  ;;  %v2125_v32 = vsel %vm2099_vm7, %v2092_v6, %v6183_v25  ;;  %5675 = vmatmul.msk.f32.gmra.mxu2 %vm277_vm2, %v1103_v40  ;;  %v2061_v9 = vsel %vm2033_vm5, %v2028_v36, %v6173_v47  ;;  %v10520_v23 = vld [vmem:[#allocation90_spill] sm:$0xff]  ;;  %v5897_v36 = vunpack.i.l.bf16 %v10523_v63  ;;  %v8415_v40 = vld [vmem:[#allocation3 + $0x60] sm:$0xff] }
 0x34f   : > { %4307 = vmatpush.msrb.mxu3 %v4194_v26  ;;  %v2158_v21 = vsel %vm2132_vm8, %v2125_v32, %v6188_v43  ;;  %v6197_v41 = vunpack.i.l.bf16 %v10520_v23  ;;  %v2094_v13 = vsel %vm2066_vm6, %v2061_v9, %v6208_v46  ;;  %v8365_v8 = vld [vmem:[#allocation3 + $0x62] sm:$0xff]  ;;  %v8367_v60 = vld [vmem:[#allocation3 + $0x6a] sm:$0xff]  ;;  %v1104_v32 = vld [vmem:[#allocation2 + $0x1a2] sm:$0xff] }
 0x350   : > { %2583 = vst.msk [vmem:[#allocation3 + $0x79] sm:$0xff] %vm320_vm11, %v2504_v33  ;;  %v2191_v10 = vsel %vm2165_vm9, %v2158_v21, %v6223_v0  ;;  %v2127_v43 = vsel %vm2099_vm7, %v2094_v13, %v6213_v24  ;;  %v4187_v0 = vld [vmem:[%s10293_s5 + $0x40] sm:$0xff]  ;;  %v6419_v30 = vpack.i.bf16 %v8367_v60, %v8365_v8  ;;  %v4205_v9 = vld [vmem:[%s10293_s5 + $0xd0] sm:$0xff] }
 0x351   : > { %4308 = vmatpush.msrb.mxu3 %v4193_v61  ;;  %v2224_v52 = vsel %vm2198_vm10, %v2191_v10, %v6328_v18  ;;  %v10521_v18 = vld [vmem:[#allocation86_spill] sm:$0xff]  ;;  %v6198_v10 = vunpack.i.h.bf16 %v10520_v23  ;;  %v8431_v23 = vpop.permute.xlu2 %6340  ;;  %4425 = vmatpush.msrb.mxu0 %v4205_v9 }
 0x352   : > { %6400 = vrot.lane.b32.xlu1 %v6399_v35, %s6765_s17  ;;  %3448 = vrot.lane.b32.xlu2 %v8277_v29, %s6770_s19  ;;  %v6684_v35 = vld [vmem:[#allocation2 + $0x150] sm:$0xff]  ;;  %v6202_v49 = vunpack.i.l.bf16 %v10521_v18  ;;  %v4183_v47 = vld [vmem:[%s10293_s5 + $0x20] sm:$0xff] }
 0x353   : > { %3700 = vrot.lane.b32.xlu0 %v2739_v48, %s6771_s16  ;;  %v2393_v50 = vpop.f32.mrf.mxu1  ;;  %4309 = vmatpush.msrb.mxu3 %v4192_v3  ;;  %v10518_v48 = vld [vmem:[#allocation92_spill] sm:$0xff]  ;;  %v2029_v26 = vsel %vm277_vm2, %v6684_v35, %v6197_v41  ;;  %v10522_v3 = vld [vmem:[#allocation54_spill] sm:$0xff] }
 0x354   : > { %v2394_v2 = vadd.f32 %v8034_v54, %v2393_v50  ;;  %v6217_v22 = vunpack.i.l.bf16 %v10518_v48  ;;  %v6218_v61 = vunpack.i.h.bf16 %v10518_v48  ;;  %v5908_v50 = vunpack.i.h.bf16 %v10519_v15  ;;  %v8406_v48 = vpop.permute.xlu1 %6335  ;;  %v4182_v15 = vld [vmem:[%s10293_s5 + $0x18] sm:$0xff]  ;;  %v10524_v24 = vld [vmem:[#allocation42_spill] sm:$0xff] }
 0x355   : > { %4310 = vmatpush.msrb.mxu3 %v4191_v27  ;;  %v2062_v21 = vsel %vm2033_vm5, %v2029_v26, %v6202_v49  ;;  %v5902_v46 = vunpack.i.l.bf16 %v10524_v24  ;;  %v6337_v41 = vunpack.i.l.bf16 %v8406_v48  ;;  %v5898_v26 = vunpack.i.h.bf16 %v10523_v63  ;;  %v4203_v49 = vld [vmem:[%s10293_s5 + $0xc0] sm:$0xff] }
 0x356   : > { %v2507_v14 = vadd.f32 %v8163_v39, %v2394_v2  ;;  %2440 = vmatmul.f32.gmra.mxu1 %v2224_v52  ;;  %v4189_v39 = vld [vmem:[%s10293_s5 + $0x50] sm:$0xff]  ;;  %v2159_v42 = vsel %vm2132_vm8, %v2126_v53, %v6217_v22  ;;  %v2160_v62 = vsel %vm2132_vm8, %v2127_v43, %v6218_v61  ;;  %5676 = vmatmul.msk.f32.gmra.mxu2 %vm277_vm2, %v1104_v32  ;;  %v5892_v2 = vunpack.i.l.bf16 %v10522_v3  ;;  %v4184_v53 = vld [vmem:[%s10293_s5 + $0x28] sm:$0xff] }
 0x357   : > { %4311 = vmatpush.msrb.mxu3 %v4190_v59  ;;  %v2192_v6 = vsel %vm2165_vm9, %v2159_v42, %v5907_v57  ;;  %v2193_v27 = vsel %vm2165_vm9, %v2160_v62, %v5908_v50  ;;  %v8409_v59 = vld [vmem:[#allocation3 + $0x68] sm:$0xff]  ;;  %v6247_v42 = vunpack.i.l.bf16 %v7797_v55  ;;  %v4181_v57 = vld [vmem:[%s10293_s5 + $0x10] sm:$0xff]  ;;  %v6248_v62 = vunpack.i.h.bf16 %v7797_v55 }
 0x358   : > { %2584 = vst.msk [vmem:[#allocation3 + $0x81] sm:$0xff] %vm320_vm11, %v2507_v14  ;;  %v2225_v38 = vsel %vm2198_vm10, %v2192_v6, %v6332_v7  ;;  %v2226_v34 = vsel %vm2198_vm10, %v2193_v27, %v6333_v56  ;;  %v2095_v14 = vsel %vm2066_vm6, %v2062_v21, %v5892_v2  ;;  %v6203_v7 = vunpack.i.h.bf16 %v10521_v18  ;;  %v4179_v18 = vld [vmem:[%s10293_s5] sm:$0xff]  ;;  %v10526_v56 = vld [vmem:[#allocation52_spill] sm:$0xff]  ;;  %v4202_v50 = vld [vmem:[%s10293_s5 + $0xb8] sm:$0xff] }
 0x359   : > { %4312 = vmatpush.msrb.mxu3 %v4189_v39  ;;  %v5893_v6 = vunpack.i.h.bf16 %v10522_v3  ;;  %v4201_v21 = vld [vmem:[%s10293_s5 + $0xb0] sm:$0xff]  ;;  %v5903_v3 = vunpack.i.h.bf16 %v10524_v24  ;;  %v10527_v2 = vld [vmem:[#allocation65_spill] sm:$0xff] }
 0x35a   : > { %6405 = vrot.lane.b32.xlu1 %v6404_v28, %s6769_s14  ;;  %3704 = vrot.lane.b32.xlu2 %v8348_v58, %s6771_s16  ;;  %v6685_v28 = vld [vmem:[#allocation2 + $0x158] sm:$0xff] }
 0x35b   : > { %6395 = vrot.lane.b32.xlu0 %v8260_v5, %s6768_s8  ;;  %v2396_v33 = vpop.f32.mrf.mxu1  ;;  %v4188_v5 = vld [vmem:[%s10293_s5 + $0x48] sm:$0xff]  ;;  %v2030_v39 = vsel %vm277_vm2, %v6685_v28, %v6198_v10  ;;  %v6002_v10 = vunpack.i.l.bf16 %v10527_v2 }
 0x35c   : > { %v2397_v44 = vadd.f32 %v8034_v54, %v2396_v33  ;;  %4313 = vmatpush.msrb.mxu3 %v4188_v5  ;;  %v6424_v33 = vpack.i.bf16 %v8409_v59, %v8415_v40  ;;  %v10528_v28 = vld [vmem:[#allocation55_spill] sm:$0xff] }
 0x35e   : > { %v2510_v25 = vadd.f32 %v8192_v20, %v2397_v44  ;;  %2443 = vmatmul.f32.gmra.mxu1 %v2225_v38  ;;  %4314 = vmatpush.msrb.mxu3 %v4187_v0  ;;  %v4186_v20 = vld [vmem:[%s10293_s5 + $0x38] sm:$0xff]  ;;  %v2063_v44 = vsel %vm2033_vm5, %v2030_v39, %v6203_v7  ;;  %v6007_v39 = vunpack.i.l.bf16 %v10528_v28 }
 0x35f   : > { %v2096_v35 = vsel %vm2066_vm6, %v2063_v44, %v5893_v6 }
 0x360   : > { %2585 = vst.msk [vmem:[#allocation3 + $0x91] sm:$0xff] %vm320_vm11, %v2510_v25  ;;  %4315 = vmatpush.msrb.mxu3 %v4186_v20  ;;  %v4180_v25 = vld [vmem:[%s10293_s5 + $0x8] sm:$0xff]  ;;  %v10525_v20 = vld [vmem:[#allocation41_spill] sm:$0xff] }
 0x362   : > { %3828 = vrot.lane.b32.xlu1 %v8277_v29, %s6763_s15  ;;  %6420 = vrot.lane.b32.xlu2 %v6419_v30, %s6765_s17  ;;  %v8401_v29 = vpop.f32.mrf.mxu2  ;;  %v5887_v30 = vunpack.i.l.bf16 %v10526_v56 }
 0x363   : > { %3450 = vrot.lane.b32.xlu0 %v8279_v19, %s6770_s19  ;;  %v2399_v51 = vpop.f32.mrf.mxu1  ;;  %4316 = vmatpush.msrb.mxu3 %v4185_v4  ;;  %v5882_v4 = vunpack.i.l.bf16 %v10525_v20 }
 0x364   : > { %v2400_v52 = vadd.f32 %v8034_v54, %v2399_v51  ;;  %v6338_v51 = vunpack.i.h.bf16 %v8406_v48 }
 0x365   : > { %4317 = vmatpush.msrb.mxu3 %v4184_v53 }
 0x366   : > { %v2513_v22 = vadd.f32 %v8221_v31, %v2400_v52  ;;  %2446 = vmatmul.f32.gmra.mxu1 %v2226_v34  ;;  %v2128_v31 = vsel %vm2099_vm7, %v2095_v14, %v5897_v36  ;;  %v6686_v52 = vld [vmem:[#allocation2 + $0x168] sm:$0xff] }
 0x367   : > { %4318 = vmatpush.msrb.mxu3 %v4183_v47  ;;  %v2161_v13 = vsel %vm2132_vm8, %v2128_v31, %v5902_v46  ;;  %v2031_v27 = vsel %vm277_vm2, %v6686_v52, %v5882_v4  ;;  %v2648_v47 = vld [vmem:[#allocation3 + $0x69] sm:$0xff]  ;;  %v5883_v31 = vunpack.i.h.bf16 %v10525_v20  ;;  %v4197_v46 = vld [vmem:[%s10293_s5 + $0x90] sm:$0xff]  ;;  %v6008_v4 = vunpack.i.h.bf16 %v10528_v28 }
 0x368   : > { %2586 = vst.msk [vmem:[#allocation3 + $0x99] sm:$0xff] %vm320_vm11, %v2513_v22  ;;  %v2194_v43 = vsel %vm2165_vm9, %v2161_v13, %v6247_v42  ;;  %v2064_v14 = vsel %vm2033_vm5, %v2031_v27, %v5887_v30  ;;  %v4199_v42 = vld [vmem:[%s10293_s5 + $0xa0] sm:$0xff] }
 0x369   : > { %4319 = vmatpush.msrb.mxu3 %v4182_v15  ;;  %v2227_v0 = vsel %vm2198_vm10, %v2194_v43, %v6337_v41  ;;  %v2097_v48 = vsel %vm2066_vm6, %v2064_v14, %v6002_v10  ;;  %v5888_v15 = vunpack.i.h.bf16 %v10526_v56  ;;  %v6003_v41 = vunpack.i.h.bf16 %v10527_v2  ;;  %v4195_v30 = vld [vmem:[%s10293_s5 + $0x80] sm:$0xff] }
 0x36a   : > { %3830 = vrot.lane.b32.xlu1 %v8279_v19, %s6763_s15  ;;  %6425 = vrot.lane.b32.xlu2 %v6424_v33, %s6769_s14  ;;  %v4204_v19 = vld [vmem:[%s10293_s5 + $0xc8] sm:$0xff]  ;;  %v8463_v32 = vpop.f32.mrf.mxu2  ;;  %v2130_v24 = vsel %vm2099_vm7, %v2097_v48, %v6007_v39  ;;  %v10529_v33 = vld [vmem:[#allocation66_spill] sm:$0xff] }
 0x36b   : > { %3574 = vrot.lane.b32.xlu0 %v8318_v11, %s6761_s21  ;;  %v2402_v5 = vpop.f32.mrf.mxu1  ;;  %4320 = vmatpush.msrb.mxu3 %v4181_v57  ;;  %v6262_v57 = vunpack.i.l.bf16 %v7814_v45  ;;  %v6012_v44 = vunpack.i.l.bf16 %v10529_v33  ;;  %v2743_v48 = vld [vmem:[#allocation3 + $0x79] sm:$0xff] }
 0x36c   : > { %v2403_v38 = vadd.f32 %v8034_v54, %v2402_v5  ;;  %4426 = vmatpush.msrb.mxu0 %v4204_v19  ;;  %v6342_v5 = vunpack.i.l.bf16 %v8431_v23 }
 0x36d   : > { %4321 = vmatpush.msrb.mxu3 %v4180_v25  ;;  %v8478_v55 = vpop.permute.xlu2 %6360  ;;  %v2163_v25 = vsel %vm2132_vm8, %v2130_v24, %v6012_v44 }
 0x36e   : > { %v2516_v61 = vadd.f32 %v8250_v37, %v2403_v38  ;;  %2449 = vmatmul.f32.gmra.mxu1 %v2227_v0  ;;  %4427 = vmatpush.msrb.mxu0 %v4203_v49  ;;  %v2129_v37 = vsel %vm2099_vm7, %v2096_v35, %v5898_v26  ;;  %v8527_v0 = vpop.permute.xlu1 %6350  ;;  %v2196_v26 = vsel %vm2165_vm9, %v2163_v25, %v6262_v57 }
 0x36f   : > { %4322 = vmatpush.msrb.mxu3 %v4179_v18  ;;  %v2162_v34 = vsel %vm2132_vm8, %v2129_v37, %v5903_v3  ;;  %v2229_v20 = vsel %vm2198_vm10, %v2196_v26, %v6342_v5 }
 0x370   : > { %2587 = vst.msk [vmem:[#allocation3 + $0xa9] sm:$0xff] %vm320_vm11, %v2516_v61  ;;  %4428 = vmatpush.msrb.mxu0 %v4202_v50  ;;  %v2195_v36 = vsel %vm2165_vm9, %v2162_v34, %v6248_v62  ;;  %v4196_v61 = vld [vmem:[%s10293_s5 + $0x88] sm:$0xff]  ;;  %v6263_v62 = vunpack.i.h.bf16 %v7814_v45 }
 0x371   : > { %5719 = vmatpush.msra.mxu3 %v4205_v9  ;;  %v2228_v22 = vsel %vm2198_vm10, %v2195_v36, %v6338_v51  ;;  %v6414_v9 = vpack.i.bf16 %v2648_v47, %v8348_v58  ;;  %v6687_v58 = vld [vmem:[#allocation2 + $0x170] sm:$0xff]  ;;  %v6352_v51 = vunpack.i.l.bf16 %v8527_v0 }
 0x372   : > { %3576 = vrot.lane.b32.xlu1 %v8415_v40, %s6761_s21  ;;  %3454 = vrot.lane.b32.xlu2 %v8367_v60, %s6770_s19  ;;  %v8515_v6 = vpop.f32.mrf.mxu2  ;;  %v2032_v13 = vsel %vm277_vm2, %v6687_v58, %v5883_v31  ;;  %v2776_v58 = vld [vmem:[#allocation3 + $0x82] sm:$0xff] }
 0x373   : > { %3702 = vrot.lane.b32.xlu0 %v8248_v12, %s6771_s16  ;;  %v2405_v53 = vpop.f32.mrf.mxu1  ;;  %4429 = vmatpush.msrb.mxu0 %v4201_v21  ;;  %v4200_v12 = vld [vmem:[%s10293_s5 + $0xa8] sm:$0xff] }
 0x374   : > { %v2406_v63 = vadd.f32 %v8034_v54, %v2405_v53  ;;  %5720 = vmatpush.msra.mxu3 %v4204_v19  ;;  %v2065_v19 = vsel %vm2033_vm5, %v2032_v13, %v5888_v15  ;;  %v8580_v15 = vld [vmem:[%s10292_s4] ss:$0 sm:$0xff]  ;;  %v8591_v13 = vld [vmem:[#allocation3 + $0x78] sm:$0xff] }
 0x375   : > { %4430 = vmatpush.msrb.mxu0 %v4200_v12  ;;  %v8521_v38 = vpop.permute.xlu2 %6365  ;;  %v2098_v18 = vsel %vm2066_vm6, %v2065_v19, %v6003_v41 }
 0x376   : > { %v2519_v7 = vadd.f32 %v8298_v16, %v2406_v63  ;;  %2452 = vmatmul.f32.gmra.mxu1 %v2228_v22  ;;  %5721 = vmatpush.msra.mxu3 %v4203_v49  ;;  %v4198_v16 = vld [vmem:[%s10293_s5 + $0x98] sm:$0xff]  ;;  %v6346_v49 = vpop.permute.xlu0 %6345  ;;  %v2131_v37 = vsel %vm2099_vm7, %v2098_v18, %v6008_v4 }
 0x377   : > { %4431 = vmatpush.msrb.mxu0 %v4199_v42  ;;  %v6347_v3 = vunpack.i.l.bf16 %v6346_v49  ;;  %v8563_v63 = vld [vmem:[#allocation3 + $0x81] sm:$0xff] }
 0x378   : > { %2588 = vst.msk [vmem:[#allocation3 + $0xb1] sm:$0xff] %vm320_vm11, %v2519_v7  ;;  %5722 = vmatpush.msra.mxu3 %v4202_v50  ;;  %v6013_v50 = vunpack.i.h.bf16 %v10529_v33  ;;  %v2608_v22 = vld [vmem:[#allocation3 + $0x8] sm:$0xff]  ;;  %v6449_v39 = vpack.i.bf16 %v8563_v63, %v2743_v48  ;;  %v6353_v7 = vunpack.i.h.bf16 %v8527_v0 }
 0x379   : > { %4432 = vmatpush.msrb.mxu0 %v4198_v16 }
 0x37a   : > { %6415 = vrot.lane.b32.xlu1 %v6414_v9, %s6768_s8  ;;  %3578 = vrot.lane.b32.xlu2 %v8409_v59, %s6761_s21  ;;  %v8550_v2 = vpop.f32.mrf.mxu2  ;;  %v2164_v10 = vsel %vm2132_vm8, %v2131_v37, %v6013_v50 }
 0x37b   : > { %6430 = vrot.lane.b32.xlu0 %v6414_v9, %s6766_s18  ;;  %v2408_v43 = vpop.f32.mrf.mxu1  ;;  %4433 = vmatpush.msrb.mxu0 %v4197_v46  ;;  %v2197_v27 = vsel %vm2165_vm9, %v2164_v10, %v6263_v62 }
 0x37c   : > { %v2409_v35 = vadd.f32 %v8034_v54, %v2408_v43  ;;  %5723 = vmatpush.msra.mxu3 %v4201_v21  ;;  %v6343_v21 = vunpack.i.h.bf16 %v8431_v23 }
 0x37d   : > { %4434 = vmatpush.msrb.mxu0 %v4196_v61  ;;  %v8560_v34 = vpop.permute.xlu2 %3442 }
 0x37e   : > { %v2522_v56 = vadd.f32 %v8350_v17, %v2409_v35  ;;  %2455 = vmatmul.f32.gmra.mxu1 %v2229_v20  ;;  %5724 = vmatpush.msra.mxu3 %v4200_v12  ;;  %v2607_v17 = vld [vmem:[#allocation3] sm:$0xff]  ;;  %v2230_v14 = vsel %vm2198_vm10, %v2197_v27, %v6343_v21  ;;  %v6348_v12 = vunpack.i.h.bf16 %v6346_v49 }
 0x37f   : > { %4435 = vmatpush.msrb.mxu0 %v4195_v30  ;;  %v3920_v53 = vsel %vm320_vm11, %v2607_v17, %v6347_v3  ;;  %v2681_v35 = vld [vmem:[#allocation3 + $0x7a] sm:$0xff] }
 0x380   : > { %2589 = vst.msk [vmem:[#allocation3 + $0xc1] sm:$0xff] %vm320_vm11, %v2522_v56  ;;  %5725 = vmatpush.msra.mxu3 %v4199_v42  ;;  %v6439_v18 = vpack.i.bf16 %v2776_v58, %v2681_v35  ;;  %v8604_v49 = vld [vmem:[#allocation3 + $0x80] sm:$0xff] }
 0x381   : > { %v6444_v3 = vpack.i.bf16 %v8604_v49, %v8591_v13 }
 0x382   : > { %3452 = vrot.lane.b32.xlu1 %v8365_v8, %s6770_s19  ;;  %3706 = vrot.lane.b32.xlu2 %v2648_v47, %s6771_s16  ;;  %v3952_v47 = vsel %vm2066_vm6, %v3920_v53, %v6352_v51 }
 0x383   : > { %3832 = vrot.lane.b32.xlu0 %v8365_v8, %s6763_s15  ;;  %v2411_v45 = vpop.f32.mrf.mxu1  ;;  %5726 = vmatpush.msra.mxu3 %v4198_v16  ;;  %v2536_v16 = vpop.f32.mrf.mxu2 }
 0x384   : > { %v2412_v23 = vadd.f32 %v8034_v54, %v2411_v45  ;;  %v8556_v52 = vpop.permute.xlu1 %6355  ;;  %v6371_v8 = vpop.permute.xlu0 %6370  ;;  %v6367_v54 = vunpack.i.l.bf16 %v8521_v38  ;;  %v8624_v45 = vld [vmem:[#allocation3 + $0x90] sm:$0xff] }
 0x385   : > { %5727 = vmatpush.msra.mxu3 %v4197_v46  ;;  %v6372_v28 = vunpack.i.l.bf16 %v6371_v8  ;;  %v6373_v33 = vunpack.i.h.bf16 %v6371_v8  ;;  %v8633_v8 = vld [vmem:[#allocation3 + $0x99] sm:$0xff] }
 0x386   : > { %v2525_v36 = vadd.f32 %v8401_v29, %v2412_v23  ;;  %2458 = vmatmul.f32.gmra.mxu1 %v2230_v14  ;;  %v3921_v29 = vsel %vm320_vm11, %v2608_v22, %v6348_v12  ;;  %v3985_v31 = vsel %vm3984_vm14, %v3952_v47, %v6367_v54  ;;  %v2840_v14 = vld [vmem:[#allocation3 + $0x91] sm:$0xff] }
 0x387   : > { %5728 = vmatpush.msra.mxu3 %v4196_v61  ;;  %v4017_v24 = vsel %vm2165_vm9, %v3985_v31, %v6372_v28  ;;  %v3953_v5 = vsel %vm2066_vm6, %v3921_v29, %v6353_v7  ;;  %v6689_v28 = vld [vmem:[#allocation3 + $0x18] sm:$0xff] }
 0x388   : > { %2590 = vst.msk [vmem:[#allocation3 + $0xc9] sm:$0xff] %vm320_vm11, %v2525_v36  ;;  %v6469_v36 = vpack.i.bf16 %v8633_v8, %v2840_v14  ;;  %v2684_v31 = vld [vmem:[#allocation3 + $0x9a] sm:$0xff] }
 0x389   : > { %5729 = vmatpush.msra.mxu3 %v4195_v30 }
 0x38a   : > { %6450 = vrot.lane.b32.xlu1 %v6449_v39, %s6766_s18  ;;  %3708 = vrot.lane.b32.xlu2 %v2743_v48, %s6771_s16 }
 0x38b   : > { %3834 = vrot.lane.b32.xlu0 %v8367_v60, %s6763_s15  ;;  %v2414_v42 = vpop.f32.mrf.mxu1  ;;  %v6368_v60 = vunpack.i.h.bf16 %v8521_v38  ;;  %v2539_v61 = vpop.f32.mrf.mxu2 }
 0x38c   : > { %v2415_v57 = vadd.f32 %v8580_v15, %v2414_v42  ;;  %v3441_v9 = vpop.permute.xlu1 %3440  ;;  %v8585_v46 = vpop.permute.xlu2 %6375  ;;  %v2683_v42 = vld [vmem:[#allocation3 + $0x92] sm:$0xff] }
 0x38d   : > { %v4050_v41 = vsel %vm4049_vm15, %v4017_v24, %v3441_v9  ;;  %v3986_v43 = vsel %vm3984_vm14, %v3953_v5, %v6368_v60  ;;  %v6358_v24 = vunpack.i.h.bf16 %v8556_v52 }
 0x38e   : > { %v2528_v44 = vadd.f32 %v8463_v32, %v2415_v57  ;;  %4323 = vmatmul.f32.vlgmr.msrb.gmra.mxu3 %v4050_v41  ;;  %v4018_v38 = vsel %vm2165_vm9, %v3986_v43, %v6373_v33  ;;  %v6362_v57 = vunpack.i.l.bf16 %v8478_v55 }
 0x38f   : > { %v4051_v0 = vsel %vm4049_vm15, %v4018_v38, %v8560_v34 }
 0x390   : > { %2591 = vst.msk [vmem:[#allocation3 + $0xd9] sm:$0xff] %vm320_vm11, %v2528_v44  ;;  %v6690_v44 = vld [vmem:[#allocation3 + $0x20] sm:$0xff] }
 0x391   : > { %v3923_v5 = vsel %vm320_vm11, %v6690_v44, %v6358_v24 }
 0x392   : > { %3458 = vrot.lane.b32.xlu1 %v2776_v58, %s6770_s19  ;;  %6435 = vrot.lane.b32.xlu2 %v6449_v39, %s6768_s8 }
 0x393   : > { %3580 = vrot.lane.b32.xlu0 %v8591_v13, %s6761_s21  ;;  %v2417_v32 = vpop.f32.mrf.mxu1  ;;  %v2542_v17 = vpop.f32.mrf.mxu2 }
 0x394   : > { %v2418_v25 = vadd.f32 %v8580_v15, %v2417_v32  ;;  %v3825_v19 = vpop.permute.xlu2 %3824 }
 0x396   : > { %v2531_v26 = vadd.f32 %v8515_v6, %v2418_v25  ;;  %4326 = vmatmul.f32.gmra.mxu3 %v4051_v0 }
 0x398   : > { %2592 = vst.msk [vmem:[#allocation3 + $0xe1] sm:$0xff] %vm320_vm11, %v2531_v26 }
 0x39a   : > { %v3697_v20 = vpop.permute.xlu1 %3696  ;;  %3582 = vrot.lane.b32.xlu1 %v8604_v49, %s6761_s21  ;;  %3838 = vrot.lane.b32.xlu2 %v2776_v58, %s6763_s15 }
 0x39b   : > { %v3569_v4 = vpop.permute.xlu0 %3568  ;;  %6440 = vrot.lane.b32.xlu0 %v6439_v18, %s6765_s17  ;;  %v2420_v6 = vpop.f32.mrf.mxu1 }
 0x39c   : > { %v4082_v56 = vsel %vm277_vm2, %v3441_v9, %v3569_v4  ;;  %v2421_v62 = vadd.f32 %v8580_v15, %v2420_v6  ;;  %v8613_v37 = vpop.permute.xlu2 %3572  ;;  %v2545_v12 = vpop.f32.mrf.mxu2 }
 0x39d   : > { %v4115_v30 = vsel %vm4114_vm0, %v4082_v56, %v3697_v20 }
 0x39e   : > { %v4147_v50 = vsel %vm2099_vm7, %v4115_v30, %v3825_v19  ;;  %v2534_v21 = vadd.f32 %v8550_v2, %v2421_v62 }
 0x39f   : > { %5677 = vmatmul.msk.f32.vlgmr.msrb.gmra.mxu0 %vm4210_vm1, %v4147_v50 }
 0x3a0   : > { %2593 = vst.msk [vmem:[#allocation3 + $0xf1] sm:$0xff] %vm320_vm11, %v2534_v21 }
 0x3a2   : > { %3710 = vrot.lane.b32.xlu1 %v8563_v63, %s6771_s16  ;;  %3584 = vrot.lane.b32.xlu2 %v8624_v45, %s6761_s21  ;;  %v6357_v63 = vunpack.i.l.bf16 %v8556_v52  ;;  %v6363_v52 = vunpack.i.h.bf16 %v8478_v55 }
 0x3a3   : > { %6445 = vrot.lane.b32.xlu0 %v6444_v3, %s6769_s14  ;;  %v2423_v10 = vpop.f32.mrf.mxu1 }
 0x3a4   : > { %v2424_v2 = vadd.f32 %v8580_v15, %v2423_v10  ;;  %v6391_v51 = vpop.permute.xlu1 %6390  ;;  %v8631_v27 = vpop.permute.xlu2 %6410  ;;  %v3922_v39 = vsel %vm320_vm11, %v6689_v28, %v6357_v63  ;;  %v3955_v20 = vsel %vm2066_vm6, %v3923_v5, %v6363_v52  ;;  %v8698_v28 = vld [vmem:[#allocation3 + $0xb2] sm:$0xff] }
 0x3a5   : > { %v8629_v23 = vpop.permute.xlu0 %6380  ;;  %v3954_v60 = vsel %vm2066_vm6, %v3922_v39, %v6362_v57  ;;  %v6392_v33 = vunpack.i.l.bf16 %v6391_v51  ;;  %v2548_v0 = vpop.f32.mrf.mxu2  ;;  %v6393_v4 = vunpack.i.h.bf16 %v6391_v51  ;;  %v6377_v39 = vunpack.i.l.bf16 %v8585_v46  ;;  %v2654_v5 = vld [vmem:[#allocation3 + $0xb1] sm:$0xff] }
 0x3a6   : > { %v2537_v53 = vadd.f32 %v2536_v16, %v2424_v2  ;;  %v6459_v16 = vpack.i.bf16 %v2684_v31, %v2683_v42  ;;  %v8719_v52 = vld [vmem:[#allocation3 + $0xb0] sm:$0xff] }
 0x3a8   : > { %2594 = vst.msk [vmem:[#allocation3 + $0xf9] sm:$0xff] %vm320_vm11, %v2537_v53 }
 0x3aa   : > { %3712 = vrot.lane.b32.xlu1 %v2840_v14, %s6771_s16  ;;  %6470 = vrot.lane.b32.xlu2 %v6469_v36, %s6766_s18 }
 0x3ab   : > { %3456 = vrot.lane.b32.xlu0 %v2681_v35, %s6770_s19  ;;  %v2426_v54 = vpop.f32.mrf.mxu1 }
 0x3ac   : > { %v2427_v48 = vadd.f32 %v8580_v15, %v2426_v54  ;;  %v8642_v22 = vpop.permute.xlu1 %3446  ;;  %v8645_v29 = vpop.permute.xlu2 %3448 }
 0x3ad   : > { %v6386_v47 = vpop.permute.xlu0 %6385  ;;  %v2551_v14 = vpop.f32.mrf.mxu2 }
 0x3ae   : > { %v6387_v7 = vunpack.i.l.bf16 %v6386_v47  ;;  %v2540_v9 = vadd.f32 %v2539_v61, %v2427_v48  ;;  %v6388_v58 = vunpack.i.h.bf16 %v6386_v47  ;;  %v8665_v61 = vld [vmem:[#allocation3 + $0x98] sm:$0xff]  ;;  %v8696_v47 = vld [vmem:[#allocation3 + $0xaa] sm:$0xff] }
 0x3af   : > { %v6464_v56 = vpack.i.bf16 %v8665_v61, %v8624_v45 }
 0x3b0   : > { %2595 = vst.msk [vmem:[#allocation3 + $0x109] sm:$0xff] %vm320_vm11, %v2540_v9  ;;  %v3987_v41 = vsel %vm3984_vm14, %v3954_v60, %v6387_v7  ;;  %v3988_v55 = vsel %vm3984_vm14, %v3955_v20, %v6388_v58  ;;  %v8702_v7 = vld [vmem:[#allocation3 + $0xa8] sm:$0xff]  ;;  %v6691_v60 = vld [vmem:[#allocation3 + $0x30] sm:$0xff]  ;;  %v6412_v58 = vunpack.i.l.bf16 %v8631_v27  ;;  %v6383_v20 = vunpack.i.h.bf16 %v8629_v23 }
 0x3b1   : > { %v4019_v19 = vsel %vm2165_vm9, %v3987_v41, %v6392_v33  ;;  %v4020_v6 = vsel %vm2165_vm9, %v3988_v55, %v6393_v4  ;;  %v3924_v41 = vsel %vm320_vm11, %v6691_v60, %v6377_v39  ;;  %v6484_v55 = vpack.i.bf16 %v8719_v52, %v8702_v7 }
 0x3b2   : > { %6460 = vrot.lane.b32.xlu1 %v6459_v16, %s6765_s17  ;;  %3460 = vrot.lane.b32.xlu2 %v2683_v42, %s6770_s19  ;;  %v4053_v2 = vsel %vm4049_vm15, %v4020_v6, %v8642_v22 }
 0x3b3   : > { %3836 = vrot.lane.b32.xlu0 %v2681_v35, %s6763_s15  ;;  %v2429_v43 = vpop.f32.mrf.mxu1 }
 0x3b4   : > { %v2430_v38 = vadd.f32 %v8580_v15, %v2429_v43  ;;  %v3571_v32 = vpop.permute.xlu1 %3570  ;;  %v8661_v26 = vpop.permute.xlu2 %3704 }
 0x3b5   : > { %v8658_v25 = vpop.permute.xlu0 %3444  ;;  %v4083_v62 = vsel %vm277_vm2, %v8560_v34, %v3571_v32  ;;  %v2653_v32 = vld [vmem:[#allocation3 + $0xa9] sm:$0xff] }
 0x3b6   : > { %v4052_v35 = vsel %vm4049_vm15, %v4019_v19, %v8658_v25  ;;  %v2543_v18 = vadd.f32 %v2542_v17, %v2430_v38 }
 0x3b7   : > { %4329 = vmatmul.f32.gmra.mxu3 %v4052_v35  ;;  %v6474_v35 = vpack.i.bf16 %v2654_v5, %v2653_v32 }
 0x3b8   : > { %2596 = vst.msk [vmem:[#allocation3 + $0x111] sm:$0xff] %vm320_vm11, %v2543_v18 }
 0x3ba   : > { %6465 = vrot.lane.b32.xlu1 %v6464_v56, %s6769_s14  ;;  %3840 = vrot.lane.b32.xlu2 %v2683_v42, %s6763_s15  ;;  %v6479_v42 = vpack.i.bf16 %v8698_v28, %v8696_v47 }
 0x3bb   : > { %6455 = vrot.lane.b32.xlu0 %v6469_v36, %s6768_s8  ;;  %v2432_v30 = vpop.f32.mrf.mxu1 }
 0x3bc   : > { %v2433_v50 = vadd.f32 %v8580_v15, %v2432_v30  ;;  %v3827_v21 = vpop.permute.xlu1 %3826  ;;  %v8680_v10 = vpop.permute.xlu2 %6420  ;;  %v6692_v30 = vld [vmem:[#allocation3 + $0x38] sm:$0xff] }
 0x3bd   : > { %v3699_v3 = vpop.permute.xlu0 %3698 }
 0x3be   : > { %v4116_v17 = vsel %vm4114_vm0, %v4083_v62, %v3699_v3  ;;  %v2546_v51 = vadd.f32 %v2545_v12, %v2433_v50 }
 0x3bf   : > { %4332 = vmatmul.f32.gmra.mxu3 %v4053_v2  ;;  %v4148_v53 = vsel %vm2099_vm7, %v4116_v17, %v3827_v21 }
 0x3c0   : > { %5678 = vmatmul.msk.f32.gmra.mxu0 %vm4210_vm1, %v4148_v53  ;;  %2597 = vst.msk [vmem:[#allocation3 + $0x121] sm:$0xff] %vm320_vm11, %v2546_v51 }
 0x3c2   : > { %3714 = vrot.lane.b32.xlu1 %v8633_v8, %s6771_s16  ;;  %3842 = vrot.lane.b32.xlu2 %v2684_v31, %s6763_s15  ;;  %v2554_v8 = vpop.f32.mrf.mxu2 }
 0x3c3   : > { %3462 = vrot.lane.b32.xlu0 %v2684_v31, %s6770_s19  ;;  %v2435_v34 = vpop.f32.mrf.mxu1  ;;  %v6382_v31 = vunpack.i.l.bf16 %v8629_v23 }
 0x3c4   : > { %v2436_v63 = vadd.f32 %v8580_v15, %v2435_v34  ;;  %v8692_v36 = vpop.permute.xlu1 %6400  ;;  %v8694_v54 = vpop.permute.xlu2 %6425 }
 0x3c5   : > { %v3701_v12 = vpop.permute.xlu0 %3700  ;;  %v3956_v38 = vsel %vm2066_vm6, %v3924_v41, %v6382_v31 }
 0x3c6   : > { %v2549_v48 = vadd.f32 %v2548_v0, %v2436_v63  ;;  %v6378_v0 = vunpack.i.h.bf16 %v8585_v46  ;;  %v4084_v46 = vsel %vm277_vm2, %v8658_v25, %v8613_v37 }
 0x3c7   : > { %v4117_v50 = vsel %vm4114_vm0, %v4084_v46, %v3701_v12  ;;  %v6402_v46 = vunpack.i.l.bf16 %v8692_v36 }
 0x3c8   : > { %2598 = vst.msk [vmem:[#allocation3 + $0x129] sm:$0xff] %vm320_vm11, %v2549_v48  ;;  %v3925_v62 = vsel %vm320_vm11, %v6692_v30, %v6378_v0 }
 0x3c9   : > { %v3957_v37 = vsel %vm2066_vm6, %v3925_v62, %v6383_v20 }
 0x3ca   : > { %3588 = vrot.lane.b32.xlu1 %v8702_v7, %s6761_s21  ;;  %6480 = vrot.lane.b32.xlu2 %v6479_v42, %s6765_s17  ;;  %v2557_v6 = vpop.f32.mrf.mxu2 }
 0x3cb   : > { %3586 = vrot.lane.b32.xlu0 %v8665_v61, %s6761_s21  ;;  %v2438_v57 = vpop.f32.mrf.mxu1 }
 0x3cc   : > { %v2439_v9 = vadd.f32 %v8580_v15, %v2438_v57  ;;  %v6406_v24 = vpop.permute.xlu1 %6405  ;;  %v8716_v44 = vpop.permute.xlu2 %3454 }
 0x3cd   : > { %v8713_v16 = vpop.permute.xlu0 %6395  ;;  %v6407_v33 = vunpack.i.l.bf16 %v6406_v24  ;;  %v6408_v56 = vunpack.i.h.bf16 %v6406_v24 }
 0x3ce   : > { %v2552_v43 = vadd.f32 %v2551_v14, %v2439_v9  ;;  %v6413_v14 = vunpack.i.h.bf16 %v8631_v27 }
 0x3cf   : > { %v3989_v19 = vsel %vm3984_vm14, %v3956_v38, %v6407_v33  ;;  %v3990_v53 = vsel %vm3984_vm14, %v3957_v37, %v6408_v56  ;;  %v2656_v38 = vld [vmem:[#allocation3 + $0xc9] sm:$0xff] }
 0x3d0   : > { %2599 = vst.msk [vmem:[#allocation3 + $0x139] sm:$0xff] %vm320_vm11, %v2552_v43  ;;  %v4021_v18 = vsel %vm2165_vm9, %v3989_v19, %v6412_v58  ;;  %v4022_v34 = vsel %vm2165_vm9, %v3990_v53, %v6413_v14  ;;  %v8777_v19 = vld [vmem:[#allocation3 + $0xc0] sm:$0xff]  ;;  %v6403_v53 = vunpack.i.h.bf16 %v8692_v36 }
 0x3d1   : > { %v4054_v4 = vsel %vm4049_vm15, %v4021_v18, %v8645_v29 }
 0x3d2   : > { %6475 = vrot.lane.b32.xlu1 %v6474_v35, %s6768_s8  ;;  %6485 = vrot.lane.b32.xlu2 %v6484_v55, %s6769_s14  ;;  %v2560_v39 = vpop.f32.mrf.mxu2 }
 0x3d3   : > { %3716 = vrot.lane.b32.xlu0 %v2653_v32, %s6771_s16  ;;  %4335 = vmatmul.f32.gmra.mxu3 %v4054_v4  ;;  %v2441_v23 = vpop.f32.mrf.mxu1  ;;  %v2655_v32 = vld [vmem:[#allocation3 + $0xc1] sm:$0xff] }
 0x3d4   : > { %v2442_v21 = vadd.f32 %v8580_v15, %v2441_v23  ;;  %v3829_v3 = vpop.permute.xlu1 %3828  ;;  %v8742_v2 = vpop.permute.xlu2 %3578  ;;  %v6494_v0 = vpack.i.bf16 %v2656_v38, %v2655_v32  ;;  %v6693_v4 = vld [vmem:[#allocation3 + $0x48] sm:$0xff] }
 0x3d5   : > { %v8740_v17 = vpop.permute.xlu0 %3450  ;;  %v4149_v51 = vsel %vm2099_vm7, %v4117_v50, %v3829_v3 }
 0x3d6   : > { %v2555_v25 = vadd.f32 %v2554_v8, %v2442_v21  ;;  %5679 = vmatmul.msk.f32.gmra.mxu0 %vm4210_vm1, %v4149_v51  ;;  %v4055_v63 = vsel %vm4049_vm15, %v4022_v34, %v8740_v17  ;;  %v6427_v21 = vunpack.i.l.bf16 %v8694_v54  ;;  %v8799_v51 = vld [vmem:[#allocation3 + $0xc8] sm:$0xff] }
 0x3d8   : > { %2600 = vst.msk [vmem:[#allocation3 + $0x141] sm:$0xff] %vm320_vm11, %v2555_v25 }
 0x3da   : > { %3464 = vrot.lane.b32.xlu1 %v8696_v47, %s6770_s19  ;;  %3466 = vrot.lane.b32.xlu2 %v8698_v28, %s6770_s19 }
 0x3db   : > { %6490 = vrot.lane.b32.xlu0 %v6474_v35, %s6766_s18  ;;  %4338 = vmatmul.f32.gmra.mxu3 %v4055_v63  ;;  %v2444_v12 = vpop.f32.mrf.mxu1 }
 0x3dc   : > { %v2445_v48 = vadd.f32 %v8580_v15, %v2444_v12  ;;  %v3831_v27 = vpop.permute.xlu1 %3830  ;;  %v8759_v42 = vpop.permute.xlu2 %3706 }
 0x3dd   : > { %v3575_v8 = vpop.permute.xlu0 %3574 }
 0x3de   : > { %v2558_v31 = vadd.f32 %v2557_v6, %v2445_v48  ;;  %v4085_v9 = vsel %vm277_vm2, %v8642_v22, %v3575_v8  ;;  %v6397_v22 = vunpack.i.l.bf16 %v8713_v16  ;;  %v2782_v8 = vld [vmem:[#allocation3 + $0xca] sm:$0xff] }
 0x3e0   : > { %2601 = vst.msk [vmem:[#allocation3 + $0x151] sm:$0xff] %vm320_vm11, %v2558_v31  ;;  %v3926_v56 = vsel %vm320_vm11, %v6693_v4, %v6397_v22 }
 0x3e1   : > { %v3958_v62 = vsel %vm2066_vm6, %v3926_v56, %v6402_v46 }
 0x3e2   : > { %3844 = vrot.lane.b32.xlu1 %v8696_v47, %s6763_s15  ;;  %3590 = vrot.lane.b32.xlu2 %v8719_v52, %s6761_s21  ;;  %v3991_v25 = vsel %vm3984_vm14, %v3958_v62, %v6427_v21 }
 0x3e3   : > { %3718 = vrot.lane.b32.xlu0 %v2654_v5, %s6771_s16  ;;  %v2447_v57 = vpop.f32.mrf.mxu1  ;;  %v2563_v5 = vpop.f32.mrf.mxu2 }
 0x3e4   : > { %v2448_v24 = vadd.f32 %v8580_v15, %v2447_v57  ;;  %v3577_v60 = vpop.permute.xlu1 %3576  ;;  %v8771_v58 = vpop.permute.xlu2 %3708 }
 0x3e5   : > { %v3703_v41 = vpop.permute.xlu0 %3702  ;;  %v4086_v3 = vsel %vm277_vm2, %v8645_v29, %v3577_v60 }
 0x3e6   : > { %v4118_v33 = vsel %vm4114_vm0, %v4085_v9, %v3703_v41  ;;  %v2561_v43 = vadd.f32 %v2560_v39, %v2448_v24  ;;  %v4119_v12 = vsel %vm4114_vm0, %v4086_v3, %v8661_v26  ;;  %v2687_v39 = vld [vmem:[#allocation3 + $0xc2] sm:$0xff]  ;;  %v6428_v9 = vunpack.i.h.bf16 %v8694_v54 }
 0x3e7   : > { %v4150_v47 = vsel %vm2099_vm7, %v4118_v33, %v3831_v27  ;;  %v6499_v26 = vpack.i.bf16 %v2782_v8, %v2687_v39  ;;  %v4087_v33 = vsel %vm277_vm2, %v8740_v17, %v8742_v2  ;;  %v6504_v17 = vpack.i.bf16 %v8799_v51, %v8777_v19  ;;  %v8846_v2 = vld [vmem:[#allocation3 + $0xd8] sm:$0xff] }
 0x3e8   : > { %5680 = vmatmul.msk.f32.gmra.mxu0 %vm4210_vm1, %v4150_v47  ;;  %2602 = vst.msk [vmem:[#allocation3 + $0x159] sm:$0xff] %vm320_vm11, %v2561_v43  ;;  %v4120_v54 = vsel %vm4114_vm0, %v4087_v33, %v8759_v42 }
 0x3ea   : > { %3846 = vrot.lane.b32.xlu1 %v8698_v28, %s6763_s15  ;;  %6495 = vrot.lane.b32.xlu2 %v6494_v0, %s6768_s8  ;;  %v6398_v28 = vunpack.i.h.bf16 %v8713_v16 }
 0x3eb   : > { %3592 = vrot.lane.b32.xlu0 %v8777_v19, %s6761_s21  ;;  %v2450_v35 = vpop.f32.mrf.mxu1  ;;  %v2566_v50 = vpop.f32.mrf.mxu2 }
 0x3ec   : > { %v2451_v18 = vadd.f32 %v8580_v15, %v2450_v35  ;;  %v8785_v20 = vpop.permute.xlu1 %6415  ;;  %v8788_v6 = vpop.permute.xlu2 %6435  ;;  %v3927_v16 = vsel %vm320_vm11, %v8318_v11, %v6398_v28  ;;  %v8857_v28 = vld [vmem:[#allocation3 + $0xe2] sm:$0xff] }
 0x3ed   : > { %v6431_v55 = vpop.permute.xlu0 %6430  ;;  %v3959_v57 = vsel %vm2066_vm6, %v3927_v16, %v6403_v53  ;;  %v8869_v16 = vld [vmem:[#allocation3 + $0xe0] sm:$0xff]  ;;  %v6417_v53 = vunpack.i.l.bf16 %v8785_v20 }
 0x3ee   : > { %v2564_v23 = vadd.f32 %v2563_v5, %v2451_v18  ;;  %v6432_v30 = vunpack.i.l.bf16 %v6431_v55  ;;  %v6433_v36 = vunpack.i.h.bf16 %v6431_v55  ;;  %v3992_v60 = vsel %vm3984_vm14, %v3959_v57, %v6428_v9 }
 0x3ef   : > { %v9159_v1 = vld [vmem:[#allocation3 + $0x158] sm:$0xff] }
 0x3f0   : > { %2603 = vst.msk [vmem:[#allocation3 + $0x169] sm:$0xff] %vm320_vm11, %v2564_v23  ;;  %v4023_v63 = vsel %vm2165_vm9, %v3991_v25, %v6432_v30  ;;  %v4024_v41 = vsel %vm2165_vm9, %v3992_v60, %v6433_v36  ;;  %v8855_v23 = vld [vmem:[#allocation3 + $0xda] sm:$0xff]  ;;  %v6524_v25 = vpack.i.bf16 %v8869_v16, %v8846_v2  ;;  %v6418_v36 = vunpack.i.h.bf16 %v8785_v20 }
 0x3f1   : > { %v6519_v62 = vpack.i.bf16 %v8857_v28, %v8855_v23  ;;  %v6423_v20 = vunpack.i.h.bf16 %v8680_v10 }
 0x3f2   : > { %6510 = vrot.lane.b32.xlu1 %v6494_v0, %s6766_s18  ;;  %3594 = vrot.lane.b32.xlu2 %v8799_v51, %s6761_s21  ;;  %v4057_v0 = vsel %vm4049_vm15, %v4024_v41, %v8716_v44 }
 0x3f3   : > { %3720 = vrot.lane.b32.xlu0 %v2655_v32, %s6771_s16  ;;  %v2453_v37 = vpop.f32.mrf.mxu1  ;;  %v2569_v24 = vpop.f32.mrf.mxu2 }
 0x3f4   : > { %v2454_v14 = vadd.f32 %v8580_v15, %v2453_v37  ;;  %v8808_v29 = vpop.permute.xlu1 %3452  ;;  %v8813_v48 = vpop.permute.xlu2 %3838  ;;  %v8871_v37 = vld [vmem:[#allocation3 + $0xe1] sm:$0xff] }
 0x3f5   : > { %v3833_v34 = vpop.permute.xlu0 %3832  ;;  %v4056_v11 = vsel %vm4049_vm15, %v4023_v63, %v8808_v29 }
 0x3f6   : > { %v4151_v27 = vsel %vm2099_vm7, %v4119_v12, %v3833_v34  ;;  %v2567_v31 = vadd.f32 %v2566_v50, %v2454_v14  ;;  %4341 = vmatmul.f32.gmra.mxu3 %v4056_v11  ;;  %v3928_v12 = vsel %vm320_vm11, %v8415_v40, %v6417_v53  ;;  %v3929_v40 = vsel %vm320_vm11, %v8409_v59, %v6418_v36 }
 0x3f7   : > { %5681 = vmatmul.msk.f32.gmra.mxu0 %vm4210_vm1, %v4151_v27  ;;  %v3961_v59 = vsel %vm2066_vm6, %v3929_v40, %v6423_v20  ;;  %v6438_v40 = vunpack.i.h.bf16 %v8788_v6 }
 0x3f8   : > { %2604 = vst.msk [vmem:[#allocation3 + $0x171] sm:$0xff] %vm320_vm11, %v2567_v31 }
 0x3fa   : > { %3470 = vrot.lane.b32.xlu1 %v2782_v8, %s6770_s19  ;;  %3722 = vrot.lane.b32.xlu2 %v2656_v38, %s6771_s16 }
 0x3fb   : > { %6500 = vrot.lane.b32.xlu0 %v6499_v26, %s6765_s17  ;;  %v2456_v43 = vpop.f32.mrf.mxu1  ;;  %v2572_v38 = vpop.f32.mrf.mxu2 }
 0x3fc   : > { %v2457_v47 = vadd.f32 %v8580_v15, %v2456_v43  ;;  %v8833_v5 = vpop.permute.xlu1 %6450  ;;  %v8835_v22 = vpop.permute.xlu2 %3584  ;;  %v8901_v43 = vld [vmem:[#allocation3 + $0xf2] sm:$0xff] }
 0x3fd   : > { %v3835_v32 = vpop.permute.xlu0 %3834 }
 0x3fe   : > { %v4152_v35 = vsel %vm2099_vm7, %v4120_v54, %v3835_v32  ;;  %v2570_v18 = vadd.f32 %v2569_v24, %v2457_v47  ;;  %4344 = vmatmul.f32.gmra.mxu3 %v4057_v0  ;;  %v8903_v54 = vld [vmem:[#allocation3 + $0xfa] sm:$0xff]  ;;  %v6453_v32 = vunpack.i.h.bf16 %v8833_v5  ;;  %v8910_v0 = vld [vmem:[#allocation3 + $0xf0] sm:$0xff] }
 0x3ff   : > { %5682 = vmatmul.msk.f32.gmra.mxu0 %vm4210_vm1, %v4152_v35  ;;  %v6539_v35 = vpack.i.bf16 %v8903_v54, %v8901_v43 }
 0x400   : > { %2605 = vst.msk [vmem:[#allocation3 + $0x181] sm:$0xff] %vm320_vm11, %v2570_v18 }
 0x402   : > { %3848 = vrot.lane.b32.xlu1 %v2687_v39, %s6763_s15  ;;  %3596 = vrot.lane.b32.xlu2 %v8846_v2, %s6761_s21 }
 0x403   : > { %6505 = vrot.lane.b32.xlu0 %v6504_v17, %s6769_s14  ;;  %v2459_v42 = vpop.f32.mrf.mxu1 }
 0x404   : > { %v2460_v55 = vadd.f32 %v8580_v15, %v2459_v42  ;;  %v8851_v4 = vpop.permute.xlu1 %3458  ;;  %v8853_v46 = vpop.permute.xlu2 %6470  ;;  %v2846_v15 = vld [vmem:[#allocation3 + $0xd9] sm:$0xff] }
 0x405   : > { %v3581_v56 = vpop.permute.xlu0 %3580  ;;  %v6529_v14 = vpack.i.bf16 %v8871_v37, %v2846_v15 }
 0x406   : > { %v2573_v30 = vadd.f32 %v2572_v38, %v2460_v55 }
 0x408   : > { %2606 = vst.msk [vmem:[#allocation3 + $0x189] sm:$0xff] %vm320_vm11, %v2573_v30  ;;  %v8932_v30 = vld [vmem:[#allocation3 + $0xf8] sm:$0xff] }
 0x409   : > { %v6544_v53 = vpack.i.bf16 %v8932_v30, %v8910_v0 }
 0x40a   : > { %6520 = vrot.lane.b32.xlu1 %v6519_v62, %s6765_s17  ;;  %3724 = vrot.lane.b32.xlu2 %v2846_v15, %s6771_s16  ;;  %v8934_v62 = vld [vmem:[#allocation3 + $0xf1] sm:$0xff] }
 0x40b   : > { %3468 = vrot.lane.b32.xlu0 %v2687_v39, %s6770_s19  ;;  %v6422_v39 = vunpack.i.l.bf16 %v8680_v10  ;;  %v4088_v10 = vsel %vm277_vm2, %v8808_v29, %v3581_v56  ;;  %v8929_v56 = vld [vmem:[#allocation3 + $0xf9] sm:$0xff] }
 0x40c   : > { %v3583_v50 = vpop.permute.xlu1 %3582  ;;  %v8867_v3 = vpop.permute.xlu2 %3460  ;;  %v4121_v29 = vsel %vm4114_vm0, %v4088_v10, %v8771_v58  ;;  %v6534_v15 = vpack.i.bf16 %v8929_v56, %v8934_v62  ;;  %v6437_v58 = vunpack.i.l.bf16 %v8788_v6  ;;  %v3931_v6 = vsel %vm320_vm11, %v8604_v49, %v6438_v40  ;;  %v8988_v10 = vld [vmem:[#allocation3 + $0x109] sm:$0xff]  ;;  %v9041_v40 = vld [vmem:[#allocation3 + $0x120] sm:$0xff] }
 0x40d   : > { %v8865_v21 = vpop.permute.xlu0 %6440  ;;  %v3960_v31 = vsel %vm2066_vm6, %v3928_v12, %v6422_v39 }
 0x40e   : > { %v3930_v39 = vsel %vm320_vm11, %v8591_v13, %v6437_v58 }
 0x412   : > { %6525 = vrot.lane.b32.xlu1 %v6524_v25, %s6769_s14  ;;  %6530 = vrot.lane.b32.xlu2 %v6529_v14, %s6766_s18  ;;  %v4089_v25 = vsel %vm277_vm2, %v8716_v44, %v3583_v50 }
 0x413   : > { %3850 = vrot.lane.b32.xlu0 %v2782_v8, %s6763_s15  ;;  %v6452_v8 = vunpack.i.l.bf16 %v8833_v5 }
 0x414   : > { %v3711_v34 = vpop.permute.xlu1 %3710  ;;  %v8882_v27 = vpop.permute.xlu2 %3840 }
 0x415   : > { %v6446_v63 = vpop.permute.xlu0 %6445 }
 0x416   : > { %v6447_v11 = vunpack.i.l.bf16 %v6446_v63  ;;  %v6448_v9 = vunpack.i.h.bf16 %v6446_v63  ;;  %v4122_v63 = vsel %vm4114_vm0, %v4089_v25, %v3711_v34  ;;  %v6472_v34 = vunpack.i.l.bf16 %v8853_v46 }
 0x417   : > { %v4154_v36 = vsel %vm2099_vm7, %v4122_v63, %v8813_v48 }
 0x418   : > { %v3993_v57 = vsel %vm3984_vm14, %v3960_v31, %v6447_v11  ;;  %v3994_v47 = vsel %vm3984_vm14, %v3961_v59, %v6448_v9  ;;  %v6443_v9 = vunpack.i.h.bf16 %v8865_v21  ;;  %v8982_v59 = vld [vmem:[#allocation3 + $0x111] sm:$0xff] }
 0x419   : > { %v4025_v60 = vsel %vm2165_vm9, %v3993_v57, %v6452_v8  ;;  %v4026_v18 = vsel %vm2165_vm9, %v3994_v47, %v6453_v32  ;;  %v6473_v32 = vunpack.i.h.bf16 %v8853_v46  ;;  %v6569_v49 = vpack.i.bf16 %v8982_v59, %v8988_v10 }
 0x41a   : > { %3598 = vrot.lane.b32.xlu1 %v8869_v16, %s6761_s21  ;;  %3472 = vrot.lane.b32.xlu2 %v8855_v23, %s6770_s19  ;;  %v4059_v38 = vsel %vm4049_vm15, %v4026_v18, %v8851_v4  ;;  %v3963_v47 = vsel %vm2066_vm6, %v3931_v6, %v6443_v9 }
 0x41b   : > { %6515 = vrot.lane.b32.xlu0 %v6529_v14, %s6768_s8  ;;  %v6442_v14 = vunpack.i.l.bf16 %v8865_v21 }
 0x41c   : > { %v3713_v26 = vpop.permute.xlu1 %3712  ;;  %v8898_v41 = vpop.permute.xlu2 %3842 }
 0x41d   : > { %v3457_v24 = vpop.permute.xlu0 %3456  ;;  %v3962_v31 = vsel %vm2066_vm6, %v3930_v39, %v6442_v14  ;;  %v9027_v39 = vld [vmem:[#allocation3 + $0x122] sm:$0xff] }
 0x41e   : > { %v4058_v33 = vsel %vm4049_vm15, %v4025_v60, %v3457_v24  ;;  %v4090_v57 = vsel %vm277_vm2, %v3457_v24, %v8835_v22 }
 0x41f   : > { %4347 = vmatmul.f32.gmra.mxu3 %v4058_v33  ;;  %v4123_v22 = vsel %vm4114_vm0, %v4090_v57, %v3713_v26 }
 0x420   : > { %v4155_v33 = vsel %vm2099_vm7, %v4123_v22, %v8882_v27 }
 0x422   : > { %3600 = vrot.lane.b32.xlu1 %v8910_v0, %s6761_s21  ;;  %6540 = vrot.lane.b32.xlu2 %v6539_v35, %s6765_s17  ;;  %v8992_v35 = vld [vmem:[#allocation3 + $0x108] sm:$0xff] }
 0x423   : > { %3474 = vrot.lane.b32.xlu0 %v8857_v28, %s6770_s19 }
 0x424   : > { %v8920_v17 = vpop.permute.xlu1 %6460  ;;  %v8924_v42 = vpop.permute.xlu2 %6480 }
 0x425   : > { %v3837_v5 = vpop.permute.xlu0 %3836  ;;  %v6462_v57 = vunpack.i.l.bf16 %v8920_v17 }
 0x426   : > { %v4153_v55 = vsel %vm2099_vm7, %v4121_v29, %v3837_v5 }
 0x427   : > { %4350 = vmatmul.f32.gmra.mxu3 %v4059_v38  ;;  %5683 = vmatmul.msk.f32.gmra.mxu0 %vm4210_vm1, %v4153_v55  ;;  %v9005_v55 = vld [vmem:[#allocation3 + $0x112] sm:$0xff] }
 0x42a   : > { %6535 = vrot.lane.b32.xlu1 %v6534_v15, %s6768_s8  ;;  %6545 = vrot.lane.b32.xlu2 %v6544_v53, %s6769_s14 }
 0x42b   : > { %6550 = vrot.lane.b32.xlu0 %v6534_v15, %s6766_s18  ;;  %v9007_v15 = vld [vmem:[#allocation3 + $0x10a] sm:$0xff] }
 0x42c   : > { %v6466_v12 = vpop.permute.xlu1 %6465  ;;  %v8952_v50 = vpop.permute.xlu2 %6485  ;;  %v6559_v53 = vpack.i.bf16 %v9005_v55, %v9007_v15 }
 0x42d   : > { %v8948_v11 = vpop.permute.xlu0 %6455  ;;  %v6467_v44 = vunpack.i.l.bf16 %v6466_v12  ;;  %v6468_v20 = vunpack.i.h.bf16 %v6466_v12 }
 0x42e   : > { %v6457_v14 = vunpack.i.l.bf16 %v8948_v11 }
 0x42f   : > { %5684 = vmatmul.msk.f32.gmra.mxu0 %vm4210_vm1, %v4154_v36  ;;  %v3995_v8 = vsel %vm3984_vm14, %v3962_v31, %v6467_v44  ;;  %v3996_v26 = vsel %vm3984_vm14, %v3963_v47, %v6468_v20  ;;  %v9029_v44 = vld [vmem:[#allocation3 + $0x12a] sm:$0xff]  ;;  %v6463_v47 = vunpack.i.h.bf16 %v8920_v17 }
 0x430   : > { %v4027_v13 = vsel %vm2165_vm9, %v3995_v8, %v6472_v34  ;;  %v4028_v18 = vsel %vm2165_vm9, %v3996_v26, %v6473_v32  ;;  %v3932_v36 = vsel %vm320_vm11, %v8624_v45, %v6457_v14  ;;  %v6579_v34 = vpack.i.bf16 %v9029_v44, %v9027_v39 }
 0x431   : > { %v4060_v48 = vsel %vm4049_vm15, %v4027_v13, %v8867_v3  ;;  %v6458_v8 = vunpack.i.h.bf16 %v8948_v11  ;;  %v3964_v45 = vsel %vm2066_vm6, %v3932_v36, %v6462_v57  ;;  %v6487_v13 = vunpack.i.l.bf16 %v8952_v50  ;;  %v9051_v11 = vld [vmem:[#allocation3 + $0x128] sm:$0xff] }
 0x432   : > { %3476 = vrot.lane.b32.xlu1 %v8901_v43, %s6770_s19  ;;  %3478 = vrot.lane.b32.xlu2 %v8903_v54, %s6770_s19 }
 0x433   : > { %3602 = vrot.lane.b32.xlu0 %v8932_v30, %s6761_s21  ;;  %4353 = vmatmul.f32.gmra.mxu3 %v4060_v48  ;;  %v3933_v6 = vsel %vm320_vm11, %v8665_v61, %v6458_v8 }
 0x434   : > { %v3715_v21 = vpop.permute.xlu1 %3714  ;;  %v8978_v60 = vpop.permute.xlu2 %3466 }
 0x435   : > { %v8976_v24 = vpop.permute.xlu0 %3462 }
 0x436   : > { %v4061_v27 = vsel %vm4049_vm15, %v4028_v18, %v8976_v24  ;;  %v9064_v18 = vld [vmem:[#allocation3 + $0x121] sm:$0xff] }
 0x437   : > { %5685 = vmatmul.msk.f32.gmra.mxu0 %vm4210_vm1, %v4155_v33  ;;  %v9056_v33 = vld [vmem:[#allocation3 + $0x129] sm:$0xff] }
 0x438   : > { %v6589_v61 = vpack.i.bf16 %v9056_v33, %v9064_v18 }
 0x43a   : > { %6570 = vrot.lane.b32.xlu1 %v6569_v49, %s6766_s18  ;;  %6555 = vrot.lane.b32.xlu2 %v6569_v49, %s6768_s8  ;;  %v6584_v49 = vpack.i.bf16 %v9051_v11, %v9041_v40 }
 0x43b   : > { %3604 = vrot.lane.b32.xlu0 %v8992_v35, %s6761_s21  ;;  %4356 = vmatmul.f32.gmra.mxu3 %v4061_v27 }
 0x43c   : > { %v3589_v46 = vpop.permute.xlu1 %3588  ;;  %v9003_v38 = vpop.permute.xlu2 %3590 }
 0x43d   : > { %v3587_v5 = vpop.permute.xlu0 %3586  ;;  %v4092_v17 = vsel %vm277_vm2, %v8867_v3, %v3589_v46  ;;  %v4093_v3 = vsel %vm277_vm2, %v8976_v24, %v9003_v38  ;;  %v9104_v24 = vld [vmem:[#allocation3 + $0x139] sm:$0xff] }
 0x43e   : > { %v4091_v29 = vsel %vm277_vm2, %v8851_v4, %v3587_v5  ;;  %v9018_v4 = vld [vmem:[#allocation3 + $0x110] sm:$0xff]  ;;  %v3965_v5 = vsel %vm2066_vm6, %v3933_v6, %v6463_v47 }
 0x43f   : > { %v4124_v58 = vsel %vm4114_vm0, %v4091_v29, %v3715_v21  ;;  %v6564_v31 = vpack.i.bf16 %v9018_v4, %v8992_v35  ;;  %v3997_v21 = vsel %vm3984_vm14, %v3964_v45, %v6487_v13  ;;  %v6488_v29 = vunpack.i.h.bf16 %v8952_v50  ;;  %v9097_v13 = vld [vmem:[#allocation3 + $0x141] sm:$0xff] }
 0x440   : > { %v4156_v25 = vsel %vm2099_vm7, %v4124_v58, %v8898_v41  ;;  %v6594_v38 = vpack.i.bf16 %v9097_v13, %v9104_v24 }
 0x441   : > { %5686 = vmatmul.msk.f32.gmra.mxu0 %vm4210_vm1, %v4156_v25  ;;  %v3998_v14 = vsel %vm3984_vm14, %v3965_v5, %v6488_v29 }
 0x442   : > { %3482 = vrot.lane.b32.xlu1 %v9005_v55, %s6770_s19  ;;  %3606 = vrot.lane.b32.xlu2 %v9018_v4, %s6761_s21 }
 0x443   : > { %6560 = vrot.lane.b32.xlu0 %v6559_v53, %s6765_s17 }
 0x444   : > { %v9023_v63 = vpop.permute.xlu1 %6475  ;;  %v9025_v12 = vpop.permute.xlu2 %6495 }
 0x445   : > { %v3717_v41 = vpop.permute.xlu0 %3716 }
 0x446   : > { %v4125_v58 = vsel %vm4114_vm0, %v4092_v17, %v3717_v41  ;;  %v9134_v17 = vld [vmem:[#allocation3 + $0x159] sm:$0xff] }
 0x44a   : > { %6580 = vrot.lane.b32.xlu1 %v6579_v34, %s6765_s17  ;;  %3608 = vrot.lane.b32.xlu2 %v9041_v40, %s6761_s21 }
 0x44b   : > { %6565 = vrot.lane.b32.xlu0 %v6564_v31, %s6769_s14 }
 0x44c   : > { %v9047_v9 = vpop.permute.xlu1 %3464  ;;  %v9049_v22 = vpop.permute.xlu2 %3594 }
 0x44d   : > { %v6491_v48 = vpop.permute.xlu0 %6490 }
 0x44e   : > { %v6492_v20 = vunpack.i.l.bf16 %v6491_v48  ;;  %v6493_v27 = vunpack.i.h.bf16 %v6491_v48  ;;  %v9100_v48 = vld [vmem:[#allocation3 + $0x13a] sm:$0xff] }
 0x450   : > { %v4029_v26 = vsel %vm2165_vm9, %v3997_v21, %v6492_v20  ;;  %v4030_v34 = vsel %vm2165_vm9, %v3998_v14, %v6493_v27  ;;  %v9102_v20 = vld [vmem:[#allocation3 + $0x142] sm:$0xff] }
 0x451   : > { %v4062_v32 = vsel %vm4049_vm15, %v4029_v26, %v9047_v9  ;;  %v4063_v31 = vsel %vm4049_vm15, %v4030_v34, %v8978_v60  ;;  %v6599_v6 = vpack.i.bf16 %v9102_v20, %v9100_v48  ;;  %v6477_v34 = vunpack.i.l.bf16 %v9023_v63 }
 0x452   : > { %4359 = vmatmul.f32.gmra.mxu3 %v4062_v32  ;;  %6585 = vrot.lane.b32.xlu1 %v6584_v49, %s6769_s14  ;;  %v9118_v32 = vld [vmem:[#allocation3 + $0x140] sm:$0xff]  ;;  %v9120_v49 = vld [vmem:[#allocation3 + $0x138] sm:$0xff] }
 0x453   : > { %3480 = vrot.lane.b32.xlu0 %v9007_v15, %s6770_s19  ;;  %6590 = vrot.lane.b32.xlu2 %v6589_v61, %s6766_s18  ;;  %v6604_v27 = vpack.i.bf16 %v9118_v32, %v9120_v49 }
 0x454   : > { %v3845_v25 = vpop.permute.xlu1 %3844  ;;  %v9078_v36 = vpop.permute.xlu2 %3722 }
 0x455   : > { %v3719_v53 = vpop.permute.xlu0 %3718  ;;  %v4157_v50 = vsel %vm2099_vm7, %v4125_v58, %v3845_v25  ;;  %v9136_v58 = vld [vmem:[#allocation3 + $0x152] sm:$0xff]  ;;  %v9138_v25 = vld [vmem:[#allocation3 + $0x15a] sm:$0xff] }
 0x456   : > { %5687 = vmatmul.msk.f32.gmra.mxu0 %vm4210_vm1, %v4157_v50  ;;  %v4126_v46 = vsel %vm4114_vm0, %v4093_v3, %v3719_v53  ;;  %v9140_v53 = vld [vmem:[#allocation3 + $0x151] sm:$0xff]  ;;  %v6619_v50 = vpack.i.bf16 %v9138_v25, %v9136_v58 }
 0x457   : > { %v6629_v14 = vpack.i.bf16 %v9134_v17, %v9140_v53 }
 0x45a   : > { %4362 = vmatmul.f32.gmra.mxu3 %v4063_v31  ;;  %3610 = vrot.lane.b32.xlu1 %v9051_v11, %s6761_s21 }
 0x45b   : > { %6575 = vrot.lane.b32.xlu0 %v6589_v61, %s6768_s8  ;;  %3484 = vrot.lane.b32.xlu2 %v9027_v39, %s6770_s19 }
 0x45c   : > { %v3847_v41 = vpop.permute.xlu1 %3846  ;;  %v9094_v8 = vpop.permute.xlu2 %3596 }
 0x45d   : > { %v3593_v57 = vpop.permute.xlu0 %3592  ;;  %10530 = vst [vmem:[#allocation60_spill] sm:$0xff] %v9094_v8  ;;  %v4158_v45 = vsel %vm2099_vm7, %v4126_v46, %v3847_v41 }
 0x45e   : > { %5688 = vmatmul.msk.f32.gmra.mxu0 %vm4210_vm1, %v4158_v45  ;;  %v4094_v31 = vsel %vm277_vm2, %v9047_v9, %v3593_v57  ;;  %v3934_v45 = vsel %vm320_vm11, %v8702_v7, %v6477_v34  ;;  %v6478_v9 = vunpack.i.h.bf16 %v9023_v63  ;;  %v9164_v57 = vld [vmem:[#allocation3 + $0x150] sm:$0xff] }
 0x462   : > { %6595 = vrot.lane.b32.xlu1 %v6594_v38, %s6768_s8 }
 0x463   : > { %3486 = vrot.lane.b32.xlu0 %v9029_v44, %s6770_s19  ;;  %6600 = vrot.lane.b32.xlu2 %v6599_v6, %s6765_s17 }
 0x464   : > { %v9114_v21 = vpop.permute.xlu1 %6510  ;;  %v9116_v26 = vpop.permute.xlu2 %3724 }
 0x465   : > { %v3721_v47 = vpop.permute.xlu0 %3720  ;;  %10531 = vst [vmem:[#allocation50_spill] sm:$0xff] %v9116_v26  ;;  %v9189_v26 = vld [vmem:[#allocation3 + $0x172] sm:$0xff] }
 0x466   : > { %v4127_v3 = vsel %vm4114_vm0, %v4094_v31, %v3721_v47  ;;  %v6624_v47 = vpack.i.bf16 %v9159_v1, %v9164_v57  ;;  %v6512_v31 = vunpack.i.l.bf16 %v9114_v21 }
 0x46a   : > { %3488 = vrot.lane.b32.xlu1 %v9100_v48, %s6770_s19 }
 0x46b   : > { %6610 = vrot.lane.b32.xlu0 %v6594_v38, %s6766_s18  ;;  %6605 = vrot.lane.b32.xlu2 %v6604_v27, %s6769_s14 }
 0x46c   : > { %v9128_v61 = vpop.permute.xlu1 %3470  ;;  %v9132_v29 = vpop.permute.xlu2 %6530 }
 0x46d   : > { %v9130_v5 = vpop.permute.xlu0 %6500 }
 0x472   : > { %6630 = vrot.lane.b32.xlu1 %v6629_v14, %s6766_s18 }
 0x473   : > { %6620 = vrot.lane.b32.xlu0 %v6619_v50, %s6765_s17  ;;  %3490 = vrot.lane.b32.xlu2 %v9102_v20, %s6770_s19  ;;  %v6482_v50 = vunpack.i.l.bf16 %v8924_v42 }
 0x474   : > { %v3849_v46 = vpop.permute.xlu1 %3848  ;;  %v9156_v6 = vpop.permute.xlu2 %3472 }
 0x475   : > { %v6506_v41 = vpop.permute.xlu0 %6505  ;;  %10532 = vst [vmem:[#allocation74_spill] sm:$0xff] %v9156_v6  ;;  %v4159_v27 = vsel %vm2099_vm7, %v4127_v3, %v3849_v46  ;;  %v3966_v7 = vsel %vm2066_vm6, %v3934_v45, %v6482_v50  ;;  %v3935_v3 = vsel %vm320_vm11, %v8719_v52, %v6478_v9  ;;  %v6483_v46 = vunpack.i.h.bf16 %v8924_v42  ;;  %v9191_v52 = vld [vmem:[#allocation3 + $0x171] sm:$0xff] }
 0x476   : > { %v6507_v38 = vunpack.i.l.bf16 %v6506_v41  ;;  %5689 = vmatmul.msk.f32.gmra.mxu0 %vm4210_vm1, %v4159_v27  ;;  %v6508_v63 = vunpack.i.h.bf16 %v6506_v41  ;;  %10534 = vst [vmem:[#allocation81_spill] sm:$0xff] %v9191_v52  ;;  %v6513_v41 = vunpack.i.h.bf16 %v9114_v21  ;;  %v4095_v21 = vsel %vm277_vm2, %v8978_v60, %v9049_v22  ;;  %v9225_v22 = vld [vmem:[#allocation3 + $0x168] sm:$0xff] }
 0x477   : > { %v3967_v42 = vsel %vm2066_vm6, %v3935_v3, %v6483_v46 }
 0x478   : > { %v3999_v34 = vsel %vm3984_vm14, %v3966_v7, %v6507_v38 }
 0x479   : > { %v4031_v38 = vsel %vm2165_vm9, %v3999_v34, %v6512_v31  ;;  %v9198_v34 = vld [vmem:[#allocation3 + $0x169] sm:$0xff]  ;;  %v6497_v31 = vunpack.i.l.bf16 %v9025_v12 }
 0x47a   : > { %3494 = vrot.lane.b32.xlu1 %v9138_v25, %s6770_s19 }
 0x47b   : > { %6625 = vrot.lane.b32.xlu0 %v6624_v47, %s6769_s14  ;;  %6615 = vrot.lane.b32.xlu2 %v6629_v14, %s6768_s8  ;;  %v9187_v47 = vld [vmem:[#allocation3 + $0x16a] sm:$0xff]  ;;  %v4000_v14 = vsel %vm3984_vm14, %v3967_v42, %v6508_v63  ;;  %v4128_v63 = vsel %vm4114_vm0, %v4095_v21, %v9078_v36  ;;  %v6498_v21 = vunpack.i.h.bf16 %v9025_v12 }
 0x47c   : > { %v9178_v27 = vpop.permute.xlu1 %6520  ;;  %v9183_v50 = vpop.permute.xlu2 %6540  ;;  %v6639_v9 = vpack.i.bf16 %v9189_v26, %v9187_v47  ;;  %v4032_v3 = vsel %vm2165_vm9, %v4000_v14, %v6513_v41 }
 0x47d   : > { %v9180_v45 = vpop.permute.xlu0 %3468  ;;  %v4065_v14 = vsel %vm4049_vm15, %v4032_v3, %v9128_v61 }
 0x47e   : > { %10533 = vst [vmem:[#allocation73_spill] sm:$0xff] %v9180_v45  ;;  %v4064_v7 = vsel %vm4049_vm15, %v4031_v38, %v9180_v45  ;;  %v6649_v38 = vpack.i.bf16 %v9191_v52, %v9198_v34  ;;  %v3936_v45 = vsel %vm320_vm11, %v8777_v19, %v6497_v31  ;;  %v9221_v52 = vld [vmem:[#allocation3 + $0x170] sm:$0xff]  ;;  %v6532_v19 = vunpack.i.l.bf16 %v9132_v29 }
 0x47f   : > { %4365 = vmatmul.f32.gmra.mxu3 %v4064_v7  ;;  %v6502_v7 = vunpack.i.l.bf16 %v9130_v5  ;;  %v6644_v31 = vpack.i.bf16 %v9221_v52, %v9225_v22 }
 0x481   : > { %v3968_v60 = vsel %vm2066_vm6, %v3936_v45, %v6502_v7  ;;  %v6503_v45 = vunpack.i.h.bf16 %v9130_v5 }
 0x482   : > { %6640 = vrot.lane.b32.xlu1 %v6639_v9, %s6765_s17 }
 0x483   : > { %3492 = vrot.lane.b32.xlu0 %v9136_v58, %s6770_s19  ;;  %6650 = vrot.lane.b32.xlu2 %v6649_v38, %s6766_s18 }
 0x484   : > { %v6526_v46 = vpop.permute.xlu1 %6525  ;;  %v9216_v8 = vpop.permute.xlu2 %6545 }
 0x485   : > { %v3851_v42 = vpop.permute.xlu0 %3850  ;;  %v6527_v9 = vunpack.i.l.bf16 %v6526_v46 }
 0x486   : > { %v4160_v41 = vsel %vm2099_vm7, %v4128_v63, %v3851_v42  ;;  %v6528_v42 = vunpack.i.h.bf16 %v6526_v46 }
 0x487   : > { %4368 = vmatmul.f32.gmra.mxu3 %v4065_v14  ;;  %5690 = vmatmul.msk.f32.gmra.mxu0 %vm4210_vm1, %v4160_v41  ;;  %v4001_v36 = vsel %vm3984_vm14, %v3968_v60, %v6527_v9  ;;  %v6533_v60 = vunpack.i.h.bf16 %v9132_v29 }
 0x488   : > { %v4033_v3 = vsel %vm2165_vm9, %v4001_v36, %v6532_v19  ;;  %v9264_v19 = vld [vmem:[#allocation3 + $0x188] sm:$0xff] }
 0x489   : > { %v4066_v14 = vsel %vm4049_vm15, %v4033_v3, %v9156_v6 }
 0x48a   : > { %6645 = vrot.lane.b32.xlu1 %v6644_v31, %s6769_s14  ;;  %v9266_v31 = vld [vmem:[#allocation3 + $0x180] sm:$0xff] }
 0x48b   : > { %6635 = vrot.lane.b32.xlu0 %v6649_v38, %s6768_s8  ;;  %3496 = vrot.lane.b32.xlu2 %v9187_v47, %s6770_s19  ;;  %v3937_v38 = vsel %vm320_vm11, %v8799_v51, %v6498_v21  ;;  %v9268_v21 = vld [vmem:[#allocation3 + $0x182] sm:$0xff]  ;;  %s6715_s8 = scalar_lea.hbm %s10295_s7, 512 }
 0x48c   : > { %v9238_v7 = vpop.permute.xlu1 %3598  ;;  %v9240_v9 = vpop.permute.xlu2 %3478  ;;  %v3969_v12 = vsel %vm2066_vm6, %v3937_v38, %v6503_v45 }
 0x48d   : > { %v6516_v63 = vpop.permute.xlu0 %6515  ;;  %10535 = vst [vmem:[#allocation69_spill] sm:$0xff] %v9240_v9  ;;  %v4002_v41 = vsel %vm3984_vm14, %v3969_v12, %v6528_v42  ;;  %v9283_v12 = vld [vmem:[#allocation3 + $0x189] sm:$0xff] }
 0x48e   : > { %v4034_v51 = vsel %vm2165_vm9, %v4002_v41, %v6533_v60  ;;  %v6517_v3 = vunpack.i.l.bf16 %v6516_v63  ;;  %v6522_v41 = vunpack.i.l.bf16 %v9178_v27  ;;  %v6518_v60 = vunpack.i.h.bf16 %v6516_v63 }
 0x48f   : > { %4371 = vmatmul.f32.gmra.mxu3 %v4066_v14 }
 0x490   : > { %v3938_v14 = vsel %vm320_vm11, %v8846_v2, %v6517_v3  ;;  %v9295_v2 = vld [vmem:[#allocation3 + $0x18a] sm:$0xff]  ;;  %v3939_v63 = vsel %vm320_vm11, %v8869_v16, %v6518_v60  ;;  %v6548_v60 = vunpack.i.h.bf16 %v9216_v8 }
 0x492   : > { %3612 = vrot.lane.b32.xlu1 %v9120_v49, %s6761_s21 }
 0x493   : > { %3498 = vrot.lane.b32.xlu0 %v9189_v26, %s6770_s19  ;;  %3726 = vrot.lane.b32.xlu2 %v8871_v37, %s6771_s16  ;;  %v6654_v37 = vpack.i.bf16 %v9264_v19, %v9266_v31 }
 0x494   : > { %v9255_v5 = vpop.permute.xlu1 %3600  ;;  %v9260_v36 = vpop.permute.xlu2 %6555 }
 0x495   : > { %10536 = vst [vmem:[#allocation56_spill] sm:$0xff] %v9255_v5  ;;  %v9257_v46 = vpop.permute.xlu0 %3474 }
 0x496   : > { %10537 = vst [vmem:[#allocation85_spill] sm:$0xff] %v9257_v46  ;;  %v4067_v29 = vsel %vm4049_vm15, %v4034_v51, %v9257_v46  ;;  %v9286_v51 = vld [vmem:[#allocation3 + $0x181] sm:$0xff]  ;;  %v6547_v46 = vunpack.i.l.bf16 %v9216_v8 }
 0x497   : > { %4374 = vmatmul.f32.gmra.mxu3 %v4067_v29 }
 0x49a   : > { %3500 = vrot.lane.b32.xlu1 %v9268_v21, %s6770_s19 }
 0x49b   : > { %3852 = vrot.lane.b32.xlu0 %v8855_v23, %s6763_s15  ;;  %6655 = vrot.lane.b32.xlu2 %v6654_v37, %s6769_s14  ;;  %v6659_v23 = vpack.i.bf16 %v9283_v12, %v9286_v51  ;;  %v3970_v37 = vsel %vm2066_vm6, %v3938_v14, %v6522_v41  ;;  %s269_s14 = sand.u32 1, %s6749_s25  }
 0x49c   : > { %v9277_v45 = vpop.permute.xlu1 %6535  ;;  %v9281_v38 = vpop.permute.xlu2 %3606  ;;  %v4003_v3 = vsel %vm3984_vm14, %v3970_v37, %v6547_v46  ;;  %s5528_s20 = scalar_lea.sflag [#allocation6], %s269_s14 }
 0x49d   : > { %v6551_v42 = vpop.permute.xlu0 %6550  ;;  %10538 = vst [vmem:[#allocation58_spill] sm:$0xff] %v9281_v38  ;;  %v6523_v38 = vunpack.i.h.bf16 %v9178_v27 }
 0x49e   : > { %v6552_v29 = vunpack.i.l.bf16 %v6551_v42  ;;  %v6553_v5 = vunpack.i.h.bf16 %v6551_v42 }
 0x49f   : > { %v3971_v16 = vsel %vm2066_vm6, %v3939_v63, %v6523_v38  ;;  %v6537_v38 = vunpack.i.l.bf16 %v9277_v45  ;;  %v9347_v63 = vpop.f32.mrf.mxu0 }
 0x4a0   : > { %v4004_v46 = vsel %vm3984_vm14, %v3971_v16, %v6548_v60  ;;  %v6542_v16 = vunpack.i.l.bf16 %v9183_v50  ;;  %v6538_v60 = vunpack.i.h.bf16 %v9277_v45  ;;  %v6543_v45 = vunpack.i.h.bf16 %v9183_v50 }
 0x4a1   : > { %v4036_v27 = vsel %vm2165_vm9, %v4004_v46, %v6553_v5 }
 0x4a2   : > { %3728 = vrot.lane.b32.xlu1 %v8934_v62, %s6771_s16  ;;  %v4035_v62 = vsel %vm2165_vm9, %v4003_v3, %v6552_v29  ;;  %v4069_v8 = vsel %vm4049_vm15, %v4036_v27, %v9240_v9  ;;  %v3940_v3 = vsel %vm320_vm11, %v8910_v0, %v6537_v38  ;;  %v3941_v0 = vsel %vm320_vm11, %v8932_v30, %v6538_v60 }
 0x4a3   : > { %6660 = vrot.lane.b32.xlu0 %v6659_v23, %s6766_s18  ;;  %3502 = vrot.lane.b32.xlu2 %v9295_v2, %s6770_s19  ;;  %v3972_v46 = vsel %vm2066_vm6, %v3940_v3, %v6542_v16  ;;  %v3973_v30 = vsel %vm2066_vm6, %v3941_v0, %v6543_v45  ;;  %v6557_v9 = vunpack.i.l.bf16 %v9260_v36  ;;  %s5609_s19 = sshll.u32 %s269_s14, 8 }
 0x4a4   : > { %v9303_v14 = vpop.permute.xlu1 %3476  ;;  %v3609_v6 = vpop.permute.xlu2 %3608  ;;  %s10028_s23 = scalar_lea.vmem [#allocation5], %s5609_s19 }
 0x4a5   : > { %v9305_v41 = vpop.permute.xlu0 %3602  ;;  %v4068_v23 = vsel %vm4049_vm15, %v4035_v62, %v9303_v14 }
 0x4a6   : > { %4377 = vmatmul.f32.gmra.mxu3 %v4068_v23 }
 0x4a7   : > { %v9369_v16 = vpop.f32.mrf.mxu0 }
 0x4aa   : > { %3730 = vrot.lane.b32.xlu1 %v8929_v56, %s6771_s16  ;;  %v9334_v56 = vpop.f32.mrf.mxu3 }
 0x4ab   : > { %3854 = vrot.lane.b32.xlu0 %v8857_v28, %s6763_s15  ;;  %3856 = vrot.lane.b32.xlu2 %v8901_v43, %s6763_s15 }
 0x4ac   : > { %v6571_v29 = vpop.permute.xlu1 %6570 }
 0x4ad   : > { %v9320_v42 = vpop.permute.xlu0 %3604  ;;  %v9322_v37 = vpop.permute.xlu2 %6590  ;;  %v6572_v27 = vunpack.i.l.bf16 %v6571_v29  ;;  %v6573_v60 = vunpack.i.h.bf16 %v6571_v29  ;;  %v3942_v29 = vsel %vm320_vm11, %v8992_v35, %v6557_v9  ;;  %v6558_v9 = vunpack.i.h.bf16 %v9260_v36 }
 0x4ae   : > { %4380 = vmatmul.f32.gmra.mxu3 %v4069_v8 }
 0x4af   : > { %v3943_v36 = vsel %vm320_vm11, %v9018_v4, %v6558_v9 }
 0x4b2   : > { %3732 = vrot.lane.b32.xlu1 %v8988_v10, %s6771_s16 }
 0x4b3   : > { %3614 = vrot.lane.b32.xlu0 %v9118_v32, %s6761_s21  ;;  %3858 = vrot.lane.b32.xlu2 %v8903_v54, %s6763_s15 }
 0x4b4   : > { %v3483_v28 = vpop.permute.xlu1 %3482 }
 0x4b5   : > { %v9332_v43 = vpop.permute.xlu0 %6560  ;;  %v9336_v5 = vpop.permute.xlu2 %3484 }
 0x4ba   : > { %3862 = vrot.lane.b32.xlu1 %v9005_v55, %s6763_s15  ;;  %v9354_v55 = vpop.f32.mrf.mxu3 }
 0x4bb   : > { %3616 = vrot.lane.b32.xlu0 %v9164_v57, %s6761_s21  ;;  %3860 = vrot.lane.b32.xlu2 %v9007_v15, %s6763_s15 }
 0x4bc   : > { %v9345_v10 = vpop.permute.xlu1 %6580 }
 0x4bd   : > { %v6566_v54 = vpop.permute.xlu0 %6565  ;;  %v9351_v23 = vpop.permute.xlu2 %6600  ;;  %v6582_v4 = vunpack.i.l.bf16 %v9345_v10 }
 0x4be   : > { %v6567_v62 = vunpack.i.l.bf16 %v6566_v54  ;;  %v6568_v8 = vunpack.i.h.bf16 %v6566_v54 }
 0x4c0   : > { %v4005_v15 = vsel %vm3984_vm14, %v3972_v46, %v6567_v62  ;;  %v4006_v50 = vsel %vm3984_vm14, %v3973_v30, %v6568_v8  ;;  %v9390_v8 = vpop.f32.mrf.mxu0  ;;  %v6592_v30 = vunpack.i.l.bf16 %v9322_v37 }
 0x4c1   : > { %v4037_v62 = vsel %vm2165_vm9, %v4005_v15, %v6572_v27  ;;  %v6562_v15 = vunpack.i.l.bf16 %v9332_v43 }
 0x4c2   : > { %3864 = vrot.lane.b32.xlu1 %v9027_v39, %s6763_s15  ;;  %v9378_v54 = vpop.f32.mrf.mxu3 }
 0x4c3   : > { %3734 = vrot.lane.b32.xlu0 %v8982_v59, %s6771_s16  ;;  %3618 = vrot.lane.b32.xlu2 %v9159_v1, %s6761_s21 }
 0x4c4   : > { %v6586_v38 = vpop.permute.xlu1 %6585 }
 0x4c5   : > { %v3481_v3 = vpop.permute.xlu0 %3480  ;;  %v9374_v46 = vpop.permute.xlu2 %6605  ;;  %v6587_v27 = vunpack.i.l.bf16 %v6586_v38 }
 0x4c6   : > { %v9372_v39 = vsel %vm277_vm2, %v3481_v3, %v3609_v6  ;;  %v4070_v59 = vsel %vm4049_vm15, %v4037_v62, %v3481_v3  ;;  %v4038_v6 = vsel %vm2165_vm9, %v4006_v50, %v6573_v60  ;;  %v3974_v62 = vsel %vm2066_vm6, %v3942_v29, %v6562_v15 }
 0x4c7   : > { %4383 = vmatmul.f32.gmra.mxu3 %v4070_v59  ;;  %v4007_v59 = vsel %vm3984_vm14, %v3974_v62, %v6587_v27  ;;  %v6588_v27 = vunpack.i.h.bf16 %v6586_v38  ;;  %v6593_v62 = vunpack.i.h.bf16 %v9322_v37 }
 0x4c8   : > { %v4039_v35 = vsel %vm2165_vm9, %v4007_v59, %v6592_v30 }
 0x4ca   : > { %3866 = vrot.lane.b32.xlu1 %v9029_v44, %s6763_s15  ;;  %v9403_v50 = vpop.f32.mrf.mxu3 }
 0x4cb   : > { %3736 = vrot.lane.b32.xlu0 %v9064_v18, %s6771_s16  ;;  %3620 = vrot.lane.b32.xlu2 %v9225_v22, %s6761_s21  ;;  %v4071_v18 = vsel %vm4049_vm15, %v4038_v6, %v3483_v28  ;;  %v9418_v6 = vpop.f32.mrf.mxu0 }
 0x4cc   : > { %v3611_v0 = vpop.permute.xlu1 %3610 }
 0x4cd   : > { %v6576_v45 = vpop.permute.xlu0 %6575  ;;  %v9395_v3 = vsel %vm277_vm2, %v3483_v28, %v3611_v0  ;;  %v9397_v44 = vpop.permute.xlu2 %3490  ;;  %v6563_v28 = vunpack.i.h.bf16 %v9332_v43 }
 0x4ce   : > { %v6577_v29 = vunpack.i.l.bf16 %v6576_v45 }
 0x4cf   : > { %4386 = vmatmul.f32.gmra.mxu3 %v4071_v18 }
 0x4d0   : > { %v3944_v38 = vsel %vm320_vm11, %v9041_v40, %v6577_v29 }
 0x4d1   : > { %v3976_v40 = vsel %vm2066_vm6, %v3944_v38, %v6582_v4 }
 0x4d2   : > { %3622 = vrot.lane.b32.xlu1 %v9221_v52, %s6761_s21  ;;  %v9427_v43 = vpop.f32.mrf.mxu3 }
 0x4d3   : > { %3738 = vrot.lane.b32.xlu0 %v9056_v33, %s6771_s16  ;;  %3740 = vrot.lane.b32.xlu2 %v9104_v24, %s6771_s16  ;;  %v4072_v33 = vsel %vm4049_vm15, %v4039_v35, %v9336_v5  ;;  %v3975_v24 = vsel %vm2066_vm6, %v3943_v36, %v6563_v28  ;;  %v9443_v37 = vpop.f32.mrf.mxu0  ;;  %v6578_v28 = vunpack.i.h.bf16 %v6576_v45  ;;  %v6583_v45 = vunpack.i.h.bf16 %v9345_v10 }
 0x4d4   : > { %v9414_v60 = vpop.permute.xlu1 %6595  ;;  %v4008_v18 = vsel %vm3984_vm14, %v3975_v24, %v6588_v27 }
 0x4d5   : > { %v9416_v15 = vpop.permute.xlu0 %3486  ;;  %v9420_v0 = vpop.permute.xlu2 %6615  ;;  %v4040_v35 = vsel %vm2165_vm9, %v4008_v18, %v6593_v62  ;;  %v3945_v29 = vsel %vm320_vm11, %v9051_v11, %v6578_v28  ;;  %v6608_v11 = vunpack.i.h.bf16 %v9374_v46 }
 0x4d6   : > { %v3977_v38 = vsel %vm2066_vm6, %v3945_v29, %v6583_v45 }
 0x4d7   : > { %4389 = vmatmul.f32.gmra.mxu3 %v4072_v33  ;;  %v4010_v10 = vsel %vm3984_vm14, %v3977_v38, %v6608_v11 }
 0x4da   : > { %3624 = vrot.lane.b32.xlu1 %v9266_v31, %s6761_s21  ;;  %v9457_v36 = vpop.f32.mrf.mxu3 }
 0x4db   : > { %3868 = vrot.lane.b32.xlu0 %v9100_v48, %s6763_s15  ;;  %3742 = vrot.lane.b32.xlu2 %v9097_v13, %s6771_s16  ;;  %v4073_v48 = vsel %vm4049_vm15, %v4040_v35, %v9416_v15  ;;  %v6607_v13 = vunpack.i.l.bf16 %v9374_v46  ;;  %v9471_v4 = vpop.f32.mrf.mxu0 }
 0x4dc   : > { %v9440_v59 = vpop.permute.xlu1 %3488 }
 0x4dd   : > { %v6611_v30 = vpop.permute.xlu0 %6610  ;;  %v9445_v9 = vpop.permute.xlu2 %6650  ;;  %v4009_v27 = vsel %vm3984_vm14, %v3976_v40, %v6607_v13 }
 0x4de   : > { %v6612_v31 = vunpack.i.l.bf16 %v6611_v30 }
 0x4df   : > { %4392 = vmatmul.f32.gmra.mxu3 %v4073_v48 }
 0x4e0   : > { %v4041_v33 = vsel %vm2165_vm9, %v4009_v27, %v6612_v31  ;;  %v6598_v27 = vunpack.i.h.bf16 %v9414_v60 }
 0x4e2   : > { %3746 = vrot.lane.b32.xlu1 %v9134_v17, %s6771_s16  ;;  %v6613_v17 = vunpack.i.h.bf16 %v6611_v30  ;;  %v9481_v30 = vpop.f32.mrf.mxu3  ;;  %v3947_v45 = vsel %vm320_vm11, %v9118_v32, %v6598_v27 }
 0x4e3   : > { %3870 = vrot.lane.b32.xlu0 %v9102_v20, %s6763_s15  ;;  %3744 = vrot.lane.b32.xlu2 %v9140_v53, %s6771_s16  ;;  %v4074_v20 = vsel %vm4049_vm15, %v4041_v33, %v9440_v59  ;;  %v6597_v53 = vunpack.i.l.bf16 %v9414_v60  ;;  %v9494_v28 = vpop.f32.mrf.mxu0  ;;  %v6603_v60 = vunpack.i.h.bf16 %v9351_v23 }
 0x4e4   : > { %v6631_v24 = vpop.permute.xlu1 %6630  ;;  %v4042_v35 = vsel %vm2165_vm9, %v4010_v10, %v6613_v17 }
 0x4e5   : > { %v9464_v18 = vpop.permute.xlu0 %6620  ;;  %v9466_v62 = vpop.permute.xlu2 %3496  ;;  %v3946_v31 = vsel %vm320_vm11, %v9120_v49, %v6597_v53  ;;  %v6632_v29 = vunpack.i.l.bf16 %v6631_v24  ;;  %v10539_v49 = vld [vmem:[#allocation81_spill] sm:$0xff]  ;;  %v3979_v32 = vsel %vm2066_vm6, %v3947_v45, %v6603_v60  ;;  %v2862_v60 = vld [vmem:[#allocation3 + $0x199] sm:$0xff] }
 0x4e7   : > { %4395 = vmatmul.f32.gmra.mxu3 %v4074_v20 }
 0x4ea   : > { %3748 = vrot.lane.b32.xlu1 %v9198_v34, %s6771_s16  ;;  %v4075_v34 = vsel %vm4049_vm15, %v4042_v35, %v9397_v44  ;;  %v9513_v53 = vpop.f32.mrf.mxu3  ;;  %v2894_v35 = vld [vmem:[#allocation3 + $0x19a] sm:$0xff] }
 0x4eb   : > { %3872 = vrot.lane.b32.xlu0 %v9136_v58, %s6763_s15  ;;  %3874 = vrot.lane.b32.xlu2 %v9138_v25, %s6763_s15  ;;  %v6602_v58 = vunpack.i.l.bf16 %v9351_v23 }
 0x4ec   : > { %v9485_v48 = vpop.permute.xlu1 %3494 }
 0x4ed   : > { %v6626_v46 = vpop.permute.xlu0 %6625  ;;  %v9489_v13 = vpop.permute.xlu2 %3726  ;;  %v3978_v25 = vsel %vm2066_vm6, %v3946_v31, %v6602_v58 }
 0x4ee   : > { %v6627_v40 = vunpack.i.l.bf16 %v6626_v46  ;;  %v6628_v20 = vunpack.i.h.bf16 %v6626_v46  ;;  %v6633_v46 = vunpack.i.h.bf16 %v6631_v24  ;;  %v9521_v31 = vpop.f32.mrf.mxu0 }
 0x4ef   : > { %4398 = vmatmul.f32.gmra.mxu3 %v4075_v34  ;;  %v6622_v34 = vunpack.i.l.bf16 %v9464_v18 }
 0x4f0   : > { %v4011_v33 = vsel %vm3984_vm14, %v3978_v25, %v6627_v40  ;;  %v4012_v23 = vsel %vm3984_vm14, %v3979_v32, %v6628_v20  ;;  %v6617_v40 = vunpack.i.l.bf16 %v9420_v0  ;;  %v6618_v32 = vunpack.i.h.bf16 %v9420_v0  ;;  %v2831_v0 = vld [vmem:[#allocation3 + $0x1a0] sm:$0xff] }
 0x4f1   : > { %v4043_v11 = vsel %vm2165_vm9, %v4011_v33, %v6632_v29  ;;  %v4044_v58 = vsel %vm2165_vm9, %v4012_v23, %v6633_v46 }
 0x4f2   : > { %3750 = vrot.lane.b32.xlu1 %v10539_v49, %s6771_s16  ;;  %v9532_v33 = vpop.f32.mrf.mxu3  ;;  %v3948_v24 = vsel %vm320_vm11, %v9164_v57, %v6617_v40  ;;  %v4077_v49 = vsel %vm4049_vm15, %v4044_v58, %v9485_v48 }
 0x4f3   : > { %3626 = vrot.lane.b32.xlu0 %v9264_v19, %s6761_s21  ;;  %3876 = vrot.lane.b32.xlu2 %v9187_v47, %s6763_s15  ;;  %v2830_v47 = vld [vmem:[#allocation3 + $0x198] sm:$0xff]  ;;  %v3980_v45 = vsel %vm2066_vm6, %v3948_v24, %v6622_v34  ;;  %v3949_v34 = vsel %vm320_vm11, %v9159_v1, %v6618_v32  ;;  %v10540_v24 = vld [vmem:[#allocation60_spill] sm:$0xff] }
 0x4f4   : > { %v9508_v17 = vpop.permute.xlu1 %6640 }
 0x4f5   : > { %v9510_v38 = vpop.permute.xlu0 %3492  ;;  %v9515_v10 = vpop.permute.xlu2 %6655 }
 0x4f6   : > { %v4076_v19 = vsel %vm4049_vm15, %v4043_v11, %v9510_v38  ;;  %v6652_v11 = vunpack.i.l.bf16 %v9445_v9 }
 0x4f7   : > { %4401 = vmatmul.f32.gmra.mxu3 %v4076_v19  ;;  %v9547_v19 = vpop.f32.mrf.mxu0 }
 0x4fa   : > { %3884 = vrot.lane.b32.xlu1 %v2894_v35, %s6763_s15  ;;  %v6623_v35 = vunpack.i.h.bf16 %v9464_v18  ;;  %v9559_v40 = vpop.f32.mrf.mxu3  ;;  %v10541_v18 = vld [vmem:[#allocation73_spill] sm:$0xff] }
 0x4fb   : > { %3628 = vrot.lane.b32.xlu0 %v2830_v47, %s6761_s21  ;;  %3878 = vrot.lane.b32.xlu2 %v9189_v26, %s6763_s15 }
 0x4fc   : > { %v6646_v27 = vpop.permute.xlu1 %6645  ;;  %v3981_v58 = vsel %vm2066_vm6, %v3949_v34, %v6623_v35 }
 0x4fd   : > { %v9530_v25 = vpop.permute.xlu0 %6635  ;;  %v6647_v29 = vunpack.i.l.bf16 %v6646_v27  ;;  %v9539_v20 = vpop.permute.xlu2 %3502  ;;  %v6648_v46 = vunpack.i.h.bf16 %v6646_v27 }
 0x4ff   : > { %4404 = vmatmul.f32.gmra.mxu3 %v4077_v49  ;;  %v4013_v26 = vsel %vm3984_vm14, %v3980_v45, %v6647_v29  ;;  %v4096_v29 = vsel %vm277_vm2, %v10541_v18, %v10540_v24  ;;  %v4014_v27 = vsel %vm3984_vm14, %v3981_v58, %v6648_v46  ;;  %v6653_v45 = vunpack.i.h.bf16 %v9445_v9  ;;  %v9574_v1 = vpop.f32.mrf.mxu0  ;;  %v10542_v9 = vld [vmem:[#allocation50_spill] sm:$0xff] }
 0x500   : > { %v4045_v57 = vsel %vm2165_vm9, %v4013_v26, %v6652_v11  ;;  %v6637_v26 = vunpack.i.l.bf16 %v9530_v25  ;;  %v4129_v32 = vsel %vm4114_vm0, %v4096_v29, %v10542_v9  ;;  %v6642_v24 = vunpack.i.l.bf16 %v9508_v17 }
 0x501   : > { %v6638_v18 = vunpack.i.h.bf16 %v9530_v25 }
 0x502   : > { %3880 = vrot.lane.b32.xlu1 %v9268_v21, %s6763_s15  ;;  %v4078_v21 = vsel %vm4049_vm15, %v4045_v57, %v9466_v62  ;;  %v9594_v34 = vpop.f32.mrf.mxu3 }
 0x503   : > { %3756 = vrot.lane.b32.xlu0 %v2862_v60, %s6771_s16  ;;  %3752 = vrot.lane.b32.xlu2 %v9286_v51, %s6771_s16  ;;  %v2863_v51 = vld [vmem:[#allocation3 + $0x1a1] sm:$0xff]  ;;  %v9580_v60 = vld [vmem:[%s10294_s6] ss:$0 sm:$0xff]  ;;  %v3951_v9 = vsel %vm320_vm11, %v9221_v52, %v6638_v18 }
 0x504   : > { %v9553_v47 = vpop.permute.xlu1 %3612  ;;  %v4325_v25 = vadd.f32 %v9580_v60, %v9334_v56 }
 0x505   : > { %v9555_v23 = vpop.permute.xlu0 %3498  ;;  %v9567_v49 = vpop.permute.xlu2 %3856 }
 0x507   : > { %4407 = vmatmul.f32.gmra.mxu3 %v4078_v21  ;;  %v4328_v21 = vadd.f32 %v9580_v60, %v9354_v55  ;;  %v4467_v55 = vpop.f32.mrf.mxu0 }
 0x509   : > { %v4441_v58 = vadd.f32 %v9369_v16, %v4328_v21  ;;  %v6657_v16 = vunpack.i.l.bf16 %v9515_v10 }
 0x50a   : > { %3754 = vrot.lane.b32.xlu1 %v9283_v12, %s6771_s16  ;;  %v4046_v12 = vsel %vm2165_vm9, %v4014_v27, %v6653_v45 }
 0x50b   : > { %3630 = vrot.lane.b32.xlu0 %v2831_v0, %s6761_s21  ;;  %3758 = vrot.lane.b32.xlu2 %v2863_v51, %s6771_s16  ;;  %v4079_v46 = vsel %vm4049_vm15, %v4046_v12, %v9555_v23  ;;  %v2895_v0 = vld [vmem:[#allocation3 + $0x1a2] sm:$0xff]  ;;  %v3950_v51 = vsel %vm320_vm11, %v9225_v22, %v6637_v26  ;;  %v6643_v12 = vunpack.i.h.bf16 %v9508_v17 }
 0x50c   : > { %v9583_v11 = vpop.permute.xlu1 %3500  ;;  %v3982_v27 = vsel %vm2066_vm6, %v3950_v51, %v6642_v24 }
 0x50d   : > { %v3853_v57 = vpop.permute.xlu0 %3852  ;;  %v9603_v29 = vpop.permute.xlu2 %3858 }
 0x50e   : > { %v4161_v35 = vsel %vm2099_vm7, %v4129_v32, %v3853_v57  ;;  %v4337_v57 = vadd.f32 %v9580_v60, %v9427_v43  ;;  %v4015_v32 = vsel %vm3984_vm14, %v3982_v27, %v6657_v16  ;;  %v4334_v16 = vadd.f32 %v9580_v60, %v9403_v50 }
 0x50f   : > { %4410 = vmatmul.f32.gmra.mxu3 %v4079_v46  ;;  %5691 = vmatmul.msk.f32.gmra.mxu0 %vm4210_vm1, %v4161_v35  ;;  %v4438_v46 = vadd.f32 %v9347_v63, %v4325_v25  ;;  %v4097_v63 = vsel %vm277_vm2, %v9128_v61, %v9238_v7  ;;  %v4470_v24 = vpop.f32.mrf.mxu0  ;;  %v4346_v61 = vadd.f32 %v9580_v60, %v9513_v53 }
 0x510   : > { %v4450_v21 = vadd.f32 %v9443_v37, %v4337_v57  ;;  %v4340_v7 = vadd.f32 %v9580_v60, %v9457_v36  ;;  %v10543_v57 = vld [vmem:[#allocation56_spill] sm:$0xff] }
 0x512   : > { %5208 = vrot.lane.b32.xlu1 %v4441_v58, %s6771_s16  ;;  %v3983_v58 = vsel %vm2066_vm6, %v3951_v9, %v6643_v12  ;;  %v4453_v25 = vadd.f32 %v9471_v4, %v4340_v7  ;;  %v10544_v9 = vld [vmem:[#allocation74_spill] sm:$0xff]  ;;  %v4355_v12 = vadd.f32 %v9580_v60, %v9594_v34 }
 0x513   : > { %3886 = vrot.lane.b32.xlu0 %v2895_v0, %s6763_s15  ;;  %3882 = vrot.lane.b32.xlu2 %v9295_v2, %s6763_s15  ;;  %v4331_v2 = vadd.f32 %v9580_v60, %v9378_v54  ;;  %v4357_v0 = vpop.f32.mrf.mxu3  ;;  %v6658_v54 = vunpack.i.h.bf16 %v9515_v10  ;;  %v4098_v50 = vsel %vm277_vm2, %v10544_v9, %v10543_v57 }
 0x514   : > { %v3729_v45 = vpop.permute.xlu1 %3728 }
 0x515   : > { %v6661_v22 = vpop.permute.xlu0 %6660  ;;  %v4444_v43 = vadd.f32 %v9390_v8, %v4331_v2  ;;  %v4130_v8 = vsel %vm4114_vm0, %v4097_v63, %v9489_v13  ;;  %v4016_v51 = vsel %vm3984_vm14, %v3983_v58, %v6658_v54  ;;  %v3861_v18 = vpop.permute.xlu2 %3860  ;;  %v4447_v13 = vadd.f32 %v9418_v6, %v4334_v16 }
 0x516   : > { %v6662_v26 = vunpack.i.l.bf16 %v6661_v22  ;;  %v6663_v52 = vunpack.i.h.bf16 %v6661_v22  ;;  %v4459_v22 = vadd.f32 %v9521_v31, %v4346_v61  ;;  %v4131_v53 = vsel %vm4114_vm0, %v4098_v50, %v3729_v45 }
 0x517   : > { %v4473_v31 = vpop.f32.mrf.mxu0  ;;  %v4163_v4 = vsel %vm2099_vm7, %v4131_v53, %v9567_v49  ;;  %v4343_v2 = vadd.f32 %v9580_v60, %v9481_v30  ;;  %v4349_v45 = vadd.f32 %v9580_v60, %v9532_v33 }
 0x518   : > { %v4047_v35 = vsel %vm2165_vm9, %v4015_v32, %v6662_v26  ;;  %v4048_v27 = vsel %vm2165_vm9, %v4016_v51, %v6663_v52 }
 0x519   : > { %v4080_v56 = vsel %vm4049_vm15, %v4047_v35, %v9583_v11  ;;  %v4081_v26 = vsel %vm4049_vm15, %v4048_v27, %v9539_v20 }
 0x51a   : > { %4413 = vmatmul.f32.gmra.mxu3 %v4080_v56  ;;  %5214 = vrot.lane.b32.xlu1 %v4450_v21, %s6771_s16  ;;  %v4468_v21 = vadd.f32 %v4467_v55, %v4355_v12  ;;  %v10545_v56 = vld [vmem:[#allocation85_spill] sm:$0xff]  ;;  %v4358_v55 = vadd.f32 %v9580_v60, %v4357_v0 }
 0x51b   : > { %5206 = vrot.lane.b32.xlu0 %v4438_v46, %s6771_s16  ;;  %5210 = vrot.lane.b32.xlu2 %v4444_v43, %s6771_s16  ;;  %v4360_v32 = vpop.f32.mrf.mxu3  ;;  %v4456_v46 = vadd.f32 %v9494_v28, %v4343_v2  ;;  %v4099_v49 = vsel %vm277_vm2, %v10545_v56, %v9305_v41  ;;  %v4462_v43 = vadd.f32 %v9547_v19, %v4349_v45 }
 0x51c   : > { %v3731_v37 = vpop.permute.xlu1 %3730  ;;  %v4352_v41 = vadd.f32 %v9580_v60, %v9559_v40 }
 0x51d   : > { %v3855_v17 = vpop.permute.xlu0 %3854  ;;  %v9668_v35 = vpop.permute.xlu2 %3618  ;;  %v4132_v30 = vsel %vm4114_vm0, %v4099_v49, %v3731_v37  ;;  %v4471_v37 = vadd.f32 %v4470_v24, %v4358_v55 }
 0x51e   : > { %v4162_v10 = vsel %vm2099_vm7, %v4130_v8, %v3855_v17  ;;  %v4164_v28 = vsel %vm2099_vm7, %v4132_v30, %v9603_v29  ;;  %v4465_v54 = vadd.f32 %v9574_v1, %v4352_v41  ;;  %v4100_v8 = vsel %vm277_vm2, %v9303_v14, %v9320_v42  ;;  %v10546_v14 = vld [vmem:[#allocation58_spill] sm:$0xff]  ;;  %v10547_v42 = vld [vmem:[#allocation69_spill] sm:$0xff] }
 0x51f   : > { %5692 = vmatmul.msk.f32.gmra.mxu0 %vm4210_vm1, %v4162_v10  ;;  %v4476_v58 = vpop.f32.mrf.mxu0  ;;  %v4361_v1 = vadd.f32 %v9580_v60, %v4360_v32  ;;  %v4101_v24 = vsel %vm277_vm2, %v10547_v42, %v10546_v14  ;;  %v10548_v14 = vmov 0.0  }
 0x520   : > { %374 = vst.msk [vmem:[#allocation4 + $0x18] sm:$0x1] %vm373_vm3, %v10548_v14 }
 0x521   : > { %v4474_v10 = vadd.f32 %v4473_v31, %v4361_v1  ;;  %375 = vst.msk [vmem:[#allocation4 + $0x30] sm:$0x1] %vm373_vm3, %v10548_v14 }
 0x522   : > { %4416 = vmatmul.f32.gmra.mxu3 %v4081_v26  ;;  %5220 = vrot.lane.b32.xlu1 %v4459_v22, %s6771_s16  ;;  %376 = vst.msk [vmem:[#allocation4 + $0x48] sm:$0x1] %vm373_vm3, %v10548_v14 }
 0x523   : > { %5212 = vrot.lane.b32.xlu0 %v4447_v13, %s6771_s16  ;;  %5216 = vrot.lane.b32.xlu2 %v4453_v25, %s6771_s16  ;;  %v4363_v34 = vpop.f32.mrf.mxu3  ;;  %377 = vst.msk [vmem:[#allocation4 + $0x60] sm:$0x1] %vm373_vm3, %v10548_v14 }
 0x524   : > { %v3733_v6 = vpop.permute.xlu1 %3732  ;;  %v4364_v19 = vadd.f32 %v9580_v60, %v4363_v34  ;;  %378 = vst.msk [vmem:[#allocation4 + $0x78] sm:$0x1] %vm373_vm3, %v10548_v14 }
 0x525   : > { %v9657_v36 = vpop.permute.xlu0 %3614  ;;  %v3621_v17 = vpop.permute.xlu2 %3620  ;;  %v4133_v29 = vsel %vm4114_vm0, %v4100_v8, %v3733_v6  ;;  %379 = vst.msk [vmem:[#allocation4 + $0x90] sm:$0x1] %vm373_vm3, %v10548_v14 }
 0x526   : > { %v4477_v63 = vadd.f32 %v4476_v58, %v4364_v19  ;;  %v4165_v0 = vsel %vm2099_vm7, %v4133_v29, %v3861_v18  ;;  %v4105_v45 = vsel %vm277_vm2, %v9416_v15, %v9657_v36  ;;  %v4107_v15 = vsel %vm277_vm2, %v9397_v44, %v9668_v35  ;;  %380 = vst.msk [vmem:[#allocation4 + $0xa8] sm:$0x1] %vm373_vm3, %v10548_v14 }
 0x527   : > { %5693 = vmatmul.msk.f32.gmra.mxu0 %vm4210_vm1, %v4163_v4  ;;  %381 = vst.msk [vmem:[#allocation4 + $0xc0] sm:$0x1] %vm373_vm3, %v10548_v14 }
 0x528   : > { %382 = vst.msk [vmem:[#allocation4 + $0xd8] sm:$0x1] %vm373_vm3, %v10548_v14 }
 0x529   : > { %383 = vst.msk [vmem:[#allocation4 + $0xf0] sm:$0x1] %vm373_vm3, %v10548_v14 }
 0x52a   : > { %5226 = vrot.lane.b32.xlu1 %v4468_v21, %s6771_s16  ;;  %384 = vst.msk [vmem:[#allocation4 + $0x108] sm:$0x1] %vm373_vm3, %v10548_v14 }
 0x52b   : > { %5218 = vrot.lane.b32.xlu0 %v4456_v46, %s6771_s16  ;;  %5222 = vrot.lane.b32.xlu2 %v4462_v43, %s6771_s16  ;;  %385 = vst.msk [vmem:[#allocation4 + $0x120] sm:$0x1] %vm373_vm3, %v10548_v14 }
 0x52c   : > { %v3863_v33 = vpop.permute.xlu1 %3862  ;;  %386 = vst.msk [vmem:[#allocation4 + $0x138] sm:$0x1] %vm373_vm3, %v10548_v14 }
 0x52d   : > { %v3617_v52 = vpop.permute.xlu0 %3616  ;;  %v3741_v16 = vpop.permute.xlu2 %3740  ;;  %387 = vst.msk [vmem:[#allocation4 + $0x150] sm:$0x1] %vm373_vm3, %v10548_v14 }
 0x52e   : > { %388 = vst.msk [vmem:[#allocation4 + $0x168] sm:$0x1] %vm373_vm3, %v10548_v14 }
 0x52f   : > { %5694 = vmatmul.msk.f32.gmra.mxu0 %vm4210_vm1, %v4164_v28  ;;  %v4366_v28 = vpop.f32.mrf.mxu3  ;;  %389 = vst.msk [vmem:[#allocation4 + $0x180] sm:$0x1] %vm373_vm3, %v10548_v14 }
 0x530   : > { %390 = vst.msk [vmem:[#allocation4 + $0x29] sm:$0x1] %vm373_vm3, %v10548_v14 }
 0x531   : > { %391 = vst.msk [vmem:[#allocation4 + $0x41] sm:$0x1] %vm373_vm3, %v10548_v14 }
 0x532   : > { %5232 = vrot.lane.b32.xlu1 %v4477_v63, %s6771_s16  ;;  %392 = vst.msk [vmem:[#allocation4 + $0x59] sm:$0x1] %vm373_vm3, %v10548_v14 }
 0x533   : > { %5224 = vrot.lane.b32.xlu0 %v4465_v54, %s6771_s16  ;;  %5228 = vrot.lane.b32.xlu2 %v4471_v37, %s6771_s16  ;;  %393 = vst.msk [vmem:[#allocation4 + $0x71] sm:$0x1] %vm373_vm3, %v10548_v14 }
 0x534   : > { %v3865_v40 = vpop.permute.xlu1 %3864  ;;  %394 = vst.msk [vmem:[#allocation4 + $0x89] sm:$0x1] %vm373_vm3, %v10548_v14 }
 0x535   : > { %v3735_v51 = vpop.permute.xlu0 %3734  ;;  %v3743_v57 = vpop.permute.xlu2 %3742  ;;  %395 = vst.msk [vmem:[#allocation4 + $0xa1] sm:$0x1] %vm373_vm3, %v10548_v14 }
 0x536   : > { %v4134_v27 = vsel %vm4114_vm0, %v4101_v24, %v3735_v51  ;;  %v4138_v46 = vsel %vm4114_vm0, %v4105_v45, %v3743_v57  ;;  %v4565_v57 = vld [vmem:[#allocation4] sm:$0xff]  ;;  %396 = vst.msk [vmem:[#allocation4 + $0xb9] sm:$0x1] %vm373_vm3, %v10548_v14 }
 0x537   : > { %5695 = vmatmul.msk.f32.gmra.mxu0 %vm4210_vm1, %v4165_v0  ;;  %v4166_v13 = vsel %vm2099_vm7, %v4134_v27, %v3863_v33  ;;  %v9744_v37 = vpop.f32.mrf.mxu3  ;;  %397 = vst.msk [vmem:[#allocation4 + $0xd1] sm:$0x1] %vm373_vm3, %v10548_v14 }
 0x538   : > { %398 = vst.msk [vmem:[#allocation4 + $0xe9] sm:$0x1] %vm373_vm3, %v10548_v14 }
 0x539   : > { %399 = vst.msk [vmem:[#allocation4 + $0x101] sm:$0x1] %vm373_vm3, %v10548_v14 }
 0x53a   : > { %400 = vst.msk [vmem:[#allocation4 + $0x119] sm:$0x1] %vm373_vm3, %v10548_v14 }
 0x53b   : > { %5230 = vrot.lane.b32.xlu0 %v4474_v10, %s6771_s16  ;;  %401 = vst.msk [vmem:[#allocation4 + $0x131] sm:$0x1] %vm373_vm3, %v10548_v14 }
 0x53c   : > { %v3867_v61 = vpop.permute.xlu1 %3866  ;;  %402 = vst.msk [vmem:[#allocation4 + $0x149] sm:$0x1] %vm373_vm3, %v10548_v14 }
 0x53d   : > { %v3737_v7 = vpop.permute.xlu0 %3736  ;;  %v3745_v6 = vpop.permute.xlu2 %3744  ;;  %403 = vst.msk [vmem:[#allocation4 + $0x161] sm:$0x1] %vm373_vm3, %v10548_v14 }
 0x53e   : > { %v4135_v18 = vsel %vm4114_vm0, %v9372_v39, %v3737_v7  ;;  %v4104_v39 = vsel %vm277_vm2, %v9336_v5, %v9553_v47  ;;  %v4106_v47 = vsel %vm277_vm2, %v9440_v59, %v3617_v52  ;;  %v4108_v52 = vsel %vm277_vm2, %v9510_v38, %v3621_v17  ;;  %404 = vst.msk [vmem:[#allocation4 + $0x179] sm:$0x1] %vm373_vm3, %v10548_v14 }
 0x53f   : > { %5696 = vmatmul.msk.f32.gmra.mxu0 %vm4210_vm1, %v4166_v13  ;;  %v4167_v25 = vsel %vm2099_vm7, %v4135_v18, %v3865_v40  ;;  %v4137_v31 = vsel %vm4114_vm0, %v4104_v39, %v3741_v16  ;;  %v4139_v49 = vsel %vm4114_vm0, %v4106_v47, %v3745_v6  ;;  %v9752_v0 = vpop.f32.mrf.mxu3  ;;  %v4367_v7 = vadd.f32 %v9580_v60, %v4366_v28  ;;  %v4757_v39 = vld [vmem:[#allocation4 + $0x18] sm:$0xff]  ;;  %v4758_v28 = vld [vmem:[#allocation4 + $0x20] sm:$0xff] }
 0x540   : > { %405 = vst.msk [vmem:[#allocation4 + $0x191] sm:$0x1] %vm373_vm3, %v10548_v14 }
 0x544   : > { %v3623_v22 = vpop.permute.xlu1 %3622 }
 0x545   : > { %v3739_v26 = vpop.permute.xlu0 %3738  ;;  %v4109_v17 = vsel %vm277_vm2, %v9485_v48, %v3623_v22 }
 0x546   : > { %v4136_v9 = vsel %vm4114_vm0, %v9395_v3, %v3739_v26  ;;  %v3875_v3 = vpop.permute.xlu2 %3874 }
 0x547   : > { %5697 = vmatmul.msk.f32.gmra.mxu0 %vm4210_vm1, %v4167_v25  ;;  %v4168_v53 = vsel %vm2099_vm7, %v4136_v9, %v3867_v61  ;;  %v9786_v18 = vpop.f32.mrf.mxu3  ;;  %v4629_v9 = vld [vmem:[#allocation4 + $0x1] sm:$0xff] }
 0x54c   : > { %v3625_v50 = vpop.permute.xlu1 %3624 }
 0x54d   : > { %v3869_v32 = vpop.permute.xlu0 %3868  ;;  %v4110_v48 = vsel %vm277_vm2, %v9466_v62, %v3625_v50  ;;  %v4661_v50 = vadd.f32 %v4629_v9, %v4565_v57 }
 0x54e   : > { %v4169_v2 = vsel %vm2099_vm7, %v4137_v31, %v3869_v32  ;;  %v3877_v43 = vpop.permute.xlu2 %3876  ;;  %v4370_v31 = vadd.f32 %v9580_v60, %v9744_v37 }
 0x54f   : > { %5698 = vmatmul.msk.f32.gmra.mxu0 %vm4210_vm1, %v4168_v53  ;;  %v9807_v32 = vpop.f32.mrf.mxu3  ;;  %v4693_v53 = vld [vmem:[#allocation4 + $0x2] sm:$0xff] }
 0x550   : > { %v4725_v6 = vadd.f32 %v4693_v53, %v4661_v50  ;;  %v5017_v50 = vld [vmem:[#allocation4 + $0x51] sm:$0xff] }
 0x554   : > { %v3747_v12 = vpop.permute.xlu1 %3746 }
 0x555   : > { %v3871_v4 = vpop.permute.xlu0 %3870  ;;  %v4140_v33 = vsel %vm4114_vm0, %v4107_v15, %v3747_v12  ;;  %v4821_v12 = vld [vmem:[#allocation4 + $0x19] sm:$0xff] }
 0x556   : > { %v4170_v56 = vsel %vm2099_vm7, %v4138_v46, %v3871_v4  ;;  %v4172_v41 = vsel %vm2099_vm7, %v4140_v33, %v3875_v3  ;;  %v3879_v59 = vpop.permute.xlu2 %3878  ;;  %v4789_v4 = vadd.f32 %v4757_v39, %v4725_v6  ;;  %v5014_v33 = vld [vmem:[#allocation4 + $0x31] sm:$0xff] }
 0x557   : > { %5699 = vmatmul.msk.f32.gmra.mxu0 %vm4210_vm1, %v4169_v2  ;;  %v9831_v45 = vpop.f32.mrf.mxu3  ;;  %v5080_v6 = vld [vmem:[#allocation4 + $0x4a] sm:$0xff] }
 0x558   : > { %v4853_v46 = vadd.f32 %v4821_v12, %v4789_v4 }
 0x55c   : > { %v3749_v5 = vpop.permute.xlu1 %3748 }
 0x55d   : > { %v3873_v21 = vpop.permute.xlu0 %3872  ;;  %v4141_v19 = vsel %vm4114_vm0, %v4108_v52, %v3749_v5  ;;  %v4373_v5 = vadd.f32 %v9580_v60, %v9752_v0  ;;  %v4822_v52 = vld [vmem:[#allocation4 + $0x21] sm:$0xff] }
 0x55e   : > { %v4171_v34 = vsel %vm2099_vm7, %v4139_v49, %v3873_v21  ;;  %v4173_v63 = vsel %vm2099_vm7, %v4141_v19, %v3877_v43  ;;  %v3753_v38 = vpop.permute.xlu2 %3752  ;;  %v4885_v21 = vld [vmem:[#allocation4 + $0x1a] sm:$0xff]  ;;  %v4950_v43 = vld [vmem:[#allocation4 + $0x30] sm:$0xff] }
 0x55f   : > { %5700 = vmatmul.msk.f32.gmra.mxu0 %vm4210_vm1, %v4170_v56  ;;  %v4143_v42 = vsel %vm4114_vm0, %v4110_v48, %v3753_v38  ;;  %v4663_v56 = vadd.f32 %v4821_v12, %v4757_v39  ;;  %v4917_v47 = vadd.f32 %v4885_v21, %v4853_v46  ;;  %v5078_v38 = vld [vmem:[#allocation4 + $0x32] sm:$0xff]  ;;  %v4954_v12 = vld [vmem:[#allocation4 + $0x60] sm:$0xff] }
 0x560   : > { %v5081_v46 = vld [vmem:[#allocation4 + $0x52] sm:$0xff] }
 0x561   : > { %v4727_v15 = vadd.f32 %v4885_v21, %v4663_v56  ;;  %v4382_v21 = vadd.f32 %v9580_v60, %v9831_v45 }
 0x563   : > { %v4791_v19 = vadd.f32 %v4950_v43, %v4727_v15  ;;  %v5018_v15 = vld [vmem:[#allocation4 + $0x61] sm:$0xff] }
 0x564   : > { %v3751_v36 = vpop.permute.xlu1 %3750 }
 0x565   : > { %v3627_v30 = vpop.permute.xlu0 %3626  ;;  %v4142_v29 = vsel %vm4114_vm0, %v4109_v17, %v3751_v36  ;;  %v4982_v36 = vadd.f32 %v4950_v43, %v4917_v47 }
 0x566   : > { %v4174_v51 = vsel %vm2099_vm7, %v4142_v29, %v3879_v59  ;;  %v3759_v10 = vpop.permute.xlu2 %3758  ;;  %v4111_v61 = vsel %vm277_vm2, %v9555_v23, %v3627_v30 }
 0x567   : > { %5701 = vmatmul.msk.f32.gmra.mxu0 %vm4210_vm1, %v4171_v34  ;;  %v9848_v34 = vpop.f32.mrf.mxu3 }
 0x56c   : > { %v3885_v55 = vpop.permute.xlu1 %3884 }
 0x56d   : > { %v3629_v58 = vpop.permute.xlu0 %3628 }
 0x56e   : > { %v4112_v54 = vsel %vm277_vm2, %v9583_v11, %v3629_v58  ;;  %v3883_v26 = vpop.permute.xlu2 %3882  ;;  %v4566_v58 = vld [vmem:[#allocation4 + $0x8] sm:$0xff] }
 0x56f   : > { %5702 = vmatmul.msk.f32.gmra.mxu0 %vm4210_vm1, %v4172_v41  ;;  %v9854_v48 = vpop.f32.mrf.mxu3 }
 0x574   : > { %v3881_v40 = vpop.permute.xlu1 %3880 }
 0x575   : > { %v3757_v44 = vpop.permute.xlu0 %3756 }
 0x576   : > { %v4145_v35 = vsel %vm4114_vm0, %v4112_v54, %v3757_v44  ;;  %v5046_v54 = vadd.f32 %v5014_v33, %v4982_v36 }
 0x577   : > { %v4177_v8 = vsel %vm2099_vm7, %v4145_v35, %v3885_v55  ;;  %5703 = vmatmul.msk.f32.gmra.mxu0 %vm4210_vm1, %v4173_v63  ;;  %v4376_v55 = vadd.f32 %v9580_v60, %v9786_v18  ;;  %v4951_v35 = vld [vmem:[#allocation4 + $0x38] sm:$0xff]  ;;  %v9862_v56 = vpop.f32.mrf.mxu3 }
 0x578   : > { %5707 = vmatmul.msk.f32.vlgmr.msra.gmra.mxu3 %vm4210_vm1, %v4177_v8  ;;  %v5015_v63 = vld [vmem:[#allocation4 + $0x39] sm:$0xff]  ;;  %v4664_v8 = vadd.f32 %v4822_v52, %v4758_v28  ;;  %v5110_v0 = vadd.f32 %v5078_v38, %v5046_v54  ;;  %v5082_v54 = vld [vmem:[#allocation4 + $0x62] sm:$0xff] }
 0x579   : > { %v4666_v17 = vadd.f32 %v5015_v63, %v4951_v35 }
 0x57c   : > { %v3755_v62 = vpop.permute.xlu1 %3754 }
 0x57d   : > { %v3631_v11 = vpop.permute.xlu0 %3630  ;;  %v4144_v13 = vsel %vm4114_vm0, %v4111_v61, %v3755_v62  ;;  %v4952_v62 = vld [vmem:[#allocation4 + $0x48] sm:$0xff] }
 0x57e   : > { %v4113_v1 = vsel %vm277_vm2, %v9539_v20, %v3631_v11  ;;  %v4175_v20 = vsel %vm2099_vm7, %v4143_v42, %v3881_v40  ;;  %v4176_v23 = vsel %vm2099_vm7, %v4144_v13, %v3883_v26  ;;  %vm366_vm2 = vcmask 25600   ;;  %v4886_v40 = vld [vmem:[#allocation4 + $0x22] sm:$0xff] }
 0x57f   : > { %5704 = vmatmul.msk.f32.gmra.mxu0 %vm4210_vm1, %v4174_v51  ;;  %v4146_v27 = vsel %vm4114_vm0, %v4113_v1, %v3759_v10  ;;  %367 = vst.msk [vmem:[#allocation4 + $0x10] sm:$0x3] %vm366_vm2, %v10548_v14  ;;  %v4855_v51 = vadd.f32 %v5014_v33, %v4791_v19  ;;  %v5079_v10 = vld [vmem:[#allocation4 + $0x3a] sm:$0xff]  ;;  %v5016_v61 = vld [vmem:[#allocation4 + $0x49] sm:$0xff]  ;;  %v5142_v13 = vmul.f32 0.11111111, %v5110_v0 }
 0x580   : > { %371 = vst.msk [vmem:[#allocation4 + $0x1a8] sm:$0x3] %vm366_vm2, %v10548_v14  ;;  %v4728_v14 = vadd.f32 %v4886_v40, %v4664_v8  ;;  %v4730_v42 = vadd.f32 %v5079_v10, %v4666_v17  ;;  %v4667_v26 = vadd.f32 %v5016_v61, %v4952_v62  ;;  %v5019_v8 = vld [vmem:[#allocation4 + $0x69] sm:$0xff]  ;;  %v4385_v17 = vadd.f32 %v9580_v60, %v9848_v34 }
 0x582   : > { %v4731_v4 = vadd.f32 %v5080_v6, %v4667_v26 }
 0x584   : > { %v4795_v36 = vadd.f32 %v4954_v12, %v4731_v4 }
 0x585   : > { %v3887_v24 = vpop.permute.xlu0 %3886 }
 0x586   : > { %v4178_v16 = vsel %vm2099_vm7, %v4146_v27, %v3887_v24  ;;  %v4630_v41 = vld [vmem:[#allocation4 + $0x9] sm:$0xff] }
 0x587   : > { %5705 = vmatmul.msk.f32.gmra.mxu0 %vm4210_vm1, %v4175_v20  ;;  %5708 = vmatmul.msk.f32.gmra.mxu3 %vm4210_vm1, %v4178_v16  ;;  %v4694_v59 = vld [vmem:[#allocation4 + $0xa] sm:$0xff]  ;;  %v4662_v44 = vadd.f32 %v4630_v41, %v4566_v58  ;;  %v4379_v20 = vadd.f32 %v9580_v60, %v9807_v32  ;;  %v4919_v16 = vadd.f32 %v5078_v38, %v4855_v51 }
 0x588   : > { %v4953_v27 = vld [vmem:[#allocation4 + $0x50] sm:$0xff] }
 0x589   : > { %v4726_v11 = vadd.f32 %v4694_v59, %v4662_v44  ;;  %v4984_v53 = vadd.f32 %v4952_v62, %v4919_v16  ;;  %v4668_v47 = vadd.f32 %v5017_v50, %v4953_v27  ;;  %v4955_v59 = vld [vmem:[#allocation4 + $0x68] sm:$0xff]  ;;  %v4859_v44 = vadd.f32 %v5018_v15, %v4795_v36 }
 0x58b   : > { %v4790_v1 = vadd.f32 %v4758_v28, %v4726_v11  ;;  %v4669_v28 = vadd.f32 %v5018_v15, %v4954_v12  ;;  %v4732_v19 = vadd.f32 %v5081_v46, %v4668_v47  ;;  %v4923_v0 = vadd.f32 %v5082_v54, %v4859_v44 }
 0x58c   : > { %v4479_v22 = vpop.f32.mrf.mxu0 }
 0x58d   : > { %v4480_v25 = vadd.f32 %v4479_v22, %v4367_v7  ;;  %v4854_v24 = vadd.f32 %v4822_v52, %v4790_v1  ;;  %v4665_v7 = vadd.f32 %v5014_v33, %v4950_v43  ;;  %v4792_v22 = vadd.f32 %v4951_v35, %v4728_v14  ;;  %v4956_v1 = vld [vmem:[#allocation4 + $0x78] sm:$0xff]  ;;  %v9870_v14 = vpop.f32.mrf.mxu3 }
 0x58e   : > { %v5048_v43 = vadd.f32 %v5016_v61, %v4984_v53  ;;  %v4796_v11 = vadd.f32 %v4955_v59, %v4732_v19 }
 0x58f   : > { %5706 = vmatmul.msk.f32.gmra.mxu0 %vm4210_vm1, %v4176_v23  ;;  %5234 = vrot.lane.b32.xlu2 %v4480_v25, %s6771_s16  ;;  %v4918_v18 = vadd.f32 %v4886_v40, %v4854_v24  ;;  %v4794_v23 = vadd.f32 %v4953_v27, %v4730_v42  ;;  %v4729_v39 = vadd.f32 %v5078_v38, %v4665_v7  ;;  %v9866_v38 = vld [vmem:[#allocation4 + $0x81] sm:$0xff] }
 0x590   : > { %v5112_v45 = vadd.f32 %v5080_v6, %v5048_v43 }
 0x591   : > { %v4983_v9 = vadd.f32 %v4951_v35, %v4918_v18  ;;  %v4988_v18 = vadd.f32 %v4956_v1, %v4923_v0 }
 0x592   : > { %v5144_v40 = vmul.f32 0.11111111, %v5112_v45  ;;  %v4960_v45 = vld [vmem:[#allocation4 + $0xa8] sm:$0xff] }
 0x593   : > { %v5047_v32 = vadd.f32 %v5015_v63, %v4983_v9  ;;  %v4959_v9 = vld [vmem:[#allocation4 + $0x98] sm:$0xff] }
 0x595   : > { %v9877_v36 = vpop.f32.mrf.mxu3 }
 0x59c   : > { %v4482_v2 = vpop.f32.mrf.mxu0 }
 0x59d   : > { %v4483_v3 = vadd.f32 %v4482_v2, %v4370_v31  ;;  %v4856_v31 = vadd.f32 %v5015_v63, %v4792_v22  ;;  %v4858_v2 = vadd.f32 %v5017_v50, %v4794_v23  ;;  %v4733_v63 = vadd.f32 %v5082_v54, %v4669_v28  ;;  %v5020_v22 = vld [vmem:[#allocation4 + $0x79] sm:$0xff] }
 0x59f   : > { %5236 = vrot.lane.b32.xlu0 %v4483_v3, %s6771_s16  ;;  %v5111_v3 = vadd.f32 %v5079_v10, %v5047_v32  ;;  %v4922_v58 = vadd.f32 %v5081_v46, %v4858_v2  ;;  %v5022_v32 = vld [vmem:[#allocation4 + $0x91] sm:$0xff]  ;;  %v5052_v2 = vadd.f32 %v5020_v22, %v4988_v18 }
 0x5a0   : > { %v5025_v18 = vld [vmem:[#allocation4 + $0xb1] sm:$0xff] }
 0x5a1   : > { %v4987_v35 = vadd.f32 %v4955_v59, %v4922_v58 }
 0x5a3   : > { %v5051_v24 = vadd.f32 %v5019_v8, %v4987_v35 }
 0x5a4   : > { %v4485_v49 = vpop.f32.mrf.mxu0 }
 0x5a5   : > { %v4486_v30 = vadd.f32 %v4485_v49, %v4373_v5  ;;  %v4793_v5 = vadd.f32 %v4952_v62, %v4729_v39  ;;  %v5143_v49 = vmul.f32 0.11111111, %v5111_v3  ;;  %v5083_v62 = vld [vmem:[#allocation4 + $0x6a] sm:$0xff] }
 0x5a6   : > { %v4958_v39 = vld [vmem:[#allocation4 + $0x90] sm:$0xff] }
 0x5a7   : > { %5238 = vrot.lane.b32.xlu1 %v4486_v30, %s6771_s16  ;;  %v4920_v30 = vadd.f32 %v5079_v10, %v4856_v31  ;;  %v4857_v52 = vadd.f32 %v5016_v61, %v4793_v5  ;;  %v4670_v10 = vadd.f32 %v5019_v8, %v4955_v59  ;;  %v5085_v61 = vld [vmem:[#allocation4 + $0x82] sm:$0xff]  ;;  %v4671_v31 = vadd.f32 %v5020_v22, %v4956_v1 }
 0x5a9   : > { %v4734_v26 = vadd.f32 %v5083_v62, %v4670_v10 }
 0x5ac   : > { %v4488_v37 = vpop.f32.mrf.mxu0 }
 0x5ad   : > { %v4489_v29 = vadd.f32 %v4488_v37, %v4376_v55  ;;  %v4985_v55 = vadd.f32 %v4953_v27, %v4920_v30  ;;  %v4957_v37 = vld [vmem:[#allocation4 + $0x80] sm:$0xff]  ;;  %v4797_v27 = vadd.f32 %v4956_v1, %v4733_v63 }
 0x5ae   : > { %v4798_v3 = vadd.f32 %v4957_v37, %v4734_v26  ;;  %v5023_v30 = vld [vmem:[#allocation4 + $0x99] sm:$0xff]  ;;  %v9891_v26 = vld [vmem:[#allocation4 + $0xc9] sm:$0xff] }
 0x5af   : > { %5240 = vrot.lane.b32.xlu2 %v4489_v29, %s6771_s16  ;;  %v4921_v29 = vadd.f32 %v5080_v6, %v4857_v52  ;;  %v5049_v51 = vadd.f32 %v5017_v50, %v4985_v55  ;;  %v4861_v23 = vadd.f32 %v5020_v22, %v4797_v27  ;;  %v4388_v50 = vadd.f32 %v9580_v60, %v9854_v48  ;;  %v5087_v55 = vld [vmem:[#allocation4 + $0x9a] sm:$0xff]  ;;  %v4963_v22 = vld [vmem:[#allocation4 + $0xc8] sm:$0xff] }
 0x5b1   : > { %v4986_v7 = vadd.f32 %v4954_v12, %v4921_v29  ;;  %v5113_v34 = vadd.f32 %v5081_v46, %v5049_v51  ;;  %v5084_v12 = vld [vmem:[#allocation4 + $0x7a] sm:$0xff]  ;;  %v4673_v46 = vadd.f32 %v5022_v32, %v4958_v39 }
 0x5b2   : > { %v4925_v47 = vadd.f32 %v5084_v12, %v4861_v23  ;;  %v4735_v58 = vadd.f32 %v5084_v12, %v4671_v31  ;;  %v5116_v28 = vadd.f32 %v5084_v12, %v5052_v2  ;;  %v4678_v12 = vadd.f32 %v9891_v26, %v4963_v22 }
 0x5b3   : > { %v5050_v53 = vadd.f32 %v5018_v15, %v4986_v7  ;;  %v5145_v4 = vmul.f32 0.11111111, %v5113_v34  ;;  %v5086_v15 = vld [vmem:[#allocation4 + $0x92] sm:$0xff] }
 0x5b4   : > { %v4491_v25 = vpop.f32.mrf.mxu0  ;;  %v4737_v59 = vadd.f32 %v5086_v15, %v4673_v46  ;;  %v4990_v52 = vadd.f32 %v4958_v39, %v4925_v47  ;;  %v4799_v63 = vadd.f32 %v4958_v39, %v4735_v58  ;;  %v5089_v46 = vld [vmem:[#allocation4 + $0xb2] sm:$0xff]  ;;  %v4965_v58 = vld [vmem:[#allocation4 + $0xe0] sm:$0xff] }
 0x5b5   : > { %v4492_v57 = vadd.f32 %v4491_v25, %v4379_v20  ;;  %v4672_v20 = vadd.f32 %v9866_v38, %v4957_v37  ;;  %v5115_v25 = vadd.f32 %v5083_v62, %v5051_v24 }
 0x5b6   : > { %v4801_v29 = vadd.f32 %v4960_v45, %v4737_v59  ;;  %v5054_v51 = vadd.f32 %v5022_v32, %v4990_v52  ;;  %v4863_v27 = vadd.f32 %v5022_v32, %v4799_v63  ;;  %v4964_v52 = vld [vmem:[#allocation4 + $0xd8] sm:$0xff] }
 0x5b7   : > { %5242 = vrot.lane.b32.xlu0 %v4492_v57, %s6771_s16  ;;  %5334 = vrot.lane.b32.xlu2 %v5142_v13, %s6763_s15  ;;  %v4860_v13 = vadd.f32 %v5019_v8, %v4796_v11  ;;  %v4736_v57 = vadd.f32 %v5085_v61, %v4672_v20  ;;  %v5147_v5 = vmul.f32 0.11111111, %v5115_v25  ;;  %v5148_v8 = vmul.f32 0.11111111, %v5116_v28 }
 0x5b8   : > { %v4674_v11 = vadd.f32 %v5023_v30, %v4959_v9  ;;  %v5118_v7 = vadd.f32 %v5086_v15, %v5054_v51  ;;  %v4927_v25 = vadd.f32 %v5086_v15, %v4863_v27  ;;  %v4397_v28 = vadd.f32 %v9580_v60, %v9877_v36  ;;  %v5029_v36 = vld [vmem:[#allocation4 + $0xe1] sm:$0xff] }
 0x5b9   : > { %v4924_v6 = vadd.f32 %v5083_v62, %v4860_v13  ;;  %v9888_v62 = vpop.f32.mrf.mxu3 }
 0x5ba   : > { %v5150_v31 = vmul.f32 0.11111111, %v5118_v7  ;;  %v4966_v7 = vld [vmem:[#allocation4 + $0xf0] sm:$0xff] }
 0x5bb   : > { %v4989_v48 = vadd.f32 %v4957_v37, %v4924_v6  ;;  %v4962_v6 = vld [vmem:[#allocation4 + $0xc0] sm:$0xff] }
 0x5bc   : > { %v4494_v33 = vpop.f32.mrf.mxu0 }
 0x5bd   : > { %v4495_v41 = vadd.f32 %v4494_v33, %v4382_v21  ;;  %v5114_v33 = vadd.f32 %v5082_v54, %v5050_v53  ;;  %v4391_v54 = vadd.f32 %v9580_v60, %v9862_v56  ;;  %v5053_v35 = vadd.f32 %v9866_v38, %v4989_v48 }
 0x5bf   : > { %5336 = vrot.lane.b32.xlu0 %v5143_v49, %s6763_s15  ;;  %5244 = vrot.lane.b32.xlu1 %v4495_v41, %s6771_s16  ;;  %v4800_v49 = vadd.f32 %v4959_v9, %v4736_v57  ;;  %v4862_v41 = vadd.f32 %v9866_v38, %v4798_v3  ;;  %v5146_v44 = vmul.f32 0.11111111, %v5114_v33  ;;  %v5117_v24 = vadd.f32 %v5085_v61, %v5053_v35  ;;  %v5088_v38 = vld [vmem:[#allocation4 + $0xaa] sm:$0xff]  ;;  %v9895_v57 = vpop.permute.xlu2 %5210  ;;  %v5090_v35 = vld [vmem:[#allocation4 + $0xc2] sm:$0xff] }
 0x5c1   : > { %v4864_v19 = vadd.f32 %v5023_v30, %v4800_v49  ;;  %v4926_v37 = vadd.f32 %v5085_v61, %v4862_v41  ;;  %v4394_v61 = vadd.f32 %v9580_v60, %v9870_v14  ;;  %v4992_v14 = vadd.f32 %v4960_v45, %v4927_v25  ;;  %v9906_v41 = vpop.f32.mrf.mxu3 }
 0x5c3   : > { %v4928_v0 = vadd.f32 %v5087_v55, %v4864_v19  ;;  %v4991_v56 = vadd.f32 %v4959_v9, %v4926_v37  ;;  %v5149_v9 = vmul.f32 0.11111111, %v5117_v24  ;;  %v5028_v19 = vld [vmem:[#allocation4 + $0xd9] sm:$0xff] }
 0x5c4   : > { %v4497_v42 = vpop.f32.mrf.mxu0 }
 0x5c5   : > { %v4498_v16 = vadd.f32 %v4497_v42, %v4385_v17  ;;  %v5024_v17 = vld [vmem:[#allocation4 + $0xa9] sm:$0xff] }
 0x5c6   : > { %v4675_v1 = vadd.f32 %v5024_v17, %v4960_v45  ;;  %v4961_v42 = vld [vmem:[#allocation4 + $0xb0] sm:$0xff]  ;;  %v4865_v20 = vadd.f32 %v5024_v17, %v4801_v29  ;;  %v5056_v59 = vadd.f32 %v5024_v17, %v4992_v14 }
 0x5c7   : > { %5246 = vrot.lane.b32.xlu2 %v4498_v16, %s6771_s16  ;;  %5338 = vrot.lane.b32.xlu1 %v5144_v40, %s6763_s15  ;;  %v4738_v16 = vadd.f32 %v5087_v55, %v4674_v11  ;;  %v4993_v13 = vadd.f32 %v4961_v42, %v4928_v0  ;;  %v4676_v23 = vadd.f32 %v5025_v18, %v4961_v42  ;;  %v9908_v51 = vpop.permute.xlu2 %5216 }
 0x5c8   : > { %v4739_v34 = vadd.f32 %v5088_v38, %v4675_v1  ;;  %v4929_v53 = vadd.f32 %v5088_v38, %v4865_v20  ;;  %v5120_v1 = vadd.f32 %v5088_v38, %v5056_v59  ;;  %v4400_v38 = vadd.f32 %v9580_v60, %v9888_v62  ;;  %v4967_v60 = vld [vmem:[#allocation4 + $0xf8] sm:$0xff] }
 0x5c9   : > { %v4802_v39 = vadd.f32 %v4961_v42, %v4738_v16 }
 0x5ca   : > { %v4803_v2 = vadd.f32 %v4962_v6, %v4739_v34  ;;  %v4994_v49 = vadd.f32 %v4962_v6, %v4929_v53  ;;  %v5152_v34 = vmul.f32 0.11111111, %v5120_v1  ;;  %v9920_v53 = vpop.f32.mrf.mxu3  ;;  %v9949_v1 = vld [vmem:[#allocation4 + $0x112] sm:$0xff] }
 0x5cc   : > { %v4500_v21 = vpop.f32.mrf.mxu0 }
 0x5cd   : > { %v4501_v43 = vadd.f32 %v4500_v21, %v4388_v50  ;;  %v5055_v50 = vadd.f32 %v5023_v30, %v4991_v56  ;;  %v9898_v21 = vld [vmem:[#allocation4 + $0xca] sm:$0xff]  ;;  %v4866_v30 = vadd.f32 %v5025_v18, %v4802_v39 }
 0x5ce   : > { %v4742_v15 = vadd.f32 %v9898_v21, %v4678_v12 }
 0x5cf   : > { %5248 = vrot.lane.b32.xlu0 %v4501_v43, %s6771_s16  ;;  %5340 = vrot.lane.b32.xlu2 %v5145_v4, %s6763_s15  ;;  %v5057_v4 = vadd.f32 %v5025_v18, %v4993_v13  ;;  %v5119_v47 = vadd.f32 %v5087_v55, %v5055_v50  ;;  %v5026_v43 = vld [vmem:[#allocation4 + $0xc1] sm:$0xff]  ;;  %v4930_v63 = vadd.f32 %v5089_v46, %v4866_v30  ;;  %v9923_v12 = vpop.permute.xlu2 %5222 }
 0x5d0   : > { %5344 = vrot.lane.b32.xlu1 %v5147_v5, %s6763_s15  ;;  %v4740_v5 = vadd.f32 %v5089_v46, %v4676_v23  ;;  %v4867_v48 = vadd.f32 %v5026_v43, %v4803_v2  ;;  %v4677_v55 = vadd.f32 %v5026_v43, %v4962_v6  ;;  %v5093_v13 = vld [vmem:[#allocation4 + $0xe2] sm:$0xff]  ;;  %v4680_v50 = vadd.f32 %v5029_v36, %v4965_v58 }
 0x5d1   : > { %v5121_v33 = vadd.f32 %v5089_v46, %v5057_v4  ;;  %v4995_v27 = vadd.f32 %v4963_v22, %v4930_v63 }
 0x5d2   : > { %v4804_v45 = vadd.f32 %v4963_v22, %v4740_v5  ;;  %v4931_v11 = vadd.f32 %v5090_v35, %v4867_v48  ;;  %v4741_v42 = vadd.f32 %v5090_v35, %v4677_v55  ;;  %v4744_v14 = vadd.f32 %v5093_v13, %v4680_v50  ;;  %v5031_v48 = vld [vmem:[#allocation4 + $0xf9] sm:$0xff] }
 0x5d3   : > { %v5153_v29 = vmul.f32 0.11111111, %v5121_v33  ;;  %v5059_v23 = vadd.f32 %v9891_v26, %v4995_v27  ;;  %v9933_v33 = vpop.permute.xlu0 %5206 }
 0x5d4   : > { %v4503_v40 = vpop.f32.mrf.mxu0  ;;  %v4868_v17 = vadd.f32 %v9891_v26, %v4804_v45  ;;  %v4996_v20 = vadd.f32 %v4964_v52, %v4931_v11 }
 0x5d5   : > { %v4504_v10 = vadd.f32 %v4503_v40, %v4391_v54  ;;  %v5151_v54 = vmul.f32 0.11111111, %v5119_v47  ;;  %v4806_v40 = vadd.f32 %v4965_v58, %v4742_v15  ;;  %v5123_v26 = vadd.f32 %v9898_v21, %v5059_v23  ;;  %v9935_v15 = vld [vmem:[#allocation4 + $0x110] sm:$0xff] }
 0x5d6   : > { %v4932_v18 = vadd.f32 %v9898_v21, %v4868_v17  ;;  %v5060_v39 = vadd.f32 %v5028_v19, %v4996_v20 }
 0x5d7   : > { %5342 = vrot.lane.b32.xlu0 %v5146_v44, %s6763_s15  ;;  %5346 = vrot.lane.b32.xlu2 %v5148_v8, %s6763_s15  ;;  %v5058_v44 = vadd.f32 %v5026_v43, %v4994_v49  ;;  %v4679_v8 = vadd.f32 %v5028_v19, %v4964_v52  ;;  %v4870_v16 = vadd.f32 %v5029_v36, %v4806_v40  ;;  %v4968_v49 = vld [vmem:[#allocation4 + $0x108] sm:$0xff]  ;;  %v5155_v45 = vmul.f32 0.11111111, %v5123_v26 }
 0x5d8   : > { %5250 = vrot.lane.b32.xlu1 %v4504_v10, %s6771_s16  ;;  %v5092_v10 = vld [vmem:[#allocation4 + $0xda] sm:$0xff]  ;;  %v4997_v62 = vadd.f32 %v4965_v58, %v4932_v18  ;;  %v5032_v43 = vld [vmem:[#allocation4 + $0x109] sm:$0xff]  ;;  %v9937_v58 = vld [vmem:[#allocation4 + $0x111] sm:$0xff]  ;;  %v9955_v18 = vpop.permute.xlu2 %5228 }
 0x5d9   : > { %v5122_v24 = vadd.f32 %v5090_v35, %v5058_v44  ;;  %v4743_v56 = vadd.f32 %v5092_v10, %v4679_v8  ;;  %v5124_v5 = vadd.f32 %v5092_v10, %v5060_v39  ;;  %v4683_v21 = vadd.f32 %v5032_v43, %v4968_v49 }
 0x5da   : > { %v4682_v44 = vadd.f32 %v5031_v48, %v4967_v60  ;;  %v4684_v11 = vadd.f32 %v9937_v58, %v9935_v15 }
 0x5db   : > { %v5154_v25 = vmul.f32 0.11111111, %v5122_v24  ;;  %v4807_v22 = vadd.f32 %v4966_v7, %v4743_v56  ;;  %v5156_v63 = vmul.f32 0.11111111, %v5124_v5  ;;  %v9964_v39 = vpop.permute.xlu0 %5212 }
 0x5dc   : > { %v4506_v32 = vpop.f32.mrf.mxu0 }
 0x5dd   : > { %v4507_v3 = vadd.f32 %v4506_v32, %v4394_v61  ;;  %v4805_v61 = vadd.f32 %v4964_v52, %v4741_v42  ;;  %v4934_v32 = vadd.f32 %v5093_v13, %v4870_v16  ;;  %v5061_v52 = vadd.f32 %v5029_v36, %v4997_v62  ;;  %v4408_v36 = vpop.f32.mrf.mxu3  ;;  %v4970_v16 = vld [vmem:[#allocation4 + $0x120] sm:$0xff] }
 0x5df   : > { %5348 = vrot.lane.b32.xlu0 %v5149_v9, %s6763_s15  ;;  %5252 = vrot.lane.b32.xlu2 %v4507_v3, %s6771_s16  ;;  %v9918_v9 = vld [vmem:[#allocation4 + $0xf1] sm:$0xff]  ;;  %v4869_v2 = vadd.f32 %v5028_v19, %v4805_v61  ;;  %v4999_v47 = vadd.f32 %v4967_v60, %v4934_v32 }
 0x5e0   : > { %5350 = vrot.lane.b32.xlu1 %v5150_v31, %s6763_s15  ;;  %v4681_v31 = vadd.f32 %v9918_v9, %v4966_v7  ;;  %v9928_v3 = vld [vmem:[#allocation4 + $0xf2] sm:$0xff]  ;;  %v4871_v46 = vadd.f32 %v9918_v9, %v4807_v22  ;;  %v9961_v22 = vpop.permute.xlu1 %5208 }
 0x5e1   : > { %v4933_v19 = vadd.f32 %v5092_v10, %v4869_v2  ;;  %v5063_v8 = vadd.f32 %v5031_v48, %v4999_v47  ;;  %v5125_v10 = vadd.f32 %v5093_v13, %v5061_v52  ;;  %v4972_v13 = vld [vmem:[#allocation4 + $0x138] sm:$0xff] }
 0x5e2   : > { %v4745_v30 = vadd.f32 %v9928_v3, %v4681_v31  ;;  %v4935_v55 = vadd.f32 %v9928_v3, %v4871_v46 }
 0x5e3   : > { %v4998_v17 = vadd.f32 %v4966_v7, %v4933_v19  ;;  %v9957_v7 = vld [vmem:[#allocation4 + $0x139] sm:$0xff]  ;;  %v5157_v32 = vmul.f32 0.11111111, %v5125_v10 }
 0x5e4   : > { %v4509_v37 = vpop.f32.mrf.mxu0  ;;  %v5000_v42 = vadd.f32 %v4968_v49, %v4935_v55 }
 0x5e5   : > { %v4510_v0 = vadd.f32 %v4509_v37, %v4397_v28  ;;  %v9942_v28 = vld [vmem:[%s10294_s6] ss:$0 sm:$0xff]  ;;  %v5096_v37 = vld [vmem:[#allocation4 + $0x10a] sm:$0xff]  ;;  %v5062_v50 = vadd.f32 %v9918_v9, %v4998_v17  ;;  %v4411_v52 = vpop.f32.mrf.mxu3 }
 0x5e6   : > { %v4403_v59 = vadd.f32 %v9942_v28, %v9906_v41  ;;  %v4747_v41 = vadd.f32 %v5096_v37, %v4683_v21  ;;  %v4406_v23 = vadd.f32 %v9942_v28, %v9920_v53  ;;  %v5064_v31 = vadd.f32 %v5032_v43, %v5000_v42  ;;  %v5098_v53 = vld [vmem:[#allocation4 + $0x122] sm:$0xff] }
 0x5e7   : > { %5254 = vrot.lane.b32.xlu0 %v4510_v0, %s6771_s16  ;;  %5352 = vrot.lane.b32.xlu2 %v5151_v54, %s6763_s15  ;;  %v4808_v54 = vadd.f32 %v4967_v60, %v4744_v14  ;;  %v5095_v0 = vld [vmem:[#allocation4 + $0xfa] sm:$0xff]  ;;  %v4687_v14 = vadd.f32 %v9957_v7, %v4972_v13  ;;  %v5035_v9 = vld [vmem:[#allocation4 + $0x129] sm:$0xff] }
 0x5e8   : > { %5356 = vrot.lane.b32.xlu1 %v5153_v29, %s6763_s15  ;;  %v4809_v29 = vadd.f32 %v4968_v49, %v4745_v30  ;;  %v4746_v27 = vadd.f32 %v5095_v0, %v4682_v44  ;;  %v5127_v56 = vadd.f32 %v5095_v0, %v5063_v8  ;;  %v4811_v61 = vadd.f32 %v4970_v16, %v4747_v41  ;;  %v9968_v49 = vld [vmem:[#allocation4 + $0x13a] sm:$0xff]  ;;  %v4974_v8 = vld [vmem:[#allocation4 + $0x150] sm:$0xff]  ;;  %v9984_v17 = vpop.permute.xlu1 %5214 }
 0x5e9   : > { %v4872_v24 = vadd.f32 %v5031_v48, %v4808_v54  ;;  %v5126_v30 = vadd.f32 %v9928_v3, %v5062_v50  ;;  %v4751_v54 = vadd.f32 %v9968_v49, %v4687_v14  ;;  %v9979_v3 = vpop.permute.xlu2 %5234  ;;  %v5040_v14 = vld [vmem:[#allocation4 + $0x169] sm:$0xff] }
 0x5ea   : > { %v4873_v20 = vadd.f32 %v5032_v43, %v4809_v29  ;;  %v4810_v60 = vadd.f32 %v9935_v15, %v4746_v27  ;;  %v5159_v2 = vmul.f32 0.11111111, %v5127_v56  ;;  %v5128_v43 = vadd.f32 %v5096_v37, %v5064_v31 }
 0x5eb   : > { %v4815_v56 = vadd.f32 %v4974_v8, %v4751_v54 }
 0x5ec   : > { %v4512_v6 = vpop.f32.mrf.mxu0  ;;  %v4937_v26 = vadd.f32 %v5096_v37, %v4873_v20  ;;  %v4409_v37 = vadd.f32 %v9942_v28, %v4408_v36  ;;  %v9987_v20 = vpop.permute.xlu0 %5218 }
 0x5ed   : > { %v4513_v4 = vadd.f32 %v4512_v6, %v4400_v38  ;;  %v5034_v38 = vld [vmem:[#allocation4 + $0x121] sm:$0xff]  ;;  %v9996_v31 = vpop.f32.mrf.mxu3 }
 0x5ee   : > { %v4685_v6 = vadd.f32 %v5034_v38, %v4970_v16  ;;  %v4875_v47 = vadd.f32 %v5034_v38, %v4811_v61  ;;  %v5002_v19 = vadd.f32 %v4970_v16, %v4937_v26  ;;  %v5038_v61 = vld [vmem:[#allocation4 + $0x151] sm:$0xff] }
 0x5ef   : > { %5354 = vrot.lane.b32.xlu0 %v5152_v34, %s6763_s15  ;;  %5358 = vrot.lane.b32.xlu2 %v5154_v25, %s6763_s15  ;;  %v4748_v34 = vadd.f32 %v9949_v1, %v4684_v11  ;;  %v4971_v25 = vld [vmem:[#allocation4 + $0x128] sm:$0xff]  ;;  %v5102_v26 = vld [vmem:[#allocation4 + $0x152] sm:$0xff] }
 0x5f0   : > { %5256 = vrot.lane.b32.xlu1 %v4513_v4, %s6771_s16  ;;  %v4936_v4 = vadd.f32 %v5095_v0, %v4872_v24  ;;  %v4749_v48 = vadd.f32 %v5098_v53, %v4685_v6  ;;  %v4939_v44 = vadd.f32 %v5098_v53, %v4875_v47  ;;  %v4686_v29 = vadd.f32 %v5035_v9, %v4971_v25 }
 0x5f1   : > { %v4812_v46 = vadd.f32 %v4971_v25, %v4748_v34  ;;  %v5160_v0 = vmul.f32 0.11111111, %v5128_v43  ;;  %v5066_v24 = vadd.f32 %v5034_v38, %v5002_v19  ;;  %v5101_v34 = vld [vmem:[#allocation4 + $0x142] sm:$0xff]  ;;  %v4689_v43 = vadd.f32 %v5038_v61, %v4974_v8 }
 0x5f2   : > { %v5001_v21 = vadd.f32 %v9935_v15, %v4936_v4  ;;  %v4813_v15 = vadd.f32 %v4972_v13, %v4749_v48  ;;  %v5004_v36 = vadd.f32 %v4972_v13, %v4939_v44  ;;  %v10006_v48 = vld [vmem:[#allocation4 + $0x159] sm:$0xff] }
 0x5f3   : > { %v4876_v55 = vadd.f32 %v5035_v9, %v4812_v46  ;;  %v5130_v13 = vadd.f32 %v5098_v53, %v5066_v24  ;;  %v4412_v46 = vadd.f32 %v9942_v28, %v4411_v52 }
 0x5f4   : > { %v4515_v35 = vpop.f32.mrf.mxu0  ;;  %v5065_v41 = vadd.f32 %v9937_v58, %v5001_v21 }
 0x5f5   : > { %v4516_v40 = vadd.f32 %v4515_v35, %v4403_v59  ;;  %v4874_v59 = vadd.f32 %v9937_v58, %v4810_v60  ;;  %v4973_v35 = vld [vmem:[#allocation4 + $0x140] sm:$0xff]  ;;  %v4879_v60 = vadd.f32 %v5038_v61, %v4815_v56 }
 0x5f6   : > { %v5129_v38 = vadd.f32 %v9949_v1, %v5065_v41  ;;  %v4753_v41 = vadd.f32 %v5102_v26, %v4689_v43 }
 0x5f7   : > { %5360 = vrot.lane.b32.xlu0 %v5155_v45, %s6763_s15  ;;  %5258 = vrot.lane.b32.xlu2 %v4516_v40, %s6771_s16  ;;  %v9976_v45 = vld [vmem:[#allocation4 + $0x12a] sm:$0xff]  ;;  %v5158_v40 = vmul.f32 0.11111111, %v5126_v30  ;;  %v4938_v10 = vadd.f32 %v9949_v1, %v4874_v59 }
 0x5f8   : > { %5362 = vrot.lane.b32.xlu1 %v5156_v63, %s6763_s15  ;;  %v5037_v63 = vld [vmem:[#allocation4 + $0x141] sm:$0xff]  ;;  %v4940_v27 = vadd.f32 %v9976_v45, %v4876_v55  ;;  %v4750_v50 = vadd.f32 %v9976_v45, %v4686_v29  ;;  %v5161_v30 = vmul.f32 0.11111111, %v5129_v38  ;;  %v4943_v55 = vadd.f32 %v5102_v26, %v4879_v60  ;;  %v5041_v38 = vld [vmem:[#allocation4 + $0x171] sm:$0xff] }
 0x5f9   : > { %v4688_v11 = vadd.f32 %v5037_v63, %v4973_v35  ;;  %v5003_v6 = vadd.f32 %v4971_v25, %v4938_v10  ;;  %v4976_v25 = vld [vmem:[#allocation4 + $0x168] sm:$0xff] }
 0x5fa   : > { %v5005_v4 = vadd.f32 %v4973_v35, %v4940_v27  ;;  %v4691_v21 = vadd.f32 %v5040_v14, %v4976_v25 }
 0x5fb   : > { %v4752_v58 = vadd.f32 %v5101_v34, %v4688_v11  ;;  %v5067_v53 = vadd.f32 %v5035_v9, %v5003_v6  ;;  %v5104_v9 = vld [vmem:[#allocation4 + $0x16a] sm:$0xff]  ;;  %v10016_v11 = vpop.permute.xlu0 %5224  ;;  %v4978_v6 = vld [vmem:[#allocation4 + $0x180] sm:$0xff] }
 0x5fc   : > { %v4518_v62 = vpop.f32.mrf.mxu0  ;;  %v5069_v19 = vadd.f32 %v5037_v63, %v5005_v4  ;;  %v4755_v10 = vadd.f32 %v5104_v9, %v4691_v21  ;;  %v4817_v4 = vadd.f32 %v4976_v25, %v4753_v41 }
 0x5fd   : > { %v4519_v5 = vadd.f32 %v4518_v62, %v4406_v23  ;;  %v4877_v23 = vadd.f32 %v9957_v7, %v4813_v15 }
 0x5fe   : > { %v4819_v60 = vadd.f32 %v4978_v6, %v4755_v10  ;;  %v4980_v10 = vld [vmem:[#allocation4 + $0x198] sm:$0xff] }
 0x5ff   : > { %5260 = vrot.lane.b32.xlu0 %v4519_v5, %s6771_s16  ;;  %5364 = vrot.lane.b32.xlu2 %v5157_v32, %s6763_s15  ;;  %v9994_v32 = vld [vmem:[#allocation4 + $0x158] sm:$0xff]  ;;  %v4941_v1 = vadd.f32 %v9968_v49, %v4877_v23  ;;  %v4814_v5 = vadd.f32 %v4973_v35, %v4750_v50  ;;  %v10013_v35 = vpop.permute.xlu1 %5220 }
 0x600   : > { %5368 = vrot.lane.b32.xlu1 %v5159_v2, %s6763_s15  ;;  %v5068_v2 = vadd.f32 %v9957_v7, %v5004_v36  ;;  %v4816_v47 = vadd.f32 %v9994_v32, %v4752_v58  ;;  %v5162_v7 = vmul.f32 0.11111111, %v5130_v13  ;;  %v4690_v52 = vadd.f32 %v10006_v48, %v9994_v32  ;;  %v4977_v58 = vld [vmem:[#allocation4 + $0x170] sm:$0xff] }
 0x601   : > { %v4878_v15 = vadd.f32 %v5037_v63, %v4814_v5  ;;  %v10549_v63 = vld [vmem:[#allocation8_spill] sm:$0xff] }
 0x602   : > { %v5132_v44 = vadd.f32 %v9968_v49, %v5068_v2  ;;  %v4880_v29 = vadd.f32 %v10006_v48, %v4816_v47  ;;  %v5133_v49 = vadd.f32 %v5101_v34, %v5069_v19  ;;  %v5430_v24 = vsel %vm4114_vm0, %v10549_v63, %v9933_v33  ;;  %v5105_v47 = vld [vmem:[#allocation4 + $0x172] sm:$0xff]  ;;  %v5043_v63 = vld [vmem:[#allocation4 + $0x189] sm:$0xff] }
 0x603   : > { %v4942_v23 = vadd.f32 %v5101_v34, %v4878_v15  ;;  %v4692_v33 = vadd.f32 %v5041_v38, %v4977_v58  ;;  %v10038_v19 = vpop.permute.xlu0 %5230 }
 0x604   : > { %v4521_v42 = vpop.f32.mrf.mxu0  ;;  %v5164_v56 = vmul.f32 0.11111111, %v5132_v44  ;;  %v5165_v2 = vmul.f32 0.11111111, %v5133_v49  ;;  %v4979_v44 = vld [vmem:[#allocation4 + $0x188] sm:$0xff] }
 0x605   : > { %v4522_v16 = vadd.f32 %v4521_v42, %v4409_v37  ;;  %v5006_v37 = vadd.f32 %v4974_v8, %v4941_v1  ;;  %v5008_v8 = vadd.f32 %v4976_v25, %v4943_v55  ;;  %v4756_v43 = vadd.f32 %v5105_v47, %v4692_v33 }
 0x607   : > { %5366 = vrot.lane.b32.xlu0 %v5158_v40, %s6763_s15  ;;  %5370 = vrot.lane.b32.xlu2 %v5160_v0, %s6763_s15  ;;  %v5131_v40 = vadd.f32 %v9976_v45, %v5067_v53  ;;  %v5103_v0 = vld [vmem:[#allocation4 + $0x15a] sm:$0xff]  ;;  %v5070_v45 = vadd.f32 %v5038_v61, %v5006_v37  ;;  %v5007_v61 = vadd.f32 %v9994_v32, %v4942_v23  ;;  %v5107_v23 = vld [vmem:[#allocation4 + $0x18a] sm:$0xff] }
 0x608   : > { %5262 = vrot.lane.b32.xlu1 %v4522_v16, %s6771_s16  ;;  %v4754_v42 = vadd.f32 %v5103_v0, %v4690_v52  ;;  %v10025_v16 = vpop.f32.mrf.mxu3  ;;  %v4944_v50 = vadd.f32 %v5103_v0, %v4880_v29  ;;  %v4881_v53 = vadd.f32 %v5040_v14, %v4817_v4  ;;  %v4415_v32 = vadd.f32 %v9942_v28, %v9996_v31 }
 0x609   : > { %v9999_v62 = vpop.permute.xlu2 %5240  ;;  %v5163_v13 = vmul.f32 0.11111111, %v5131_v40  ;;  %v5134_v5 = vadd.f32 %v5102_v26, %v5070_v45  ;;  %v5071_v55 = vadd.f32 %v10006_v48, %v5007_v61  ;;  %v4820_v15 = vadd.f32 %v4979_v44, %v4756_v43 }
 0x60a   : > { %v4818_v1 = vadd.f32 %v4977_v58, %v4754_v42  ;;  %v5009_v34 = vadd.f32 %v4977_v58, %v4944_v50  ;;  %v4945_v37 = vadd.f32 %v5104_v9, %v4881_v53 }
 0x60b   : > { %v4884_v48 = vadd.f32 %v5043_v63, %v4820_v15 }
 0x60c   : > { %v4524_v59 = vpop.f32.mrf.mxu0  ;;  %v5073_v52 = vadd.f32 %v5041_v38, %v5009_v34  ;;  %v5010_v31 = vadd.f32 %v4978_v6, %v4945_v37  ;;  %v4418_v6 = vadd.f32 %v9942_v28, %v10025_v16 }
 0x60d   : > { %v4525_v54 = vadd.f32 %v4524_v59, %v4412_v46  ;;  %v5072_v46 = vadd.f32 %v5040_v14, %v5008_v8  ;;  %v10035_v59 = vpop.permute.xlu1 %5226  ;;  %v5166_v14 = vmul.f32 0.11111111, %v5134_v5  ;;  %v5135_v8 = vadd.f32 %v5103_v0, %v5071_v55  ;;  %v5109_v55 = vld [vmem:[#allocation4 + $0x1a2] sm:$0xff] }
 0x60e   : > { %v5137_v42 = vadd.f32 %v5105_v47, %v5073_v52 }
 0x60f   : > { %5372 = vrot.lane.b32.xlu0 %v5161_v30, %s6763_s15  ;;  %5264 = vrot.lane.b32.xlu2 %v4525_v54, %s6771_s16  ;;  %v5042_v30 = vld [vmem:[#allocation4 + $0x181] sm:$0xff]  ;;  %v5136_v25 = vadd.f32 %v5104_v9, %v5072_v46  ;;  %v5044_v9 = vld [vmem:[#allocation4 + $0x199] sm:$0xff]  ;;  %v5167_v0 = vmul.f32 0.11111111, %v5135_v8 }
 0x610   : > { %5374 = vrot.lane.b32.xlu1 %v5162_v7, %s6763_s15  ;;  %v4883_v21 = vadd.f32 %v5042_v30, %v4819_v60  ;;  %v4882_v7 = vadd.f32 %v5041_v38, %v4818_v1  ;;  %v4527_v26 = vpop.f32.mrf.mxu3  ;;  %v5106_v54 = vld [vmem:[#allocation4 + $0x182] sm:$0xff]  ;;  %v5169_v58 = vmul.f32 0.11111111, %v5137_v42  ;;  %v5074_v38 = vadd.f32 %v5042_v30, %v5010_v31  ;;  %v10550_v30 = vld [vmem:[#allocation20_spill] sm:$0xff] }
 0x611   : > { %v5335_v27 = vpop.permute.xlu2 %5334  ;;  %v5168_v40 = vmul.f32 0.11111111, %v5136_v25  ;;  %v4528_v49 = vadd.f32 %v4527_v26, %v4415_v32  ;;  %v4981_v60 = vld [vmem:[#allocation4 + $0x1a0] sm:$0xff]  ;;  %v5433_v28 = vsel %vm4114_vm0, %v10550_v30, %v9964_v39  ;;  %v10551_v39 = vld [vmem:[#allocation15_spill] sm:$0xff] }
 0x612   : > { %v5462_v36 = vsel %vm2099_vm7, %v5430_v24, %v5335_v27  ;;  %v4947_v29 = vadd.f32 %v5106_v54, %v4883_v21  ;;  %v4946_v41 = vadd.f32 %v5105_v47, %v4882_v7  ;;  %v5138_v1 = vadd.f32 %v5106_v54, %v5074_v38  ;;  %v5045_v47 = vld [vmem:[#allocation4 + $0x1a1] sm:$0xff] }
 0x613   : > { %5495 = vst.msk [vmem:[%s10028_s23] sm:$0xff] %vm5494_vm4, %v5462_v36  ;;  %v5431_v54 = vsel %vm4114_vm0, %v10551_v39, %v9961_v22 }
 0x614   : > { %v5012_v24 = vadd.f32 %v4980_v10, %v4947_v29  ;;  %v5011_v27 = vadd.f32 %v4979_v44, %v4946_v41  ;;  %v5170_v25 = vmul.f32 0.11111111, %v5138_v1  ;;  %v10552_v44 = vld [vmem:[#allocation31_spill] sm:$0xff] }
 0x615   : > { %v10050_v45 = vpop.permute.xlu1 %5232 }
 0x616   : > { %v5076_v4 = vadd.f32 %v5044_v9, %v5012_v24  ;;  %v5075_v33 = vadd.f32 %v5043_v63, %v5011_v27  ;;  %v10554_v63 = vld [vmem:[#allocation37_spill] sm:$0xff]  ;;  %v10555_v27 = vld [vmem:[#allocation26_spill] sm:$0xff] }
 0x617   : > { %5378 = vrot.lane.b32.xlu0 %v5164_v56, %s6763_s15  ;;  %5376 = vrot.lane.b32.xlu2 %v5163_v13, %s6763_s15  ;;  %v10046_v56 = vpop.permute.xlu0 %5236  ;;  %v4948_v13 = vadd.f32 %v5107_v23, %v4884_v48  ;;  %v5439_v31 = vsel %vm4114_vm0, %v10554_v63, %v10016_v11  ;;  %v5435_v9 = vsel %vm4114_vm0, %v10555_v27, %v9908_v51  ;;  %v10567_v63 = vld [vmem:[#allocation33_spill] sm:$0xff] }
 0x618   : > { %5380 = vrot.lane.b32.xlu1 %v5165_v2, %s6763_s15  ;;  %v4530_v50 = vpop.f32.mrf.mxu3  ;;  %v5108_v2 = vld [vmem:[#allocation4 + $0x19a] sm:$0xff]  ;;  %v5139_v34 = vadd.f32 %v5107_v23, %v5075_v33 }
 0x619   : > { %v4531_v46 = vadd.f32 %v4530_v50, %v4418_v6  ;;  %v5013_v5 = vadd.f32 %v4981_v60, %v4948_v13  ;;  %v5140_v61 = vadd.f32 %v5108_v2, %v5076_v4  ;;  %v10556_v50 = vld [vmem:[#allocation21_spill] sm:$0xff]  ;;  %v10558_v60 = vld [vmem:[#allocation35_spill] sm:$0xff] }
 0x61a   : > { %v5171_v26 = vmul.f32 0.11111111, %v5139_v34  ;;  %v5434_v11 = vsel %vm4114_vm0, %v10556_v50, %v9984_v17  ;;  %v5437_v17 = vsel %vm4114_vm0, %v10558_v60, %v10013_v35  ;;  %v10572_v60 = vld [vmem:[#allocation16_spill] sm:$0xff] }
 0x61b   : > { %v5077_v7 = vadd.f32 %v5045_v47, %v5013_v5  ;;  %v5172_v32 = vmul.f32 0.11111111, %v5140_v61  ;;  %v10560_v47 = vld [vmem:[#allocation28_spill] sm:$0xff] }
 0x61c   : > { %v5445_v35 = vsel %vm4114_vm0, %v10560_v47, %v10046_v56 }
 0x61d   : > { %v10062_v43 = vpop.permute.xlu1 %5238  ;;  %v5141_v52 = vadd.f32 %v5109_v55, %v5077_v7 }
 0x61f   : > { %5266 = vrot.lane.b32.xlu0 %v4528_v49, %s6771_s16  ;;  %5382 = vrot.lane.b32.xlu2 %v5166_v14, %s6763_s15  ;;  %v5436_v14 = vsel %vm4114_vm0, %v10552_v44, %v9987_v20  ;;  %v5173_v10 = vmul.f32 0.11111111, %v5141_v52  ;;  %v10553_v20 = vld [vmem:[#allocation17_spill] sm:$0xff] }
 0x620   : > { %5386 = vrot.lane.b32.xlu1 %v5168_v40, %s6763_s15  ;;  %v5432_v49 = vsel %vm4114_vm0, %v10553_v20, %v9895_v57 }
 0x621   : > { %v10048_v36 = vpop.permute.xlu2 %5246 }
 0x627   : > { %5384 = vrot.lane.b32.xlu0 %v5167_v0, %s6763_s15  ;;  %5388 = vrot.lane.b32.xlu2 %v5169_v58, %s6763_s15  ;;  %v10557_v58 = vld [vmem:[#allocation19_spill] sm:$0xff] }
 0x628   : > { %5268 = vrot.lane.b32.xlu1 %v4531_v46, %s6771_s16  ;;  %v5442_v38 = vsel %vm4114_vm0, %v10557_v58, %v10038_v19  ;;  %v10559_v46 = vld [vmem:[#allocation36_spill] sm:$0xff] }
 0x629   : > { %v10060_v16 = vpop.permute.xlu0 %5242  ;;  %v5341_v53 = vpop.permute.xlu2 %5340  ;;  %v5438_v1 = vsel %vm4114_vm0, %v10559_v46, %v9923_v12 }
 0x62a   : > { %v5465_v21 = vsel %vm2099_vm7, %v5433_v28, %v5341_v53  ;;  %v10561_v53 = vld [vmem:[#allocation11_spill] sm:$0xff] }
 0x62b   : > { %5498 = vst.msk [vmem:[%s10028_s23 + $0x18] sm:$0xff] %vm5494_vm4, %v5465_v21  ;;  %v5441_v12 = vsel %vm4114_vm0, %v10561_v53, %v9955_v18 }
 0x62f   : > { %5390 = vrot.lane.b32.xlu0 %v5170_v25, %s6763_s15  ;;  %5394 = vrot.lane.b32.xlu2 %v5172_v32, %s6763_s15  ;;  %v10562_v32 = vld [vmem:[#allocation9_spill] sm:$0xff] }
 0x630   : > { %5392 = vrot.lane.b32.xlu1 %v5171_v26, %s6763_s15  ;;  %v5440_v56 = vsel %vm4114_vm0, %v10562_v32, %v10035_v59  ;;  %v10563_v26 = vld [vmem:[#allocation10_spill] sm:$0xff] }
 0x631   : > { %v5337_v37 = vpop.permute.xlu0 %5336  ;;  %v5347_v15 = vpop.permute.xlu2 %5346  ;;  %v5448_v55 = vsel %vm4114_vm0, %v10563_v26, %v10060_v16  ;;  %v10577_v26 = vld [vmem:[#allocation38_spill] sm:$0xff] }
 0x632   : > { %v5463_v29 = vsel %vm2099_vm7, %v5431_v54, %v5337_v37  ;;  %v5468_v40 = vsel %vm2099_vm7, %v5436_v14, %v5347_v15  ;;  %v10078_v41 = vpop.permute.xlu1 %5244  ;;  %v10564_v14 = vld [vmem:[#allocation23_spill] sm:$0xff]  ;;  %v10565_v15 = vld [vmem:[#allocation24_spill] sm:$0xff] }
 0x633   : > { %5496 = vst.msk [vmem:[%s10028_s23 + $0x8] sm:$0xff] %vm5494_vm4, %v5463_v29  ;;  %v5443_v59 = vsel %vm4114_vm0, %v10564_v14, %v10050_v45  ;;  %v5444_v29 = vsel %vm4114_vm0, %v10565_v15, %v9979_v3  ;;  %v5447_v3 = vsel %vm4114_vm0, %v10567_v63, %v9999_v62 }
 0x634   : > { %5501 = vst.msk [vmem:[%s10028_s23 + $0x30] sm:$0xff] %vm5494_vm4, %v5468_v40 }
 0x637   : > { %5396 = vrot.lane.b32.xlu0 %v5173_v10, %s6763_s15  ;;  %s5715_s15 = sshll.u32 %s6835_s28, 8  ;;  %s5540_s28 = sshll.u32 %s10028_s23, 4  ;;  %s5541_s28 = int_to_ptr.vmem [resolvable:$true] %s5540_s28 }
 0x638   : > { %s5539_s9 = scalar_lea.hbm %s10295_s7, %s5715_s15 }
 0x639   : > { %v10085_v22 = vpop.permute.xlu2 %5252  ;;  %s5542_s13 = sshll.u32 %s5539_s9, 4  ;;  %s5543_s13 = int_to_ptr.hbm [resolvable:$true] %s5542_s13 }
 0x63a   : > { %v5339_v8 = vpop.permute.xlu1 %5338  ;;  %s6709_s22 = sshra.s32 %s5543_s13, 4  ;;  %s6710_s22 = int_to_ptr.hbm [resolvable:$true] %s6709_s22 }
 0x63b   : > { %v5464_v42 = vsel %vm2099_vm7, %v5432_v49, %v5339_v8  ;;  %v10566_v49 = vld [vmem:[#allocation22_spill] sm:$0xff]  ;;  %s6711_s17 = scalar_lea.hbm %s6710_s22, 256  ;;  %p6716_p0 = scmp.lt.s32.totalorder %s6710_s22, %s10295_s7 }
 0x63c   : > { %5497 = vst.msk [vmem:[%s10028_s23 + $0x10] sm:$0xff] %vm5494_vm4, %v5464_v42  ;;  %p6712_p11 = scmp.ne.s32.totalorder %s6710_s22, %s6711_s17  ;;  %p6717_p1 = scmp.lt.s32.totalorder %s6715_s8, %s6711_s17 }
 0x63e   : > { %p6713_p12 = pnand %p6712_p11, %p6852_p5  ;;  %p6718_p2 = por %p6717_p1, %p6716_p0 }
 0x640   : > { %p6714_p13 = pneg %p6713_p12 }
 0x641   : > { %v5249_v48 = vpop.permute.xlu0 %5248  ;;  %v5353_v24 = vpop.permute.xlu2 %5352 }
 0x642   : > { %v5471_v0 = vsel %vm2099_vm7, %v5439_v31, %v5353_v24  ;;  %v5345_v57 = vpop.permute.xlu1 %5344  ;;  %v5451_v45 = vsel %vm4114_vm0, %v10566_v49, %v5249_v48  ;;  %p6719_p3 = pnand %p6718_p2, %p6714_p13 }
 0x643   : > { %5504 = vst.msk [vmem:[%s10028_s23 + $0x48] sm:$0xff] %vm5494_vm4, %v5471_v0  ;;  %v5467_v23 = vsel %vm2099_vm7, %v5435_v9, %v5345_v57  ;;  %v10568_v9 = vld [vmem:[#allocation32_spill] sm:$0xff]  ;;  %v10569_v0 = vld [vmem:[#allocation34_spill] sm:$0xff] }
 0x644   : > { %5500 = vst.msk [vmem:[%s10028_s23 + $0x28] sm:$0xff] %vm5494_vm4, %v5467_v23  ;;  %v5446_v48 = vsel %vm4114_vm0, %v10568_v9, %v10062_v43 }
 0x649   : > { %v5343_v51 = vpop.permute.xlu0 %5342  ;;  %v5359_v13 = vpop.permute.xlu2 %5358 }
 0x64a   : > { %v5466_v4 = vsel %vm2099_vm7, %v5434_v11, %v5343_v51  ;;  %v5474_v6 = vsel %vm2099_vm7, %v5442_v38, %v5359_v13  ;;  %v10113_v33 = vpop.permute.xlu1 %5250  ;;  %v10570_v38 = vld [vmem:[#allocation13_spill] sm:$0xff]  ;;  %v10571_v51 = vld [vmem:[#allocation12_spill] sm:$0xff] }
 0x64b   : > { %5499 = vst.msk [vmem:[%s10028_s23 + $0x20] sm:$0xff] %vm5494_vm4, %v5466_v4  ;;  %v5449_v43 = vsel %vm4114_vm0, %v10570_v38, %v10078_v41 }
 0x64c   : > { %5507 = vst.msk [vmem:[%s10028_s23 + $0x60] sm:$0xff] %vm5494_vm4, %v5474_v6 }
 0x651   : > { %v5349_v2 = vpop.permute.xlu0 %5348  ;;  %v10122_v19 = vpop.permute.xlu2 %5258 }
 0x652   : > { %v5469_v5 = vsel %vm2099_vm7, %v5437_v17, %v5349_v2  ;;  %v5351_v61 = vpop.permute.xlu1 %5350  ;;  %v5450_v17 = vsel %vm4114_vm0, %v10572_v60, %v10048_v36 }
 0x653   : > { %5502 = vst.msk [vmem:[%s10028_s23 + $0x38] sm:$0xff] %vm5494_vm4, %v5469_v5  ;;  %v5470_v34 = vsel %vm2099_vm7, %v5438_v1, %v5351_v61  ;;  %v10573_v5 = vld [vmem:[#allocation27_spill] sm:$0xff] }
 0x654   : > { %5503 = vst.msk [vmem:[%s10028_s23 + $0x40] sm:$0xff] %vm5494_vm4, %v5470_v34  ;;  %v5452_v61 = vsel %vm4114_vm0, %v10573_v5, %v10113_v33  ;;  %v10574_v34 = vld [vmem:[#allocation29_spill] sm:$0xff]  ;;  %v10575_v33 = vld [vmem:[#allocation39_spill] sm:$0xff] }
 0x655   : > { %v5453_v47 = vsel %vm4114_vm0, %v10574_v34, %v10085_v22 }
 0x659   : > { %v5255_v30 = vpop.permute.xlu0 %5254  ;;  %v5365_v28 = vpop.permute.xlu2 %5364 }
 0x65a   : > { %v5477_v21 = vsel %vm2099_vm7, %v5445_v35, %v5365_v28  ;;  %v5357_v25 = vpop.permute.xlu1 %5356  ;;  %v5454_v57 = vsel %vm4114_vm0, %v10569_v0, %v5255_v30 }
 0x65b   : > { %5510 = vst.msk [vmem:[%s10028_s23 + $0x78] sm:$0xff] %vm5494_vm4, %v5477_v21  ;;  %v5473_v7 = vsel %vm2099_vm7, %v5441_v12, %v5357_v25  ;;  %v5456_v21 = vsel %vm4114_vm0, %v10575_v33, %v10122_v19  ;;  %v10576_v25 = vld [vmem:[#allocation25_spill] sm:$0xff] }
 0x65c   : > { %5506 = vst.msk [vmem:[%s10028_s23 + $0x58] sm:$0xff] %vm5494_vm4, %v5473_v7 }
 0x661   : > { %v5355_v18 = vpop.permute.xlu0 %5354  ;;  %v5371_v52 = vpop.permute.xlu2 %5370 }
 0x662   : > { %v5472_v39 = vsel %vm2099_vm7, %v5440_v56, %v5355_v18  ;;  %v5480_v54 = vsel %vm2099_vm7, %v5448_v55, %v5371_v52  ;;  %v5257_v44 = vpop.permute.xlu1 %5256 }
 0x663   : > { %5505 = vst.msk [vmem:[%s10028_s23 + $0x50] sm:$0xff] %vm5494_vm4, %v5472_v39  ;;  %v5455_v55 = vsel %vm4114_vm0, %v10577_v26, %v5257_v44  ;;  %v10578_v39 = vld [vmem:[#allocation14_spill] sm:$0xff] }
 0x664   : > { %5513 = vst.msk [vmem:[%s10028_s23 + $0x90] sm:$0xff] %vm5494_vm4, %v5480_v54 }
 0x669   : > { %v5361_v37 = vpop.permute.xlu0 %5360  ;;  %v10160_v16 = vpop.permute.xlu2 %5264 }
 0x66a   : > { %v5475_v40 = vsel %vm2099_vm7, %v5443_v59, %v5361_v37  ;;  %v5363_v10 = vpop.permute.xlu1 %5362  ;;  %v10579_v59 = vld [vmem:[#allocation18_spill] sm:$0xff] }
 0x66b   : > { %5508 = vst.msk [vmem:[%s10028_s23 + $0x68] sm:$0xff] %vm5494_vm4, %v5475_v40  ;;  %v5476_v20 = vsel %vm2099_vm7, %v5444_v29, %v5363_v10  ;;  %v5459_v37 = vsel %vm4114_vm0, %v10579_v59, %v10160_v16  ;;  %v10580_v40 = vld [vmem:[#allocation30_spill] sm:$0xff] }
 0x66c   : > { %5509 = vst.msk [vmem:[%s10028_s23 + $0x70] sm:$0xff] %vm5494_vm4, %v5476_v20 }
 0x671   : > { %v5261_v8 = vpop.permute.xlu0 %5260  ;;  %v5377_v42 = vpop.permute.xlu2 %5376 }
 0x672   : > { %v5483_v31 = vsel %vm2099_vm7, %v5451_v45, %v5377_v42  ;;  %v5369_v24 = vpop.permute.xlu1 %5368  ;;  %v5457_v13 = vsel %vm4114_vm0, %v10571_v51, %v5261_v8 }
 0x673   : > { %5516 = vst.msk [vmem:[%s10028_s23 + $0xa8] sm:$0xff] %vm5494_vm4, %v5483_v31  ;;  %v5479_v27 = vsel %vm2099_vm7, %v5447_v3, %v5369_v24 }
 0x674   : > { %5512 = vst.msk [vmem:[%s10028_s23 + $0x88] sm:$0xff] %vm5494_vm4, %v5479_v27 }
 0x679   : > { %v5367_v23 = vpop.permute.xlu0 %5366  ;;  %v5383_v50 = vpop.permute.xlu2 %5382 }
 0x67a   : > { %v5478_v62 = vsel %vm2099_vm7, %v5446_v48, %v5367_v23  ;;  %v5486_v11 = vsel %vm2099_vm7, %v5454_v57, %v5383_v50  ;;  %v5263_v58 = vpop.permute.xlu1 %5262 }
 0x67b   : > { %5511 = vst.msk [vmem:[%s10028_s23 + $0x80] sm:$0xff] %vm5494_vm4, %v5478_v62  ;;  %v5458_v54 = vsel %vm4114_vm0, %v10578_v39, %v5263_v58 }
 0x67c   : > { %5519 = vst.msk [vmem:[%s10028_s23 + $0xc0] sm:$0xff] %vm5494_vm4, %v5486_v11 }
 0x681   : > { %v5373_v4 = vpop.permute.xlu0 %5372  ;;  %v5389_v6 = vpop.permute.xlu2 %5388 }
 0x682   : > { %v5481_v2 = vsel %vm2099_vm7, %v5449_v43, %v5373_v4  ;;  %v5489_v46 = vsel %vm2099_vm7, %v5457_v13, %v5389_v6  ;;  %v5375_v1 = vpop.permute.xlu1 %5374 }
 0x683   : > { %5514 = vst.msk [vmem:[%s10028_s23 + $0x98] sm:$0xff] %vm5494_vm4, %v5481_v2  ;;  %v5482_v41 = vsel %vm2099_vm7, %v5450_v17, %v5375_v1 }
 0x684   : > { %5522 = vst.msk [vmem:[%s10028_s23 + $0xd8] sm:$0xff] %vm5494_vm4, %v5489_v46 }
 0x685   : > { %5515 = vst.msk [vmem:[%s10028_s23 + $0xa0] sm:$0xff] %vm5494_vm4, %v5482_v41 }
 0x689   : > { %v5379_v36 = vpop.permute.xlu0 %5378  ;;  %v5395_v53 = vpop.permute.xlu2 %5394 }
 0x68a   : > { %v5484_v35 = vsel %vm2099_vm7, %v5452_v61, %v5379_v36  ;;  %v5381_v30 = vpop.permute.xlu1 %5380 }
 0x68b   : > { %5517 = vst.msk [vmem:[%s10028_s23 + $0xb0] sm:$0xff] %vm5494_vm4, %v5484_v35  ;;  %v5485_v28 = vsel %vm2099_vm7, %v5453_v47, %v5381_v30 }
 0x68c   : > { %5518 = vst.msk [vmem:[%s10028_s23 + $0xb8] sm:$0xff] %vm5494_vm4, %v5485_v28 }
 0x691   : > { %v5267_v12 = vpop.permute.xlu0 %5266 }
 0x692   : > { %v5460_v22 = vsel %vm4114_vm0, %v10576_v25, %v5267_v12  ;;  %v5387_v7 = vpop.permute.xlu1 %5386 }
 0x693   : > { %v5488_v32 = vsel %vm2099_vm7, %v5456_v21, %v5387_v7  ;;  %v5492_v56 = vsel %vm2099_vm7, %v5460_v22, %v5395_v53 }
 0x694   : > { %5521 = vst.msk [vmem:[%s10028_s23 + $0xd0] sm:$0xff] %vm5494_vm4, %v5488_v32 }
 0x695   : > { %5525 = vst.msk [vmem:[%s10028_s23 + $0xf0] sm:$0xff] %vm5494_vm4, %v5492_v56 }
 0x699   : > { %v5385_v18 = vpop.permute.xlu0 %5384 }
 0x69a   : > { %v5487_v19 = vsel %vm2099_vm7, %v5455_v55, %v5385_v18  ;;  %v5269_v52 = vpop.permute.xlu1 %5268 }
 0x69b   : > { %5520 = vst.msk [vmem:[%s10028_s23 + $0xc8] sm:$0xff] %vm5494_vm4, %v5487_v19  ;;  %v5461_v16 = vsel %vm4114_vm0, %v10580_v40, %v5269_v52 }
 0x6a1   : > { %v5391_v14 = vpop.permute.xlu0 %5390 }
 0x6a2   : > { %v5490_v15 = vsel %vm2099_vm7, %v5458_v54, %v5391_v14  ;;  %v5393_v44 = vpop.permute.xlu1 %5392 }
 0x6a3   : > { %5523 = vst.msk [vmem:[%s10028_s23 + $0xe0] sm:$0xff] %vm5494_vm4, %v5490_v15  ;;  %v5491_v29 = vsel %vm2099_vm7, %v5459_v37, %v5393_v44 }
 0x6a4   : > { %5524 = vst.msk [vmem:[%s10028_s23 + $0xe8] sm:$0xff] %vm5494_vm4, %v5491_v29 }
 0x6a9   : > { %v5397_v10 = vpop.permute.xlu0 %5396 }
 0x6aa   : > { %v5493_v20 = vsel %vm2099_vm7, %v5461_v16, %v5397_v10 }
 0x6ab   : > { %5526 = vst.msk [vmem:[%s10028_s23 + $0xf8] sm:$0xff] %vm5494_vm4, %v5493_v20 }
 0x6ac   : > { %6722 = shalt.err (!%p6719_p3)
}
 0x6ad   : > { %s6772_s14 = smov 128   ;;  %s6773_s23 = smov 8  }
 0x6ae   : > { %5730 = dma.vmem_to_hbm [thread:$0]  (%p6852_p5), %s5541_s28, 4096, %s5543_s13, %s5528_s20, %s6772_s14, %s6772_s14, %s6773_s23  }
 0x6af PF: > { %p5736_p4 = scmp.ge.s32.totalorder %s6757_s27, 2  ;;  %s5557_s16 = sand.u32 1, %s6745_s24  }
 0x6b0   : > { %s5558_s29 = scalar_lea.sflag [#allocation6], %s5557_s16 }
 0x6b1   : > { %p5733_p7 = pnand %p5736_p4, %p6856_p6 }
 0x6b3   : > { %p5734_p8 = pneg %p5733_p7 }
 0x6b5   : > { %6740 = dma.done.wait (%p5734_p8), %s5558_s29, 4096  }
 0x6b6   : > { %6742 = vsyncadd (%p5734_p8), %s5558_s29, 4294963200  ;;  %p17_p9 = scmp.ge.s32.totalorder %s6839_s30, 4   ;;  %s10581_s24 = smov %s6749_s25 }
 0x6b7   : > { %s10582_s25 = smov %s6753_s26  ;;  %s10583_s26 = smov %s6850_s10 }
 0x6b8   : > { %s10584_s27 = smov %s6839_s30  ;;  %19 = sbr.rel (!%p17_p9) target bundleno = 3 (0x3), region = 92 }
 0x6bd   :  { %5564 = vsyncpa [#allocation6], 1 }
 0x6be   :  { %5566 = vsyncpa [#allocation6 + $0x1], 1 }

</bundles_post_ra>
